<compile_context>
chip_gen: v6e
topology: v6e:2x2x1
jax: 0.10.0
libtpu: 0.0.40
codegen_flags: <defaults>
</compile_context>

<pallas_src>
import jax
import jax.numpy as jnp
import numpy as np
from jax.experimental import pallas as pl
from jax.experimental.pallas import tpu as pltpu

LN_EPS = 1e-5        # nn.LayerNorm default eps
LEAKY_SLOPE = 0.01   # nn.LeakyReLU default negative_slope


# ---------------------------------------------------------------------------
# Kernel: one (row-tile, E-tile) grid step.
# ---------------------------------------------------------------------------
def mlp_kernel(x_ref, g_ref, b_ref, w_ref, bias_ref, o_ref, xn_ref):
    """
    x_ref   : (C, THW)  f32   channel-major activation tile
    g_ref   : (1, C)    f32   LayerNorm gamma
    b_ref   : (1, C)    f32   LayerNorm beta
    w_ref   : (C, TN)   bf16  projection weight tile
    bias_ref: (1, TN)   f32   projection bias tile
    o_ref   : (THW, TN)       output tile
    xn_ref  : (THW, C)  bf16  scratch: normalized activations, reused over j
    """
    @pl.when(pl.program_id(2) == 0)
    def _layernorm():
        # Fused flatten(2).transpose(1,2): one in-kernel transpose (XLU slot is
        # idle here), amortized over all E tiles of this row tile.
        xt = x_ref[...].T                                         # (THW, C) f32
        mean = jnp.mean(xt, axis=-1, keepdims=True)
        # Two-pass variance: no catastrophic cancellation; clamp for safety.
        var = jnp.mean((xt - mean) ** 2, axis=-1, keepdims=True)
        inv = jax.lax.rsqrt(jnp.maximum(var, 0.0) + LN_EPS)
        xn = (xt - mean) * inv * g_ref[...] + b_ref[...]
        xn_ref[...] = xn.astype(xn_ref.dtype)                     # bf16 MXU input

    # bf16 x bf16 matmul, f32 accumulation; bias + LeakyReLU in f32.
    y = jnp.dot(xn_ref[...], w_ref[...], preferred_element_type=jnp.float32)
    y = y + bias_ref[...]
    o_ref[...] = jnp.where(y >= 0.0, y, LEAKY_SLOPE * y).astype(o_ref.dtype)


# ---------------------------------------------------------------------------
# Generation-aware VMEM budget (~80% of physical per-core VMEM).
# ---------------------------------------------------------------------------
def _vmem_limit_bytes():
    cap = 0
    try:
        cap = int(pltpu.get_tpu_info().vmem_capacity_bytes)
    except Exception:
        cap = 0
    if cap <= 0:
        cap = 64 * 1024 * 1024            # conservative (v7x-sized) fallback
    return int(cap * 4 // 5)              # ~20% headroom for compiler scratch


# ---------------------------------------------------------------------------
# Wrapper
# ---------------------------------------------------------------------------
def mlp_forward(x, gamma, beta, w, bias, *, row_tile=512, col_tile=None):
    """x: (B, C, H, W); gamma/beta: (1, C); w: (C, E); bias: (1, E).

    Returns (B, H*W, E), matching the PyTorch module's output layout.
    """
    B, C, H, W = x.shape
    E = w.shape[1]
    HW = H * W

    # ------------------------- E (output-feature) tiling -------------------------
    E_pad = ((E + 127) // 128) * 128
    if col_tile is not None:
        TN = max(128, (int(col_tile) // 128) * 128)
    elif C * E_pad * 2 <= 8 * 1024 * 1024:
        TN = E_pad                        # small weight: keep it fully VMEM-resident
    elif E_pad % 256 == 0:
        TN = 256                          # MXU-native N width on v6e / v7x
    else:
        TN = 128
    nj = pl.cdiv(E_pad, TN)
    E_pad = nj * TN

    # ------------------------- token (HW) tiling -------------------------
    vmem_limit = _vmem_limit_bytes()
    row_tile = max(128, (int(row_tile) // 128) * 128)
    THW = row_tile if HW > row_tile else ((HW + 127) // 128) * 128

    def working_set(thw):                 # rough per-step VMEM estimate (bytes)
        return (2 * C * thw * 4                         # input tile, 2 buffers (f32)
                + thw * C * 2                           # bf16 LN scratch (single)
                + (1 if nj == 1 else 2) * C * TN * 2    # weight tile buffer(s), bf16
                + 2 * thw * TN * 4                      # output tile, 2 buffers (f32)
                + 16 * C + 8 * TN)                      # LN params + bias

    while THW > 128 and working_set(THW) > 0.7 * vmem_limit:
        THW = max(128, (THW // 2 // 128) * 128)

    ni = pl.cdiv(HW, THW)
    # v7x has 2 TensorCores: keep >= 2 steps on the parallel grid axes if possible.
    if B * ni < 2 and HW > 128:
        THW = max(128, (((HW + 1) // 2 + 127) // 128) * 128)
        ni = pl.cdiv(HW, THW)
    HW_pad = ni * THW

    # -------------- layout plumbing: free reshape + zero padding only --------------
    x3 = x.reshape(B, C, HW)              # channel-major view; NO wrapper transpose
    if HW_pad != HW:
        x3 = jnp.pad(x3, ((0, 0), (0, 0), (0, HW_pad - HW)))
    g2 = gamma.reshape(1, C)
    b2 = beta.reshape(1, C)
    w_bf = w.astype(jnp.bfloat16)
    bias2 = bias.reshape(1, E)
    if E_pad != E:
        w_bf = jnp.pad(w_bf, ((0, 0), (0, E_pad - E)))
        bias2 = jnp.pad(bias2, ((0, 0), (0, E_pad - E)))

    def build(conservative):
        def const_spec(shape, index_map, is_const):
            if is_const and not conservative:
                # Constant index_map -> single buffer, freeing VMEM for bigger tiles.
                return pl.BlockSpec(shape, index_map, pipeline_mode=pl.Buffered(1))
            return pl.BlockSpec(shape, index_map)

        in_specs = [
            pl.BlockSpec((None, C, THW), lambda b, i, j: (b, 0, i)),    # activations
            const_spec((1, C), lambda b, i, j: (0, 0), True),           # LN gamma
            const_spec((1, C), lambda b, i, j: (0, 0), True),           # LN beta
            const_spec((C, TN), lambda b, i, j: (0, j), nj == 1),       # weight
            const_spec((1, TN), lambda b, i, j: (0, j), nj == 1),       # bias
        ]
        out_spec = pl.BlockSpec((None, THW, TN), lambda b, i, j: (b, i, j))

        kwargs = dict(
            out_shape=jax.ShapeDtypeStruct((B, HW_pad, E_pad), x.dtype),
            grid=(B, ni, nj),
            in_specs=in_specs,
            out_specs=out_spec,
            scratch_shapes=[pltpu.VMEM((THW, C), jnp.bfloat16)],
            compiler_params=pltpu.CompilerParams(
                # j (E tiles) must stay sequential: it reuses the LN scratch.
                dimension_semantics=("parallel", "parallel", "arbitrary"),
                vmem_limit_bytes=int(vmem_limit)),
        )
        if not conservative:
            M = B * HW
            kwargs["cost_estimate"] = pl.CostEstimate(
                flops=2 * M * C * E,
                transcendentals=0,
                bytes_accessed=M * C * 4 + M * E * 4 + C * E * 2)
        return pl.pallas_call(mlp_kernel, **kwargs)

    try:
        out = build(conservative=False)(x3, g2, b2, w_bf, bias2)
    except Exception:
        # Fallback without optional extras (pl.Buffered / cost_estimate) in case
        # the installed JAX predates them; kernel math is identical.
        out = build(conservative=True)(x3, g2, b2, w_bf, bias2)

    return out[:, :HW, :E]


# ---------------------------------------------------------------------------
# Pure-JAX reference (mirrors the PyTorch forward; same bf16 matmul precision)
# ---------------------------------------------------------------------------
def ref_forward(x, gamma, beta, w, bias):
    B, C, H, W = x.shape
    t = x.reshape(B, C, H * W).transpose(0, 2, 1)                  # (B, HW, C)
    m = t.mean(-1, keepdims=True)
    v = ((t - m) ** 2).mean(-1, keepdims=True)
    tn = (t - m) / jnp.sqrt(v + LN_EPS) * gamma.reshape(-1) + beta.reshape(-1)
    y = jnp.dot(tn.astype(jnp.bfloat16), w.astype(jnp.bfloat16),
                preferred_element_type=jnp.float32) + bias.reshape(-1)
    return jnp.where(y >= 0, y, LEAKY_SLOPE * y).astype(x.dtype)


# ---------------------------------------------------------------------------
# Demo
# ---------------------------------------------------------------------------
if __name__ == "__main__":
    # Small, TPU-friendly config: input_dim = C = 256, embed_dim = E = 256,
    # 2 x 16 x 16 tokens (feature dims multiples of 128 => lane-dense I/O).
    B, C, H, W = 2, 256, 16, 16
    E = 256

    key = jax.random.PRNGKey(0)
    kx, kg, kb, kw, kbb = jax.random.split(key, 5)
    x = jax.random.normal(kx, (B, C, H, W), jnp.float32)
    gamma = 1.0 + 0.1 * jax.random.normal(kg, (1, C), jnp.float32)
    beta = 0.05 * jax.random.normal(kb, (1, C), jnp.float32)
    w = (0.05 * jax.random.normal(kw, (C, E), jnp.float32)).astype(jnp.bfloat16)
    bias = 0.01 * jax.random.normal(kbb, (1, E), jnp.float32)

    ref = jax.block_until_ready(ref_forward(x, gamma, beta, w, bias))

    # Default path: fused transpose, whole weight resident, single row tile/batch.
    out = jax.block_until_ready(mlp_forward(x, gamma, beta, w, bias))
    assert out.shape == (B, H * W, E)
    assert np.allclose(np.asarray(out), np.asarray(ref), rtol=2e-3, atol=2e-3), \
        "Pallas output mismatch vs JAX reference (default tiling)"

    # Forced-tiling path: exercises HW tiling, E streaming and LN-scratch reuse.
    out2 = jax.block_until_ready(
        mlp_forward(x, gamma, beta, w, bias, row_tile=128, col_tile=128))
    assert np.allclose(np.asarray(out2), np.asarray(ref), rtol=2e-3, atol=2e-3), \
        "Pallas output mismatch vs JAX reference (forced tiling)"

    print("KERNEL_OK")
</pallas_src>

<mosaic_0001>
module attributes {stable_mosaic.version = 11 : i64} {
  func.func @mlp_kernel(%arg0: i32, %arg1: i32, %arg2: i32, %arg3: memref<1x256x256xf32, #tpu.memory_space<vmem>>, %arg4: memref<1x256xf32, #tpu.memory_space<vmem>>, %arg5: memref<1x256xf32, #tpu.memory_space<vmem>>, %arg6: memref<256x256xbf16, #tpu.memory_space<vmem>>, %arg7: memref<1x256xf32, #tpu.memory_space<vmem>>, %arg8: memref<1x256x256xf32, #tpu.memory_space<vmem>>, %arg9: memref<256x256xbf16, #tpu.memory_space<vmem>>) attributes {dimension_semantics = [#tpu.dimension_semantics<parallel>, #tpu.dimension_semantics<parallel>, #tpu.dimension_semantics<arbitrary>], iteration_bounds = array<i64: 2, 1, 1>, scalar_prefetch = 0 : i64, scratch_operands = 1 : i64, tpu.core_type = #tpu.core_type<tc>, window_params = [{transform_indices = @transform_0, window_bounds = array<i64: 1, 256, 256>}, {pipeline_mode = #tpu.pipeline_mode<synchronous>, transform_indices = @transform_1, window_bounds = array<i64: 1, 256>}, {pipeline_mode = #tpu.pipeline_mode<synchronous>, transform_indices = @transform_2, window_bounds = array<i64: 1, 256>}, {pipeline_mode = #tpu.pipeline_mode<synchronous>, transform_indices = @transform_3, window_bounds = array<i64: 256, 256>}, {pipeline_mode = #tpu.pipeline_mode<synchronous>, transform_indices = @transform_4, window_bounds = array<i64: 1, 256>}, {transform_indices = @transform_5, window_bounds = array<i64: 1, 256, 256>}]} {
    %c0_i32 = arith.constant 0 : i32
    %0 = arith.cmpi eq, %arg2, %c0_i32 : i32
    %1 = arith.extui %0 : i1 to i32
    %c0_i32_0 = arith.constant 0 : i32
    %2 = arith.cmpi ne, %1, %c0_i32_0 : i32
    scf.if %2 {
      %c0_11 = arith.constant 0 : index
      %c0_12 = arith.constant 0 : index
      %c0_13 = arith.constant 0 : index
      %17 = vector.load %arg3[%c0_11, %c0_12, %c0_13] : memref<1x256x256xf32, #tpu.memory_space<vmem>>, vector<1x256x256xf32>
      %18 = vector.shape_cast %17 : vector<1x256x256xf32> to vector<256x256xf32>
      %19 = tpu.transpose %18, [1, 0] : vector<256x256xf32> -> vector<256x256xf32>
      %cst_14 = arith.constant dense<0.000000e+00> : vector<256xf32>
      %20 = vector.multi_reduction <add>, %19, %cst_14 [1] : vector<256x256xf32> to vector<256xf32>
      %21 = vector.shape_cast %20 : vector<256xf32> to vector<256x1xf32>
      %cst_15 = arith.constant 2.560000e+02 : f32
      %22 = vector.broadcast %cst_15 : f32 to vector<256x1xf32>
      %23 = arith.divf %21, %22 : vector<256x1xf32>
      %24 = vector.broadcast %23 : vector<256x1xf32> to vector<256x256xf32>
      %25 = arith.subf %19, %24 : vector<256x256xf32>
      %26 = arith.mulf %25, %25 : vector<256x256xf32>
      %cst_16 = arith.constant dense<0.000000e+00> : vector<256xf32>
      %27 = vector.multi_reduction <add>, %26, %cst_16 [1] : vector<256x256xf32> to vector<256xf32>
      %28 = vector.shape_cast %27 : vector<256xf32> to vector<256x1xf32>
      %cst_17 = arith.constant 2.560000e+02 : f32
      %29 = vector.broadcast %cst_17 : f32 to vector<256x1xf32>
      %30 = arith.divf %28, %29 : vector<256x1xf32>
      %cst_18 = arith.constant 0.000000e+00 : f32
      %31 = vector.broadcast %cst_18 : f32 to vector<256x1xf32>
      %32 = arith.maximumf %30, %31 : vector<256x1xf32>
      %cst_19 = arith.constant 9.99999974E-6 : f32
      %33 = vector.broadcast %cst_19 : f32 to vector<256x1xf32>
      %34 = arith.addf %32, %33 : vector<256x1xf32>
      %35 = math.rsqrt %34 : vector<256x1xf32>
      %36 = vector.broadcast %23 : vector<256x1xf32> to vector<256x256xf32>
      %37 = arith.subf %19, %36 : vector<256x256xf32>
      %38 = vector.broadcast %35 : vector<256x1xf32> to vector<256x256xf32>
      %39 = arith.mulf %37, %38 : vector<256x256xf32>
      %c0_20 = arith.constant 0 : index
      %c0_21 = arith.constant 0 : index
      %40 = vector.load %arg4[%c0_20, %c0_21] : memref<1x256xf32, #tpu.memory_space<vmem>>, vector<1x256xf32>
      %41 = vector.broadcast %40 : vector<1x256xf32> to vector<256x256xf32>
      %42 = arith.mulf %39, %41 : vector<256x256xf32>
      %c0_22 = arith.constant 0 : index
      %c0_23 = arith.constant 0 : index
      %43 = vector.load %arg5[%c0_22, %c0_23] : memref<1x256xf32, #tpu.memory_space<vmem>>, vector<1x256xf32>
      %44 = vector.broadcast %43 : vector<1x256xf32> to vector<256x256xf32>
      %45 = arith.addf %42, %44 : vector<256x256xf32>
      %46 = arith.truncf %45 : vector<256x256xf32> to vector<256x256xbf16>
      %c0_24 = arith.constant 0 : index
      %c0_25 = arith.constant 0 : index
      %47 = vector.load %arg9[%c0_24, %c0_25] : memref<256x256xbf16, #tpu.memory_space<vmem>>, vector<256x256xbf16>
      tpu.vector_store %arg9[%c0_24, %c0_25], %46 {strides = array<i32>} : memref<256x256xbf16, #tpu.memory_space<vmem>>, vector<256x256xbf16>,
    } else {
    }
    %c0 = arith.constant 0 : index
    %c0_1 = arith.constant 0 : index
    %3 = vector.load %arg9[%c0, %c0_1] : memref<256x256xbf16, #tpu.memory_space<vmem>>, vector<256x256xbf16>
    %c0_2 = arith.constant 0 : index
    %c0_3 = arith.constant 0 : index
    %4 = vector.load %arg6[%c0_2, %c0_3] : memref<256x256xbf16, #tpu.memory_space<vmem>>, vector<256x256xbf16>
    %cst = arith.constant dense<0.000000e+00> : vector<256x256xf32>
    %5 = tpu.matmul %3, %4, %cst {dimension_numbers = #tpu.dot_dimension_numbers<[1], [0], [0], [1], [0, 0, 1, 1], [], []>} : vector<256x256xbf16>, vector<256x256xbf16>, vector<256x256xf32> -> vector<256x256xf32>
    %c0_4 = arith.constant 0 : index
    %c0_5 = arith.constant 0 : index
    %6 = vector.load %arg7[%c0_4, %c0_5] : memref<1x256xf32, #tpu.memory_space<vmem>>, vector<1x256xf32>
    %7 = vector.broadcast %6 : vector<1x256xf32> to vector<256x256xf32>
    %8 = arith.addf %5, %7 : vector<256x256xf32>
    %cst_6 = arith.constant 0.000000e+00 : f32
    %9 = vector.broadcast %cst_6 : f32 to vector<256x256xf32>
    %10 = arith.cmpf oge, %8, %9 : vector<256x256xf32>
    %cst_7 = arith.constant 0.00999999977 : f32
    %11 = vector.broadcast %cst_7 : f32 to vector<256x256xf32>
    %12 = arith.mulf %11, %8 : vector<256x256xf32>
    %13 = arith.select %10, %8, %12 : vector<256x256xi1>, vector<256x256xf32>
    %c0_8 = arith.constant 0 : index
    %c0_9 = arith.constant 0 : index
    %c0_10 = arith.constant 0 : index
    %14 = vector.load %arg8[%c0_8, %c0_9, %c0_10] : memref<1x256x256xf32, #tpu.memory_space<vmem>>, vector<1x256x256xf32>
    %15 = vector.shape_cast %14 : vector<1x256x256xf32> to vector<256x256xf32>
    %16 = vector.shape_cast %13 : vector<256x256xf32> to vector<1x256x256xf32>
    tpu.vector_store %arg8[%c0_8, %c0_9, %c0_10], %16 {strides = array<i32>} : memref<1x256x256xf32, #tpu.memory_space<vmem>>, vector<1x256x256xf32>,
    return
  }
  func.func @transform_0(%arg0: i32, %arg1: i32, %arg2: i32) -> (i32, i32, i32) {
    %c0_i32 = arith.constant 0 : i32
    %c0_i32_0 = arith.constant 0 : i32
    return %arg0, %c0_i32, %arg1 : i32, i32, i32
  }
  func.func @transform_1(%arg0: i32, %arg1: i32, %arg2: i32) -> (i32, i32) {
    %c0_i32 = arith.constant 0 : i32
    %c0_i32_0 = arith.constant 0 : i32
    %c0_i32_1 = arith.constant 0 : i32
    return %c0_i32, %c0_i32_0 : i32, i32
  }
  func.func @transform_2(%arg0: i32, %arg1: i32, %arg2: i32) -> (i32, i32) {
    %c0_i32 = arith.constant 0 : i32
    %c0_i32_0 = arith.constant 0 : i32
    %c0_i32_1 = arith.constant 0 : i32
    return %c0_i32, %c0_i32_0 : i32, i32
  }
  func.func @transform_3(%arg0: i32, %arg1: i32, %arg2: i32) -> (i32, i32) {
    %c0_i32 = arith.constant 0 : i32
    %c0_i32_0 = arith.constant 0 : i32
    return %c0_i32, %arg2 : i32, i32
  }
  func.func @transform_4(%arg0: i32, %arg1: i32, %arg2: i32) -> (i32, i32) {
    %c0_i32 = arith.constant 0 : i32
    %c0_i32_0 = arith.constant 0 : i32
    return %c0_i32, %arg2 : i32, i32
  }
  func.func @transform_5(%arg0: i32, %arg1: i32, %arg2: i32) -> (i32, i32, i32) {
    %c0_i32 = arith.constant 0 : i32
    return %arg0, %arg1, %arg2 : i32, i32, i32
  }
}

module attributes {stable_mosaic.version = 11 : i64} {
  func.func @mlp_kernel(%arg0: i32, %arg1: i32, %arg2: i32, %arg3: memref<1x256x256xf32, #tpu.memory_space<vmem>>, %arg4: memref<1x256xf32, #tpu.memory_space<vmem>>, %arg5: memref<1x256xf32, #tpu.memory_space<vmem>>, %arg6: memref<256x256xbf16, #tpu.memory_space<vmem>>, %arg7: memref<1x256xf32, #tpu.memory_space<vmem>>, %arg8: memref<1x256x256xf32, #tpu.memory_space<vmem>>, %arg9: memref<256x256xbf16, #tpu.memory_space<vmem>>) attributes {dimension_semantics = [#tpu.dimension_semantics<parallel>, #tpu.dimension_semantics<parallel>, #tpu.dimension_semantics<arbitrary>], iteration_bounds = array<i64: 2, 1, 1>, scalar_prefetch = 0 : i64, scratch_operands = 1 : i64, tpu.core_type = #tpu.core_type<tc>, window_params = [{transform_indices = @transform_0, window_bounds = array<i64: 1, 256, 256>}, {pipeline_mode = #tpu.pipeline_mode<synchronous>, transform_indices = @transform_1, window_bounds = array<i64: 1, 256>}, {pipeline_mode = #tpu.pipeline_mode<synchronous>, transform_indices = @transform_2, window_bounds = array<i64: 1, 256>}, {transform_indices = @transform_3, window_bounds = array<i64: 256, 256>}, {transform_indices = @transform_4, window_bounds = array<i64: 1, 256>}, {transform_indices = @transform_5, window_bounds = array<i64: 1, 256, 256>}]} {
    %c0_i32 = arith.constant 0 : i32
    %0 = arith.cmpi eq, %arg2, %c0_i32 : i32
    %1 = arith.extui %0 : i1 to i32
    %c0_i32_0 = arith.constant 0 : i32
    %2 = arith.cmpi ne, %1, %c0_i32_0 : i32
    scf.if %2 {
      %c0_11 = arith.constant 0 : index
      %c0_12 = arith.constant 0 : index
      %c0_13 = arith.constant 0 : index
      %17 = vector.load %arg3[%c0_11, %c0_12, %c0_13] : memref<1x256x256xf32, #tpu.memory_space<vmem>>, vector<1x256x256xf32>
      %18 = vector.shape_cast %17 : vector<1x256x256xf32> to vector<256x256xf32>
      %19 = tpu.transpose %18, [1, 0] : vector<256x256xf32> -> vector<256x256xf32>
      %cst_14 = arith.constant dense<0.000000e+00> : vector<256xf32>
      %20 = vector.multi_reduction <add>, %19, %cst_14 [1] : vector<256x256xf32> to vector<256xf32>
      %21 = vector.shape_cast %20 : vector<256xf32> to vector<256x1xf32>
      %cst_15 = arith.constant 2.560000e+02 : f32
      %22 = vector.broadcast %cst_15 : f32 to vector<256x1xf32>
      %23 = arith.divf %21, %22 : vector<256x1xf32>
      %24 = vector.broadcast %23 : vector<256x1xf32> to vector<256x256xf32>
      %25 = arith.subf %19, %24 : vector<256x256xf32>
      %26 = arith.mulf %25, %25 : vector<256x256xf32>
      %cst_16 = arith.constant dense<0.000000e+00> : vector<256xf32>
      %27 = vector.multi_reduction <add>, %26, %cst_16 [1] : vector<256x256xf32> to vector<256xf32>
      %28 = vector.shape_cast %27 : vector<256xf32> to vector<256x1xf32>
      %cst_17 = arith.constant 2.560000e+02 : f32
      %29 = vector.broadcast %cst_17 : f32 to vector<256x1xf32>
      %30 = arith.divf %28, %29 : vector<256x1xf32>
      %cst_18 = arith.constant 0.000000e+00 : f32
      %31 = vector.broadcast %cst_18 : f32 to vector<256x1xf32>
      %32 = arith.maximumf %30, %31 : vector<256x1xf32>
      %cst_19 = arith.constant 9.99999974E-6 : f32
      %33 = vector.broadcast %cst_19 : f32 to vector<256x1xf32>
      %34 = arith.addf %32, %33 : vector<256x1xf32>
      %35 = math.rsqrt %34 : vector<256x1xf32>
      %36 = vector.broadcast %23 : vector<256x1xf32> to vector<256x256xf32>
      %37 = arith.subf %19, %36 : vector<256x256xf32>
      %38 = vector.broadcast %35 : vector<256x1xf32> to vector<256x256xf32>
      %39 = arith.mulf %37, %38 : vector<256x256xf32>
      %c0_20 = arith.constant 0 : index
      %c0_21 = arith.constant 0 : index
      %40 = vector.load %arg4[%c0_20, %c0_21] : memref<1x256xf32, #tpu.memory_space<vmem>>, vector<1x256xf32>
      %41 = vector.broadcast %40 : vector<1x256xf32> to vector<256x256xf32>
      %42 = arith.mulf %39, %41 : vector<256x256xf32>
      %c0_22 = arith.constant 0 : index
      %c0_23 = arith.constant 0 : index
      %43 = vector.load %arg5[%c0_22, %c0_23] : memref<1x256xf32, #tpu.memory_space<vmem>>, vector<1x256xf32>
      %44 = vector.broadcast %43 : vector<1x256xf32> to vector<256x256xf32>
      %45 = arith.addf %42, %44 : vector<256x256xf32>
      %46 = arith.truncf %45 : vector<256x256xf32> to vector<256x256xbf16>
      %c0_24 = arith.constant 0 : index
      %c0_25 = arith.constant 0 : index
      %47 = vector.load %arg9[%c0_24, %c0_25] : memref<256x256xbf16, #tpu.memory_space<vmem>>, vector<256x256xbf16>
      tpu.vector_store %arg9[%c0_24, %c0_25], %46 {strides = array<i32>} : memref<256x256xbf16, #tpu.memory_space<vmem>>, vector<256x256xbf16>,
    } else {
    }
    %c0 = arith.constant 0 : index
    %c0_1 = arith.constant 0 : index
    %3 = vector.load %arg9[%c0, %c0_1] : memref<256x256xbf16, #tpu.memory_space<vmem>>, vector<256x256xbf16>
    %c0_2 = arith.constant 0 : index
    %c0_3 = arith.constant 0 : index
    %4 = vector.load %arg6[%c0_2, %c0_3] : memref<256x256xbf16, #tpu.memory_space<vmem>>, vector<256x256xbf16>
    %cst = arith.constant dense<0.000000e+00> : vector<256x256xf32>
    %5 = tpu.matmul %3, %4, %cst {dimension_numbers = #tpu.dot_dimension_numbers<[1], [0], [0], [1], [0, 0, 1, 1], [], []>} : vector<256x256xbf16>, vector<256x256xbf16>, vector<256x256xf32> -> vector<256x256xf32>
    %c0_4 = arith.constant 0 : index
    %c0_5 = arith.constant 0 : index
    %6 = vector.load %arg7[%c0_4, %c0_5] : memref<1x256xf32, #tpu.memory_space<vmem>>, vector<1x256xf32>
    %7 = vector.broadcast %6 : vector<1x256xf32> to vector<256x256xf32>
    %8 = arith.addf %5, %7 : vector<256x256xf32>
    %cst_6 = arith.constant 0.000000e+00 : f32
    %9 = vector.broadcast %cst_6 : f32 to vector<256x256xf32>
    %10 = arith.cmpf oge, %8, %9 : vector<256x256xf32>
    %cst_7 = arith.constant 0.00999999977 : f32
    %11 = vector.broadcast %cst_7 : f32 to vector<256x256xf32>
    %12 = arith.mulf %11, %8 : vector<256x256xf32>
    %13 = arith.select %10, %8, %12 : vector<256x256xi1>, vector<256x256xf32>
    %c0_8 = arith.constant 0 : index
    %c0_9 = arith.constant 0 : index
    %c0_10 = arith.constant 0 : index
    %14 = vector.load %arg8[%c0_8, %c0_9, %c0_10] : memref<1x256x256xf32, #tpu.memory_space<vmem>>, vector<1x256x256xf32>
    %15 = vector.shape_cast %14 : vector<1x256x256xf32> to vector<256x256xf32>
    %16 = vector.shape_cast %13 : vector<256x256xf32> to vector<1x256x256xf32>
    tpu.vector_store %arg8[%c0_8, %c0_9, %c0_10], %16 {strides = array<i32>} : memref<1x256x256xf32, #tpu.memory_space<vmem>>, vector<1x256x256xf32>,
    return
  }
  func.func @transform_0(%arg0: i32, %arg1: i32, %arg2: i32) -> (i32, i32, i32) {
    %c0_i32 = arith.constant 0 : i32
    %c0_i32_0 = arith.constant 0 : i32
    return %arg0, %c0_i32, %arg1 : i32, i32, i32
  }
  func.func @transform_1(%arg0: i32, %arg1: i32, %arg2: i32) -> (i32, i32) {
    %c0_i32 = arith.constant 0 : i32
    %c0_i32_0 = arith.constant 0 : i32
    %c0_i32_1 = arith.constant 0 : i32
    return %c0_i32, %c0_i32_0 : i32, i32
  }
  func.func @transform_2(%arg0: i32, %arg1: i32, %arg2: i32) -> (i32, i32) {
    %c0_i32 = arith.constant 0 : i32
    %c0_i32_0 = arith.constant 0 : i32
    %c0_i32_1 = arith.constant 0 : i32
    return %c0_i32, %c0_i32_0 : i32, i32
  }
  func.func @transform_3(%arg0: i32, %arg1: i32, %arg2: i32) -> (i32, i32) {
    %c0_i32 = arith.constant 0 : i32
    %c0_i32_0 = arith.constant 0 : i32
    return %c0_i32, %arg2 : i32, i32
  }
  func.func @transform_4(%arg0: i32, %arg1: i32, %arg2: i32) -> (i32, i32) {
    %c0_i32 = arith.constant 0 : i32
    %c0_i32_0 = arith.constant 0 : i32
    return %c0_i32, %arg2 : i32, i32
  }
  func.func @transform_5(%arg0: i32, %arg1: i32, %arg2: i32) -> (i32, i32, i32) {
    %c0_i32 = arith.constant 0 : i32
    return %arg0, %arg1, %arg2 : i32, i32, i32
  }
}

</mosaic_0001>

<bundles_post_ra>
// kernel: tpu_custom_call.1
= control target key start
LH: loop header
LB: loop body
LE: loop exit
PB: predicated region body
PF: predicated region fallthrough
CT: control target
= control target key end

     0   :  { %s4266_s0 = inlined_call_operand.hbm [shape: f32[2,256,256], index: 0, kind: input, shape index: {}]   ;;  %s4267_s1 = inlined_call_operand.hbm [shape: f32[1,256], index: 1, kind: input, shape index: {}]   ;;  %s4268_s2 = inlined_call_operand.vmem [shape: f32[1,256], index: 2, kind: input, shape index: {}]   ;;  %s4269_s3 = inlined_call_operand.hbm [shape: bf16[256,256], index: 3, kind: input, shape index: {}]   ;;  %s4270_s4 = inlined_call_operand.vmem [shape: f32[1,256], index: 4, kind: input, shape index: {}]   ;;  %s4271_s5 = inlined_call_operand.hbm [shape: f32[2,256,256], index: 5, kind: output, shape index: {}]  }
   0x1   :  { %4322 = sst [smem:[#allocation44_spill]] %s4267_s1 }
   0x2   :  { %10 = vsyncpa [#allocation4], 0 }
   0x3   :  { %12 = vsyncpa [#allocation4 + $0x1], 0 }
   0x4   :  { %13 = vsyncpa [#allocation7], 0 }
   0x5   :  { %14 = vsyncpa [#allocation5], 0 }
   0x6   :  { %16 = vsyncpa [#allocation5 + $0x1], 0  ;;  %s3055_s18 = smov 0   ;;  %s3057_s19 = smov 0  }
   0x7   :  { %s3059_s20 = smov 0   ;;  %s3061_s21 = smov 0  }
   0x8   :  { %s3063_s22 = smov 0   ;;  %s3065_s23 = smov 0  }
   0x9 LB: > { %4323 = sst [smem:[#allocation13_spill]] %s3013_s23  ;;  %s2434_s24 = sadd.s32 4294967295, %s3013_s23   ;;  %s3013_s23 = sphi %s3065_s23, %s22_s23   ;;  %s3009_s22 = sphi %s3063_s22, %s4431_s22   ;;  %s3005_s21 = sphi %s3061_s21, %s4430_s21   ;;  %s3001_s20 = sphi %s3059_s20, %s4429_s20   ;;  %s2997_s19 = sphi %s3057_s19, %s4428_s19   ;;  %s2993_s18 = sphi %s3055_s18, %s4427_s18  }
   0xa   : > { %s2435_s25 = sadd.s32 4294967294, %s3013_s23   ;;  %p57_p0 = scmp.ne.s32.totalorder %s3001_s20, %s2997_s19 }
   0xb   : > { %p58_p1 = scmp.eq.s32.totalorder %s3013_s23, 0  ;;  %p63_p2 = scmp.ne.s32.totalorder %s2997_s19, %s2993_s18 }
   0xc   : > { %p3093_p3 = scmp.eq.s32.totalorder %s2434_s24, 0  ;;  %p185_p4 = scmp.eq.s32.totalorder %s2434_s24, 1 }
   0xd   : > { %p3097_p5 = por %p58_p1, %p57_p0  ;;  %p191_p6 = scmp.eq.s32.totalorder %s2435_s25, 1 }
   0xe   : > { %s4324_s27 = scalar_select %p3093_p3, 1, 0 }
   0xf   : > { %p3103_p7 = por %p3093_p3, %p63_p2  ;;  %p3107_p8 = por %p185_p4, %p57_p0 }
  0x10   : > { %p3111_p9 = por %p191_p6, %p63_p2  ;;  %p2436_p10 = scmp.ge.s32.totalorder %s3013_s23, 1 }
  0x11   : > { %s4326_s29 = scalar_select %p3103_p7, 1, 0 }
  0x12   : > { %s4327_s30 = scalar_select %p3107_p8, 1, 0 }
  0x13   : > { %s4328_s6 = scalar_select %p3111_p9, 1, 0 }
  0x14   : > { %p198_p11 = scmp.lt.s32.totalorder %s3013_s23, 3  ;;  %s3015_s8 = smov [#allocation6]  }
  0x15   : > { %4329 = sst [smem:[#allocation14_spill]] %s4328_s6  ;;  %s211_s9 = sshll.u32 %s3015_s8, 4  ;;  %s212_s9 = int_to_ptr.vmem [resolvable:$true] %s211_s9 }
  0x16   : > { %p3118_p13 = pnand %p2436_p10, %p198_p11  ;;  %p2677_p1 = scmp.lt.s32.totalorder %s3013_s23, 2 }
  0x17   : > { %s3016_s11 = smov [#allocation8]   ;;  %s2860_s14 = scalar_lea.vmem %s212_s9, 32 }
  0x18   : > { %s4330_s7 = scalar_select %p3118_p13, 1, 0 }
  0x19   : > { %p2660_p0 = pneg %p3118_p13  ;;  %p3127_p4 = pnand %p2677_p1, %p3097_p5 }
  0x1a   : > { %s227_s12 = sshll.u32 %s3016_s11, 4  ;;  %p2861_p10 = scmp.ne.s32.totalorder %s212_s9, %s2860_s14  ;;  %s228_s12 = int_to_ptr.vmem [resolvable:$true] %s227_s12 }
  0x1b   : > { %s4331_s10 = scalar_select %p3127_p4, 1, 0 }
  0x1c   : > { %p3133_p2 = pnand %p2660_p0, %p3093_p3  ;;  %p2868_p1 = scmp.lt.s32.totalorder %s212_s9, %s212_s9 }
  0x1d   : > { %p2869_p12 = scmp.lt.s32.totalorder %s2860_s14, %s2860_s14 }
  0x1e   : > { %p2851_p6 = pneg %p3133_p2 }
  0x1f   : > { %p2870_p9 = por %p2869_p12, %p2868_p1 }
  0x20   : > { %p2863_p5 = pnand %p2861_p10, %p2851_p6 }
  0x22   : > { %p2864_p11 = pneg %p2863_p5 }
  0x24   : > { %p2871_p8 = pnand %p2870_p9, %p2864_p11 }
  0x26   : > { %2874 = shalt.err (!%p2871_p8)
}
  0x27   : > { %s4333_s1 = sld [smem:[#allocation44_spill]]  ;;  %s2886_s17 = scalar_lea.vmem %s228_s12, 4096 }
  0x28   : > { %p2887_p0 = scmp.ne.s32.totalorder %s228_s12, %s2886_s17  ;;  %p2894_p10 = scmp.lt.s32.totalorder %s228_s12, %s228_s12 }
  0x29   : > { %p2895_p5 = scmp.lt.s32.totalorder %s2886_s17, %s2886_s17 }
  0x2a   : > { %p2889_p3 = pnand %p2887_p0, %p2851_p6 }
  0x2b   : > { %p2896_p13 = por %p2895_p5, %p2894_p10 }
  0x2c   : > { %p2890_p7 = pneg %p2889_p3 }
  0x2d   : > { %2663 = dma.hbm_to_vmem [thread:$0]  (!%p3133_p2), %s4333_s1, 32, %s212_s9, [#allocation7]  }
  0x2e   : > { %p2897_p4 = pnand %p2896_p13, %p2890_p7 }
  0x30   : > { %2900 = shalt.err (!%p2897_p4)
}
  0x31   : > { %s3017_s24 = smov 128   ;;  %s3018_s25 = smov 8  }
  0x32   : > { %2666 = dma.hbm_to_vmem [thread:$0]  (!%p3133_p2), %s4269_s3, 4096, %s228_s12, [#allocation7], %s3017_s24, %s3017_s24, %s3018_s25  }
  0x33   : > { %s249_s9 = sand.u32 1, %s3001_s20   ;;  %s41_s11 = sadd.s32 1, %s3009_s22 }
  0x34   : > { %s2441_s14 = sshll.u32 %s249_s9, 9  ;;  %p43_p3 = scmp.ge.s32.totalorder %s41_s11, 2 }
  0x35   : > { %s2550_s15 = sshll.u32 %s3009_s22, 13  ;;  %s253_s16 = scalar_lea.vmem [#allocation3], %s2441_s14 }
  0x36   : > { %s262_s17 = sshll.u32 %s253_s16, 4  ;;  %s4433_s11 = smov (%p43_p3, %s41_s11), 0  ;;  %s263_s17 = int_to_ptr.vmem [resolvable:$true] %s262_s17 }
  0x37   : > { %s261_s23 = scalar_lea.hbm %s4266_s0, %s2550_s15  ;;  %s45_s13 = ssub.s32 %s3009_s22, %s4433_s11 }
  0x38   : > { %p3165_p7 = scmp.eq.s32.totalorder %s45_s13, 0  ;;  %s250_s12 = scalar_lea.sflag [#allocation4], %s249_s9 }
  0x39   : > { %p4335_p8 = scmp.ne.s32.totalorder %s4331_s10, 0  ;;  %s2914_s24 = scalar_lea.vmem %s263_s17, 8192 }
  0x3a   : > { %p2915_p12 = scmp.ne.s32.totalorder %s263_s17, %s2914_s24  ;;  %s3019_s25 = smov [#allocation3]  }
  0x3b   : > { %p2903_p9 = pneg %p4335_p8  ;;  %s2919_s28 = sshll.u32 %s3019_s25, 4  ;;  %s2920_s28 = int_to_ptr.vmem [resolvable:$false] %s2919_s28 }
  0x3c   : > { %s2921_s8 = scalar_lea.vmem %s2920_s28, 16384  ;;  %p2922_p2 = scmp.lt.s32.totalorder %s263_s17, %s2920_s28 }
  0x3d   : > { %p2917_p13 = pnand %p2915_p12, %p2903_p9  ;;  %p2923_p6 = scmp.lt.s32.totalorder %s2921_s8, %s2914_s24 }
  0x3f   : > { %p2918_p4 = pneg %p2917_p13  ;;  %p2924_p11 = por %p2923_p6, %p2922_p2 }
  0x41   : > { %p2925_p1 = pnand %p2924_p11, %p2918_p4 }
  0x43   : > { %2928 = shalt.err (!%p2925_p1)
}
  0x44   : > { %s3020_s1 = smov 256   ;;  %s3021_s26 = smov 16  }
  0x45   : > { %2670 = dma.hbm_to_vmem [thread:$0]  (!%p4335_p8), %s261_s23, 8192, %s263_s17, %s250_s12, %s3020_s1, %s3020_s1, %s3021_s26  }
  0x46   : > { %s4336_s9 = sadd.s32 1, %s3001_s20  ;;  %p4337_p0 = scmp.ne.s32.totalorder %s4330_s7, 0 }
  0x47   : > { %s3178_s14 = scalar_select %p3165_p7, %s3001_s20, %s4336_s9  }
  0x48   : > { %274 = sbr.rel (%p4337_p0) target bundleno = 890 (0x37a), region = 40 }
  0x4d   : > { %s3183_s15 = sand.u32 1, %s2997_s19   ;;  %p4338_p10 = scmp.ne.s32.totalorder %s4326_s29, 0 }
  0x4e   : > { %s2445_s16 = sshll.u32 %s3183_s15, 9  ;;  %s277_s13 = scalar_lea.sflag [#allocation4], %s3183_s15 }
  0x4f   : > { %s3189_s24 = scalar_lea.vmem [#allocation3], %s2445_s16 }
  0x50   : > { %2980 = dma.done.wait (%p4338_p10), %s277_s13, 8192  }
  0x51   : > { %2982 = vsyncadd (%p4338_p10), %s277_s13, 4294959104  ;;  %p4339_p5 = scmp.ne.s32.totalorder %s4324_s27, 0 }
  0x53   : > { %2984 = dma.done.wait (%p4339_p5), [#allocation7], 4128  }
  0x54   : > { %2986 = vsyncadd (%p4339_p5), [#allocation7], 4294963168  ;;  %v333_v0 = vld [vmem:[%s3189_s24 + $0x8] sm:$0xff]  ;;  %v332_v1 = vld [vmem:[%s3189_s24] sm:$0xff]  ;;  %s4084_s7 = scalar_lea.vmem [#allocation9], %s2445_s16  ;;  %s2583_s10 = sshll.u32 %s3005_s21, 13 }
  0x55   : > { %428 = vxpose.xlu1.b32.start [1/16] %v333_v0, 128  ;;  %396 = vxpose.xlu0.b32.start [1/16] %v332_v1, 128  ;;  %v335_v2 = vld [vmem:[%s3189_s24 + $0x18] sm:$0xff]  ;;  %v334_v3 = vld [vmem:[%s3189_s24 + $0x10] sm:$0xff]  ;;  %v337_v4 = vld [vmem:[%s3189_s24 + $0x28] sm:$0xff]  ;;  %s2309_s17 = sshll.u32 %s4084_s7, 4  ;;  %s4214_s21 = scalar_lea.hbm %s4271_s5, %s2583_s10  ;;  %s4216_s17 = int_to_ptr.vmem [resolvable:$true] %s2309_s17 }
  0x56   : > { %v336_v5 = vld [vmem:[%s3189_s24 + $0x20] sm:$0xff]  ;;  %v339_v6 = vld [vmem:[%s3189_s24 + $0x38] sm:$0xff]  ;;  %v338_v7 = vld [vmem:[%s3189_s24 + $0x30] sm:$0xff]  ;;  %s2291_s28 = scalar_lea.sflag [#allocation5], %s3183_s15  ;;  %s2929_s8 = scalar_lea.vmem %s4216_s17, 8192 }
  0x57   : > { %v341_v8 = vld [vmem:[%s3189_s24 + $0x48] sm:$0xff]  ;;  %v340_v9 = vld [vmem:[%s3189_s24 + $0x40] sm:$0xff]  ;;  %v343_v10 = vld [vmem:[%s3189_s24 + $0x58] sm:$0xff]  ;;  %p2930_p3 = scmp.ne.s32.totalorder %s4216_s17, %s2929_s8  ;;  %p4422_p7 = scmp.ne.s32.totalorder %s4327_s30, 0 }
  0x58   : > { %v342_v11 = vld [vmem:[%s3189_s24 + $0x50] sm:$0xff]  ;;  %v345_v12 = vld [vmem:[%s3189_s24 + $0x68] sm:$0xff]  ;;  %v344_v13 = vld [vmem:[%s3189_s24 + $0x60] sm:$0xff]  ;;  %s3022_s1 = smov [#allocation9]  }
  0x59   : > { %429 = vxpose.xlu1.b32.cont [2/16] %v335_v2, 128  ;;  %397 = vxpose.xlu0.b32.cont [2/16] %v334_v3, 128  ;;  %v347_v14 = vld [vmem:[%s3189_s24 + $0x78] sm:$0xff]  ;;  %v346_v15 = vld [vmem:[%s3189_s24 + $0x70] sm:$0xff]  ;;  %v349_v16 = vld [vmem:[%s3189_s24 + $0x88] sm:$0xff]  ;;  %p2931_p8 = pnand %p2930_p3, %p4422_p7  ;;  %s2933_s26 = sshll.u32 %s3022_s1, 4  ;;  %s2934_s26 = int_to_ptr.vmem [resolvable:$false] %s2933_s26 }
  0x5a   : > { %v348_v17 = vld [vmem:[%s3189_s24 + $0x80] sm:$0xff]  ;;  %v351_v18 = vld [vmem:[%s3189_s24 + $0x98] sm:$0xff]  ;;  %v350_v19 = vld [vmem:[%s3189_s24 + $0x90] sm:$0xff]  ;;  %s2935_s9 = scalar_lea.vmem %s2934_s26, 16384  ;;  %p2936_p12 = scmp.lt.s32.totalorder %s4216_s17, %s2934_s26 }
  0x5b   : > { %v353_v20 = vld [vmem:[%s3189_s24 + $0xa8] sm:$0xff]  ;;  %v352_v21 = vld [vmem:[%s3189_s24 + $0xa0] sm:$0xff]  ;;  %v355_v22 = vld [vmem:[%s3189_s24 + $0xb8] sm:$0xff]  ;;  %p2932_p9 = pneg %p2931_p8  ;;  %p2937_p13 = scmp.lt.s32.totalorder %s2935_s9, %s2929_s8 }
  0x5c   : > { %v354_v23 = vld [vmem:[%s3189_s24 + $0xb0] sm:$0xff]  ;;  %v357_v24 = vld [vmem:[%s3189_s24 + $0xc8] sm:$0xff]  ;;  %v356_v25 = vld [vmem:[%s3189_s24 + $0xc0] sm:$0xff] }
  0x5d   : > { %430 = vxpose.xlu1.b32.cont [3/16] %v337_v4, 128  ;;  %398 = vxpose.xlu0.b32.cont [3/16] %v336_v5, 128  ;;  %v359_v26 = vld [vmem:[%s3189_s24 + $0xd8] sm:$0xff]  ;;  %v358_v27 = vld [vmem:[%s3189_s24 + $0xd0] sm:$0xff]  ;;  %v361_v28 = vld [vmem:[%s3189_s24 + $0xe8] sm:$0xff]  ;;  %p2938_p4 = por %p2937_p13, %p2936_p12 }
  0x5e   : > { %v360_v29 = vld [vmem:[%s3189_s24 + $0xe0] sm:$0xff]  ;;  %v363_v30 = vld [vmem:[%s3189_s24 + $0xf8] sm:$0xff]  ;;  %v362_v31 = vld [vmem:[%s3189_s24 + $0xf0] sm:$0xff] }
  0x5f   : > { %v365_v32 = vld [vmem:[%s3189_s24 + $0x108] sm:$0xff]  ;;  %v364_v33 = vld [vmem:[%s3189_s24 + $0x100] sm:$0xff]  ;;  %v367_v34 = vld [vmem:[%s3189_s24 + $0x118] sm:$0xff]  ;;  %p2939_p2 = pnand %p2938_p4, %p2932_p9 }
  0x60   : > { %v366_v35 = vld [vmem:[%s3189_s24 + $0x110] sm:$0xff]  ;;  %v369_v36 = vld [vmem:[%s3189_s24 + $0x128] sm:$0xff]  ;;  %v368_v37 = vld [vmem:[%s3189_s24 + $0x120] sm:$0xff] }
  0x61   : > { %431 = vxpose.xlu1.b32.cont [4/16] %v339_v6, 128  ;;  %399 = vxpose.xlu0.b32.cont [4/16] %v338_v7, 128  ;;  %v371_v38 = vld [vmem:[%s3189_s24 + $0x138] sm:$0xff]  ;;  %v370_v39 = vld [vmem:[%s3189_s24 + $0x130] sm:$0xff]  ;;  %v373_v40 = vld [vmem:[%s3189_s24 + $0x148] sm:$0xff] }
  0x62   : > { %v372_v41 = vld [vmem:[%s3189_s24 + $0x140] sm:$0xff]  ;;  %v375_v42 = vld [vmem:[%s3189_s24 + $0x158] sm:$0xff]  ;;  %v374_v43 = vld [vmem:[%s3189_s24 + $0x150] sm:$0xff] }
  0x63   : > { %v377_v44 = vld [vmem:[%s3189_s24 + $0x168] sm:$0xff]  ;;  %v376_v45 = vld [vmem:[%s3189_s24 + $0x160] sm:$0xff]  ;;  %v379_v46 = vld [vmem:[%s3189_s24 + $0x178] sm:$0xff] }
  0x64   : > { %v378_v47 = vld [vmem:[%s3189_s24 + $0x170] sm:$0xff]  ;;  %v381_v48 = vld [vmem:[%s3189_s24 + $0x188] sm:$0xff]  ;;  %v380_v49 = vld [vmem:[%s3189_s24 + $0x180] sm:$0xff] }
  0x65   : > { %432 = vxpose.xlu1.b32.cont [5/16] %v341_v8, 128  ;;  %400 = vxpose.xlu0.b32.cont [5/16] %v340_v9, 128  ;;  %v383_v50 = vld [vmem:[%s3189_s24 + $0x198] sm:$0xff]  ;;  %v382_v51 = vld [vmem:[%s3189_s24 + $0x190] sm:$0xff]  ;;  %v385_v52 = vld [vmem:[%s3189_s24 + $0x1a8] sm:$0xff] }
  0x66   : > { %v384_v53 = vld [vmem:[%s3189_s24 + $0x1a0] sm:$0xff]  ;;  %v387_v54 = vld [vmem:[%s3189_s24 + $0x1b8] sm:$0xff]  ;;  %v386_v55 = vld [vmem:[%s3189_s24 + $0x1b0] sm:$0xff] }
  0x67   : > { %v389_v56 = vld [vmem:[%s3189_s24 + $0x1c8] sm:$0xff]  ;;  %v388_v57 = vld [vmem:[%s3189_s24 + $0x1c0] sm:$0xff]  ;;  %v391_v58 = vld [vmem:[%s3189_s24 + $0x1d8] sm:$0xff] }
  0x68   : > { %v390_v59 = vld [vmem:[%s3189_s24 + $0x1d0] sm:$0xff]  ;;  %v393_v60 = vld [vmem:[%s3189_s24 + $0x1e8] sm:$0xff]  ;;  %v392_v61 = vld [vmem:[%s3189_s24 + $0x1e0] sm:$0xff] }
  0x69   : > { %433 = vxpose.xlu1.b32.cont [6/16] %v343_v10, 128  ;;  %401 = vxpose.xlu0.b32.cont [6/16] %v342_v11, 128  ;;  %v395_v62 = vld [vmem:[%s3189_s24 + $0x1f8] sm:$0xff]  ;;  %v394_v63 = vld [vmem:[%s3189_s24 + $0x1f0] sm:$0xff] }
  0x6d   : > { %434 = vxpose.xlu1.b32.cont [7/16] %v345_v12, 128  ;;  %402 = vxpose.xlu0.b32.cont [7/16] %v344_v13, 128 }
  0x71   : > { %435 = vxpose.xlu1.b32.cont [8/16] %v347_v14, 128  ;;  %403 = vxpose.xlu0.b32.cont [8/16] %v346_v15, 128 }
  0x75   : > { %436 = vxpose.xlu1.b32.cont [9/16] %v349_v16, 128  ;;  %404 = vxpose.xlu0.b32.cont [9/16] %v348_v17, 128 }
  0x79   : > { %437 = vxpose.xlu1.b32.cont [10/16] %v351_v18, 128  ;;  %405 = vxpose.xlu0.b32.cont [10/16] %v350_v19, 128 }
  0x7d   : > { %438 = vxpose.xlu1.b32.cont [11/16] %v353_v20, 128  ;;  %406 = vxpose.xlu0.b32.cont [11/16] %v352_v21, 128 }
  0x81   : > { %439 = vxpose.xlu1.b32.cont [12/16] %v355_v22, 128  ;;  %407 = vxpose.xlu0.b32.cont [12/16] %v354_v23, 128 }
  0x85   : > { %440 = vxpose.xlu1.b32.cont [13/16] %v357_v24, 128  ;;  %408 = vxpose.xlu0.b32.cont [13/16] %v356_v25, 128 }
  0x89   : > { %441 = vxpose.xlu1.b32.cont [14/16] %v359_v26, 128  ;;  %409 = vxpose.xlu0.b32.cont [14/16] %v358_v27, 128 }
  0x8d   : > { %442 = vxpose.xlu1.b32.cont [15/16] %v361_v28, 128  ;;  %410 = vxpose.xlu0.b32.cont [15/16] %v360_v29, 128 }
  0x91   : > { %443 = vxpose.xlu1.b32.end [16/16] %v363_v30, 128  ;;  %411 = vxpose.xlu0.b32.end [16/16] %v362_v31, 128 }
  0x95   : > { %492 = vxpose.xlu1.b32.start [1/16] %v365_v32, 128  ;;  %460 = vxpose.xlu0.b32.start [1/16] %v364_v33, 128 }
  0x99   : > { %493 = vxpose.xlu1.b32.cont [2/16] %v367_v34, 128  ;;  %461 = vxpose.xlu0.b32.cont [2/16] %v366_v35, 128 }
  0x9d   : > { %494 = vxpose.xlu1.b32.cont [3/16] %v369_v36, 128  ;;  %462 = vxpose.xlu0.b32.cont [3/16] %v368_v37, 128 }
  0xa1   : > { %495 = vxpose.xlu1.b32.cont [4/16] %v371_v38, 128  ;;  %463 = vxpose.xlu0.b32.cont [4/16] %v370_v39, 128 }
  0xa5   : > { %496 = vxpose.xlu1.b32.cont [5/16] %v373_v40, 128  ;;  %464 = vxpose.xlu0.b32.cont [5/16] %v372_v41, 128 }
  0xa9   : > { %497 = vxpose.xlu1.b32.cont [6/16] %v375_v42, 128  ;;  %465 = vxpose.xlu0.b32.cont [6/16] %v374_v43, 128 }
  0xad   : > { %498 = vxpose.xlu1.b32.cont [7/16] %v377_v44, 128  ;;  %466 = vxpose.xlu0.b32.cont [7/16] %v376_v45, 128 }
  0xb1   : > { %499 = vxpose.xlu1.b32.cont [8/16] %v379_v46, 128  ;;  %467 = vxpose.xlu0.b32.cont [8/16] %v378_v47, 128 }
  0xb5   : > { %500 = vxpose.xlu1.b32.cont [9/16] %v381_v48, 128  ;;  %468 = vxpose.xlu0.b32.cont [9/16] %v380_v49, 128 }
  0xb9   : > { %501 = vxpose.xlu1.b32.cont [10/16] %v383_v50, 128  ;;  %469 = vxpose.xlu0.b32.cont [10/16] %v382_v51, 128 }
  0xbd   : > { %502 = vxpose.xlu1.b32.cont [11/16] %v385_v52, 128  ;;  %470 = vxpose.xlu0.b32.cont [11/16] %v384_v53, 128 }
  0xc1   : > { %503 = vxpose.xlu1.b32.cont [12/16] %v387_v54, 128  ;;  %471 = vxpose.xlu0.b32.cont [12/16] %v386_v55, 128 }
  0xc5   : > { %504 = vxpose.xlu1.b32.cont [13/16] %v389_v56, 128  ;;  %472 = vxpose.xlu0.b32.cont [13/16] %v388_v57, 128 }
  0xc9   : > { %505 = vxpose.xlu1.b32.cont [14/16] %v391_v58, 128  ;;  %473 = vxpose.xlu0.b32.cont [14/16] %v390_v59, 128 }
  0xcd   : > { %506 = vxpose.xlu1.b32.cont [15/16] %v393_v60, 128  ;;  %474 = vxpose.xlu0.b32.cont [15/16] %v392_v61, 128 }
  0xd1   : > { %507 = vxpose.xlu1.b32.end [16/16] %v395_v62, 128  ;;  %v3263_v0 = vpop.trf.xlu1  ;;  %475 = vxpose.xlu0.b32.end [16/16] %v394_v63, 128  ;;  %v3265_v1 = vpop.trf.xlu0 }
  0xd5   : > { %v3267_v2 = vpop.trf.xlu1  ;;  %v3269_v3 = vpop.trf.xlu0 }
  0xd9   : > { %v3271_v4 = vpop.trf.xlu1  ;;  %v3273_v5 = vpop.trf.xlu0 }
  0xdd   : > { %v3275_v6 = vpop.trf.xlu1  ;;  %v3277_v7 = vpop.trf.xlu0 }
  0xe1   : > { %v3279_v8 = vpop.trf.xlu1  ;;  %v3281_v9 = vpop.trf.xlu0 }
  0xe5   : > { %v3283_v10 = vpop.trf.xlu1  ;;  %v3285_v11 = vpop.trf.xlu0 }
  0xe9   : > { %v3287_v12 = vpop.trf.xlu1  ;;  %v3289_v13 = vpop.trf.xlu0 }
  0xed   : > { %v3291_v14 = vpop.trf.xlu1  ;;  %v3293_v15 = vpop.trf.xlu0 }
  0xf1   : > { %v3295_v16 = vpop.trf.xlu1  ;;  %v3297_v17 = vpop.trf.xlu0 }
  0xf5   : > { %v3299_v18 = vpop.trf.xlu1  ;;  %v3301_v19 = vpop.trf.xlu0 }
  0xf9   : > { %v3303_v20 = vpop.trf.xlu1  ;;  %v3305_v21 = vpop.trf.xlu0 }
  0xfd   : > { %v3307_v22 = vpop.trf.xlu1  ;;  %v3309_v23 = vpop.trf.xlu0 }
 0x101   : > { %v3311_v24 = vpop.trf.xlu1  ;;  %v3313_v25 = vpop.trf.xlu0 }
 0x105   : > { %v3315_v26 = vpop.trf.xlu1  ;;  %v3317_v27 = vpop.trf.xlu0 }
 0x109   : > { %v3319_v28 = vpop.trf.xlu1  ;;  %v3321_v29 = vpop.trf.xlu0 }
 0x10d   : > { %v3323_v30 = vpop.trf.xlu1  ;;  %v3325_v31 = vpop.trf.xlu0 }
 0x10e   : > { %4340 = vst [vmem:[#allocation15_spill] sm:$0xff] %v3323_v30  ;;  %4341 = vst [vmem:[#allocation16_spill] sm:$0xff] %v3325_v31 }
 0x111   : > { %v3327_v32 = vpop.trf.xlu1  ;;  %v3329_v33 = vpop.trf.xlu0 }
 0x112   : > { %v524_v34 = vadd.f32 %v3329_v33, %v3265_v1  ;;  %v572_v40 = vadd.f32 %v3327_v32, %v3263_v0 }
 0x114   : > { %525 = vadd.xlane.f32.xlu0 %v524_v34 }
 0x115   : > { %v3333_v35 = vpop.trf.xlu1  ;;  %v3335_v36 = vpop.trf.xlu0 }
 0x116   : > { %v527_v37 = vadd.f32 %v3335_v36, %v3269_v3  ;;  %v575_v44 = vadd.f32 %v3333_v35, %v3267_v2 }
 0x118   : > { %528 = vadd.xlane.f32.xlu1 %v527_v37 }
 0x119   : > { %v3339_v38 = vpop.trf.xlu1  ;;  %v3341_v39 = vpop.trf.xlu0 }
 0x11a   : > { %v530_v41 = vadd.f32 %v3341_v39, %v3273_v5  ;;  %v578_v45 = vadd.f32 %v3339_v38, %v3271_v4 }
 0x11c   : > { %573 = vadd.xlane.f32.xlu1 %v572_v40  ;;  %531 = vadd.xlane.f32.xlu0 %v530_v41 }
 0x11d   : > { %v3347_v42 = vpop.trf.xlu1  ;;  %v3349_v43 = vpop.trf.xlu0 }
 0x11e   : > { %v533_v48 = vadd.f32 %v3349_v43, %v3277_v7  ;;  %v581_v52 = vadd.f32 %v3347_v42, %v3275_v6 }
 0x120   : > { %576 = vadd.xlane.f32.xlu1 %v575_v44  ;;  %579 = vadd.xlane.f32.xlu0 %v578_v45 }
 0x121   : > { %v3355_v46 = vpop.trf.xlu1  ;;  %v3357_v47 = vpop.trf.xlu0 }
 0x122   : > { %v536_v49 = vadd.f32 %v3357_v47, %v3281_v9  ;;  %v584_v53 = vadd.f32 %v3355_v46, %v3279_v8 }
 0x124   : > { %534 = vadd.xlane.f32.xlu1 %v533_v48  ;;  %537 = vadd.xlane.f32.xlu0 %v536_v49 }
 0x125   : > { %v3363_v50 = vpop.trf.xlu1  ;;  %v3365_v51 = vpop.trf.xlu0 }
 0x126   : > { %v539_v56 = vadd.f32 %v3365_v51, %v3285_v11  ;;  %v587_v60 = vadd.f32 %v3363_v50, %v3283_v10 }
 0x128   : > { %582 = vadd.xlane.f32.xlu1 %v581_v52  ;;  %585 = vadd.xlane.f32.xlu0 %v584_v53 }
 0x129   : > { %v3371_v54 = vpop.trf.xlu1  ;;  %v3373_v55 = vpop.trf.xlu0 }
 0x12a   : > { %v542_v57 = vadd.f32 %v3373_v55, %v3289_v13  ;;  %v590_v61 = vadd.f32 %v3371_v54, %v3287_v12 }
 0x12c   : > { %540 = vadd.xlane.f32.xlu1 %v539_v56  ;;  %543 = vadd.xlane.f32.xlu0 %v542_v57 }
 0x12d   : > { %v3379_v58 = vpop.trf.xlu1  ;;  %v3381_v59 = vpop.trf.xlu0 }
 0x12e   : > { %v545_v34 = vadd.f32 %v3381_v59, %v3293_v15  ;;  %v593_v44 = vadd.f32 %v3379_v58, %v3291_v14 }
 0x130   : > { %588 = vadd.xlane.f32.xlu1 %v587_v60  ;;  %591 = vadd.xlane.f32.xlu0 %v590_v61 }
 0x131   : > { %v3387_v62 = vpop.trf.xlu1  ;;  %v3389_v63 = vpop.trf.xlu0 }
 0x132   : > { %v548_v37 = vadd.f32 %v3389_v63, %v3297_v17  ;;  %v596_v45 = vadd.f32 %v3387_v62, %v3295_v16 }
 0x134   : > { %546 = vadd.xlane.f32.xlu1 %v545_v34  ;;  %549 = vadd.xlane.f32.xlu0 %v548_v37 }
 0x135   : > { %v3395_v40 = vpop.trf.xlu1  ;;  %v3397_v41 = vpop.trf.xlu0 }
 0x136   : > { %v551_v52 = vadd.f32 %v3397_v41, %v3301_v19  ;;  %v599_v60 = vadd.f32 %v3395_v40, %v3299_v18 }
 0x138   : > { %594 = vadd.xlane.f32.xlu1 %v593_v44  ;;  %597 = vadd.xlane.f32.xlu0 %v596_v45 }
 0x139   : > { %v3403_v48 = vpop.trf.xlu1  ;;  %v3405_v49 = vpop.trf.xlu0 }
 0x13a   : > { %4342 = vst [vmem:[#allocation17_spill] sm:$0xff] %v3403_v48  ;;  %v554_v53 = vadd.f32 %v3405_v49, %v3305_v21  ;;  %v602_v61 = vadd.f32 %v3403_v48, %v3303_v20 }
 0x13c   : > { %552 = vadd.xlane.f32.xlu1 %v551_v52  ;;  %555 = vadd.xlane.f32.xlu0 %v554_v53 }
 0x13d   : > { %v3411_v56 = vpop.trf.xlu1  ;;  %v3413_v57 = vpop.trf.xlu0 }
 0x13e   : > { %4343 = vst [vmem:[#allocation18_spill] sm:$0xff] %v3411_v56  ;;  %4344 = vst [vmem:[#allocation19_spill] sm:$0xff] %v3413_v57  ;;  %v557_v44 = vadd.f32 %v3413_v57, %v3309_v23 }
 0x140   : > { %600 = vadd.xlane.f32.xlu1 %v599_v60  ;;  %603 = vadd.xlane.f32.xlu0 %v602_v61  ;;  %v605_v60 = vadd.f32 %v3411_v56, %v3307_v22 }
 0x141   : > { %v3419_v34 = vpop.trf.xlu1  ;;  %v3421_v37 = vpop.trf.xlu0 }
 0x142   : > { %4345 = vst [vmem:[#allocation20_spill] sm:$0xff] %v3419_v34  ;;  %v560_v45 = vadd.f32 %v3421_v37, %v3313_v25  ;;  %v608_v61 = vadd.f32 %v3419_v34, %v3311_v24 }
 0x144   : > { %558 = vadd.xlane.f32.xlu1 %v557_v44  ;;  %561 = vadd.xlane.f32.xlu0 %v560_v45 }
 0x145   : > { %v3427_v52 = vpop.trf.xlu1  ;;  %v3429_v53 = vpop.trf.xlu0 }
 0x146   : > { %4346 = vst [vmem:[#allocation21_spill] sm:$0xff] %v3427_v52  ;;  %4347 = vst [vmem:[#allocation22_spill] sm:$0xff] %v3429_v53  ;;  %v563_v57 = vadd.f32 %v3429_v53, %v3317_v27  ;;  %v611_v56 = vadd.f32 %v3427_v52, %v3315_v26  ;;  %v2740_v52 = vld [vmem:[#allocation8 + $0x64] ss:$8 sps:$4 sm:$0xff]  }
 0x148   : > { %606 = vadd.xlane.f32.xlu1 %v605_v60  ;;  %609 = vadd.xlane.f32.xlu0 %v608_v61 }
 0x149   : > { %v3435_v48 = vpop.trf.xlu0  ;;  %v3441_v45 = vpop.trf.xlu1 }
 0x14a   : > { %4348 = vst [vmem:[#allocation23_spill] sm:$0xff] %v3435_v48  ;;  %v566_v44 = vadd.f32 %v3435_v48, %v3321_v29  ;;  %4349 = vst [vmem:[#allocation24_spill] sm:$0xff] %v3441_v45  ;;  %v614_v34 = vadd.f32 %v3441_v45, %v3319_v28  ;;  %v2739_v48 = vld [vmem:[#allocation8 + $0x70] ss:$8 sps:$4 sm:$0xff]   ;;  %v2742_v45 = vld [vmem:[#allocation8 + $0x60] ss:$8 sps:$4 sm:$0xff]  }
 0x14c   : > { %564 = vadd.xlane.f32.xlu1 %v563_v57  ;;  %567 = vadd.xlane.f32.xlu0 %v566_v44  ;;  %v2737_v44 = vld [vmem:[#allocation8 + $0x74] ss:$8 sps:$4 sm:$0xff]  }
 0x14d   : > { %v3447_v60 = vpop.trf.xlu0  ;;  %v3451_v53 = vpop.trf.xlu1  ;;  %1841 = vmatprep.subr.bf16.mxu0 %v2737_v44  ;;  %2616 = vmatprep.subr.bf16.mxu1 %v2737_v44  ;;  %v2751_v44 = vld [vmem:[#allocation8 + $0x30] ss:$8 sps:$4 sm:$0xff]  }
 0x14e   : > { %4350 = vst [vmem:[#allocation25_spill] sm:$0xff] %v3447_v60  ;;  %v569_v61 = vadd.f32 %v3447_v60, %v3325_v31  ;;  %4351 = vst [vmem:[#allocation26_spill] sm:$0xff] %v3451_v53  ;;  %v617_v57 = vadd.f32 %v3451_v53, %v3323_v30  ;;  %1842 = vmatpush1.bf16.msra.mxu0 %v2739_v48  ;;  %2632 = vmatpush1.bf16.msra.mxu1 %v2739_v48  ;;  %v2748_v53 = vld [vmem:[#allocation8 + $0x40] ss:$8 sps:$4 sm:$0xff]   ;;  %v2752_v48 = vld [vmem:[#allocation8 + $0x24] ss:$8 sps:$4 sm:$0xff]  }
 0x14f   : > { %1843 = vmatprep.subr.bf16.mxu0 %v2740_v52  ;;  %2617 = vmatprep.subr.bf16.mxu1 %v2740_v52  ;;  %v2754_v52 = vld [vmem:[#allocation8 + $0x20] ss:$8 sps:$4 sm:$0xff]  }
 0x150   : > { %612 = vadd.xlane.f32.xlu1 %v611_v56  ;;  %615 = vadd.xlane.f32.xlu0 %v614_v34  ;;  %v2743_v56 = vld [vmem:[#allocation8 + $0x54] ss:$8 sps:$4 sm:$0xff]   ;;  %v2745_v34 = vld [vmem:[#allocation8 + $0x50] ss:$8 sps:$4 sm:$0xff]  }
 0x152   : > { %1844 = vmatpush1.bf16.msra.mxu0 %v2742_v45  ;;  %2633 = vmatpush1.bf16.msra.mxu1 %v2742_v45  ;;  %v2755_v45 = vld [vmem:[#allocation8 + $0x14] ss:$8 sps:$4 sm:$0xff]  }
 0x153   : > { %1845 = vmatprep.subr.bf16.mxu0 %v2743_v56  ;;  %2618 = vmatprep.subr.bf16.mxu1 %v2743_v56  ;;  %v2757_v56 = vld [vmem:[#allocation8 + $0x10] ss:$8 sps:$4 sm:$0xff]  }
 0x154   : > { %570 = vadd.xlane.f32.xlu1 %v569_v61  ;;  %v2746_v61 = vld [vmem:[#allocation8 + $0x44] ss:$8 sps:$4 sm:$0xff]  }
 0x156   : > { %1846 = vmatpush1.bf16.msra.mxu0 %v2745_v34  ;;  %2634 = vmatpush1.bf16.msra.mxu1 %v2745_v34  ;;  %v2758_v34 = vld [vmem:[#allocation8 + $0x4] ss:$8 sps:$4 sm:$0xff]  }
 0x157   : > { %1847 = vmatprep.subr.bf16.mxu0 %v2746_v61  ;;  %2619 = vmatprep.subr.bf16.mxu1 %v2746_v61  ;;  %v2760_v61 = vld [vmem:[#allocation8] ss:$8 sps:$4 sm:$0xff]  }
 0x158   : > { %618 = vadd.xlane.f32.xlu1 %v617_v57  ;;  %v2749_v57 = vld [vmem:[#allocation8 + $0x34] ss:$8 sps:$4 sm:$0xff]  }
 0x15a   : > { %1848 = vmatpush1.bf16.msra.mxu0 %v2748_v53  ;;  %2635 = vmatpush1.bf16.msra.mxu1 %v2748_v53 }
 0x15b   : > { %1849 = vmatprep.subr.bf16.mxu0 %v2749_v57  ;;  %2620 = vmatprep.subr.bf16.mxu1 %v2749_v57 }
 0x15e   : > { %1850 = vmatpush1.bf16.msra.mxu0 %v2751_v44  ;;  %2636 = vmatpush1.bf16.msra.mxu1 %v2751_v44 }
 0x15f   : > { %1851 = vmatprep.subr.bf16.mxu0 %v2752_v48  ;;  %2621 = vmatprep.subr.bf16.mxu1 %v2752_v48 }
 0x162   : > { %1852 = vmatpush1.bf16.msra.mxu0 %v2754_v52  ;;  %2637 = vmatpush1.bf16.msra.mxu1 %v2754_v52 }
 0x163   : > { %1853 = vmatprep.subr.bf16.mxu0 %v2755_v45  ;;  %2622 = vmatprep.subr.bf16.mxu1 %v2755_v45 }
 0x166   : > { %1854 = vmatpush1.bf16.msra.mxu0 %v2757_v56  ;;  %2638 = vmatpush1.bf16.msra.mxu1 %v2757_v56 }
 0x167   : > { %1855 = vmatprep.subr.bf16.mxu0 %v2758_v34  ;;  %2623 = vmatprep.subr.bf16.mxu1 %v2758_v34 }
 0x16a   : > { %1856 = vmatpush1.bf16.msra.mxu0 %v2760_v61  ;;  %2639 = vmatpush1.bf16.msra.mxu1 %v2760_v61 }
 0x19d   : > { %v526_v53 = vpop.xlane.xlu0 %525 }
 0x19e   : > { %v621_v57 = vmul.f32 0.00390625, %v526_v53 }
 0x1a0   : > { %v3456_v44 = vsub.f32 %v3265_v1, %v621_v57  ;;  %v3459_v48 = vsub.f32 %v3329_v33, %v621_v57 }
 0x1a1   : > { %v529_v30 = vpop.xlane.xlu1 %528 }
 0x1a2   : > { %4352 = vst [vmem:[#allocation27_spill] sm:$0xff] %v3456_v44  ;;  %4353 = vst [vmem:[#allocation28_spill] sm:$0xff] %v3459_v48  ;;  %v622_v52 = vmul.f32 0.00390625, %v529_v30  ;;  %v717_v45 = vmul.f32 %v3456_v44, %v3456_v44  ;;  %v718_v56 = vmul.f32 %v3459_v48, %v3459_v48 }
 0x1a4   : > { %v3466_v34 = vsub.f32 %v3269_v3, %v622_v52  ;;  %v3469_v61 = vsub.f32 %v3335_v36, %v622_v52  ;;  %v781_v53 = vadd.f32 %v718_v56, %v717_v45 }
 0x1a5   : > { %v574_v1 = vpop.xlane.xlu1 %573  ;;  %v532_v60 = vpop.xlane.xlu0 %531 }
 0x1a6   : > { %4354 = vst [vmem:[#allocation29_spill] sm:$0xff] %v3466_v34  ;;  %4355 = vst [vmem:[#allocation30_spill] sm:$0xff] %v3469_v61  ;;  %v719_v33 = vmul.f32 %v3466_v34, %v3466_v34  ;;  %v720_v30 = vmul.f32 %v3469_v61, %v3469_v61  ;;  %v637_v57 = vmul.f32 0.00390625, %v574_v1  ;;  %v623_v44 = vmul.f32 0.00390625, %v532_v60  ;;  %782 = vadd.xlane.f32.xlu0 %v781_v53 }
 0x1a8   : > { %v3476_v48 = vsub.f32 %v3263_v0, %v637_v57  ;;  %v3479_v3 = vsub.f32 %v3327_v32, %v637_v57  ;;  %v3482_v36 = vsub.f32 %v3273_v5, %v623_v44  ;;  %v3485_v52 = vsub.f32 %v3341_v39, %v623_v44 }
 0x1a9   : > { %v577_v45 = vpop.xlane.xlu1 %576  ;;  %v580_v56 = vpop.xlane.xlu0 %579  ;;  %v784_v34 = vadd.f32 %v720_v30, %v719_v33 }
 0x1aa   : > { %4356 = vst [vmem:[#allocation31_spill] sm:$0xff] %v3482_v36  ;;  %4357 = vst [vmem:[#allocation32_spill] sm:$0xff] %v3485_v52  ;;  %v638_v31 = vmul.f32 0.00390625, %v577_v45  ;;  %v639_v61 = vmul.f32 0.00390625, %v580_v56  ;;  %v721_v60 = vmul.f32 %v3482_v36, %v3482_v36  ;;  %v722_v0 = vmul.f32 %v3485_v52, %v3485_v52 }
 0x1ab   : > { %785 = vadd.xlane.f32.xlu1 %v784_v34  ;;  %v749_v32 = vmul.f32 %v3476_v48, %v3476_v48  ;;  %v750_v5 = vmul.f32 %v3479_v3, %v3479_v3 }
 0x1ac   : > { %v3496_v39 = vsub.f32 %v3267_v2, %v638_v31  ;;  %v3499_v44 = vsub.f32 %v3333_v35, %v638_v31  ;;  %v3502_v53 = vsub.f32 %v3271_v4, %v639_v61  ;;  %v3505_v1 = vsub.f32 %v3339_v38, %v639_v61 }
 0x1ad   : > { %v535_v33 = vpop.xlane.xlu1 %534  ;;  %v538_v34 = vpop.xlane.xlu0 %537  ;;  %v829_v30 = vadd.f32 %v750_v5, %v749_v32  ;;  %v787_v61 = vadd.f32 %v722_v0, %v721_v60 }
 0x1ae   : > { %4358 = vst [vmem:[#allocation33_spill] sm:$0xff] %v3502_v53  ;;  %4359 = vst [vmem:[#allocation34_spill] sm:$0xff] %v3505_v1  ;;  %v751_v57 = vmul.f32 %v3496_v39, %v3496_v39  ;;  %v752_v45 = vmul.f32 %v3499_v44, %v3499_v44  ;;  %v753_v2 = vmul.f32 %v3502_v53, %v3502_v53  ;;  %v624_v4 = vmul.f32 0.00390625, %v535_v33 }
 0x1af   : > { %v754_v31 = vmul.f32 %v3505_v1, %v3505_v1  ;;  %v625_v35 = vmul.f32 0.00390625, %v538_v34  ;;  %830 = vadd.xlane.f32.xlu0 %v829_v30  ;;  %v2761_v1 = vld [vmem:[#allocation8 + $0xf4] ss:$8 sps:$4 sm:$0xff]   ;;  %v2763_v30 = vld [vmem:[#allocation8 + $0xf0] ss:$8 sps:$4 sm:$0xff]  }
 0x1b0   : > { %v832_v38 = vadd.f32 %v752_v45, %v751_v57  ;;  %v3516_v56 = vsub.f32 %v3277_v7, %v624_v4  ;;  %v3519_v32 = vsub.f32 %v3349_v43, %v624_v4  ;;  %1857 = vmatprep.subr.bf16.mxu0 %v2761_v1  ;;  %v2764_v4 = vld [vmem:[#allocation8 + $0xe4] ss:$8 sps:$4 sm:$0xff]   ;;  %2624 = vmatprep.subr.bf16.mxu1 %v2761_v1 }
 0x1b1   : > { %v3522_v5 = vsub.f32 %v3281_v9, %v625_v35  ;;  %v3525_v36 = vsub.f32 %v3357_v47, %v625_v35  ;;  %v583_v53 = vpop.xlane.xlu1 %582  ;;  %v586_v52 = vpop.xlane.xlu0 %585  ;;  %v835_v60 = vadd.f32 %v754_v31, %v753_v2  ;;  %1858 = vmatpush2.bf16.msra.mxu0 %v2763_v30  ;;  %v2766_v35 = vld [vmem:[#allocation8 + $0xe0] ss:$8 sps:$4 sm:$0xff]   ;;  %2640 = vmatpush2.bf16.msra.mxu1 %v2763_v30 }
 0x1b2   : > { %v640_v33 = vmul.f32 0.00390625, %v583_v53  ;;  %v641_v34 = vmul.f32 0.00390625, %v586_v52  ;;  %833 = vadd.xlane.f32.xlu1 %v832_v38  ;;  %v723_v7 = vmul.f32 %v3516_v56, %v3516_v56  ;;  %v724_v43 = vmul.f32 %v3519_v32, %v3519_v32  ;;  %1859 = vmatprep.subr.bf16.mxu0 %v2764_v4 }
 0x1b3   : > { %788 = vadd.xlane.f32.xlu0 %v787_v61  ;;  %v725_v9 = vmul.f32 %v3522_v5, %v3522_v5  ;;  %v726_v47 = vmul.f32 %v3525_v36, %v3525_v36  ;;  %2625 = vmatprep.subr.bf16.mxu1 %v2764_v4 }
 0x1b4   : > { %v3536_v0 = vsub.f32 %v3275_v6, %v640_v33  ;;  %v3539_v52 = vsub.f32 %v3347_v42, %v640_v33  ;;  %v3542_v53 = vsub.f32 %v3279_v8, %v641_v34  ;;  %v3545_v57 = vsub.f32 %v3355_v46, %v641_v34 }
 0x1b5   : > { %v541_v45 = vpop.xlane.xlu1 %540  ;;  %v544_v2 = vpop.xlane.xlu0 %543  ;;  %v790_v31 = vadd.f32 %v724_v43, %v723_v7  ;;  %v793_v61 = vadd.f32 %v726_v47, %v725_v9  ;;  %1860 = vmatpush2.bf16.msra.mxu0 %v2766_v35  ;;  %2641 = vmatpush2.bf16.msra.mxu1 %v2766_v35 }
 0x1b6   : > { %v755_v6 = vmul.f32 %v3536_v0, %v3536_v0  ;;  %v756_v42 = vmul.f32 %v3539_v52, %v3539_v52  ;;  %v626_v38 = vmul.f32 0.00390625, %v541_v45  ;;  %v627_v8 = vmul.f32 0.00390625, %v544_v2 }
 0x1b7   : > { %791 = vadd.xlane.f32.xlu1 %v790_v31  ;;  %836 = vadd.xlane.f32.xlu0 %v835_v60  ;;  %v757_v33 = vmul.f32 %v3542_v53, %v3542_v53  ;;  %v758_v1 = vmul.f32 %v3545_v57, %v3545_v57  ;;  %v2767_v60 = vld [vmem:[#allocation8 + $0xd4] ss:$8 sps:$4 sm:$0xff]   ;;  %v2769_v31 = vld [vmem:[#allocation8 + $0xd0] ss:$8 sps:$4 sm:$0xff]  }
 0x1b8   : > { %v838_v46 = vadd.f32 %v756_v42, %v755_v6  ;;  %v3556_v34 = vsub.f32 %v3285_v11, %v626_v38  ;;  %v3559_v7 = vsub.f32 %v3365_v51, %v626_v38  ;;  %v3562_v9 = vsub.f32 %v3289_v13, %v627_v8  ;;  %1861 = vmatprep.subr.bf16.mxu0 %v2767_v60 }
 0x1b9   : > { %v589_v30 = vpop.xlane.xlu1 %588  ;;  %v592_v43 = vpop.xlane.xlu0 %591  ;;  %v3565_v47 = vsub.f32 %v3373_v55, %v627_v8  ;;  %v841_v8 = vadd.f32 %v758_v1, %v757_v33  ;;  %2626 = vmatprep.subr.bf16.mxu1 %v2767_v60  ;;  %1862 = vmatpush2.bf16.msra.mxu0 %v2769_v31 }
 0x1ba   : > { %v642_v45 = vmul.f32 0.00390625, %v589_v30  ;;  %v643_v2 = vmul.f32 0.00390625, %v592_v43  ;;  %v727_v11 = vmul.f32 %v3556_v34, %v3556_v34  ;;  %v728_v51 = vmul.f32 %v3559_v7, %v3559_v7  ;;  %v2770_v30 = vld [vmem:[#allocation8 + $0xc4] ss:$8 sps:$4 sm:$0xff]   ;;  %2642 = vmatpush2.bf16.msra.mxu1 %v2769_v31  ;;  %v2775_v31 = vld [vmem:[#allocation8 + $0xb0] ss:$8 sps:$4 sm:$0xff]  }
 0x1bb   : > { %839 = vadd.xlane.f32.xlu1 %v838_v46  ;;  %794 = vadd.xlane.f32.xlu0 %v793_v61  ;;  %v2772_v46 = vld [vmem:[#allocation8 + $0xc0] ss:$8 sps:$4 sm:$0xff]  }
 0x1bc   : > { %v3572_v4 = vsub.f32 %v3283_v10, %v642_v45  ;;  %v3575_v13 = vsub.f32 %v3363_v50, %v642_v45  ;;  %v3578_v55 = vsub.f32 %v3287_v12, %v643_v2  ;;  %v3581_v6 = vsub.f32 %v3371_v54, %v643_v2  ;;  %1863 = vmatprep.subr.bf16.mxu0 %v2770_v30 }
 0x1bd   : > { %v547_v42 = vpop.xlane.xlu1 %546  ;;  %v550_v35 = vpop.xlane.xlu0 %549  ;;  %v796_v38 = vadd.f32 %v728_v51, %v727_v11  ;;  %v729_v10 = vmul.f32 %v3562_v9, %v3562_v9  ;;  %v730_v50 = vmul.f32 %v3565_v47, %v3565_v47  ;;  %2627 = vmatprep.subr.bf16.mxu1 %v2770_v30  ;;  %1864 = vmatpush2.bf16.msra.mxu0 %v2772_v46 }
 0x1be   : > { %4360 = vst [vmem:[#allocation35_spill] sm:$0xff] %v3578_v55  ;;  %v759_v12 = vmul.f32 %v3572_v4, %v3572_v4  ;;  %v760_v54 = vmul.f32 %v3575_v13, %v3575_v13  ;;  %v628_v61 = vmul.f32 0.00390625, %v547_v42  ;;  %v629_v43 = vmul.f32 0.00390625, %v550_v35  ;;  %2643 = vmatpush2.bf16.msra.mxu1 %v2772_v46 }
 0x1bf   : > { %797 = vadd.xlane.f32.xlu1 %v796_v38  ;;  %v761_v33 = vmul.f32 %v3578_v55, %v3578_v55  ;;  %v762_v1 = vmul.f32 %v3581_v6, %v3581_v6  ;;  %842 = vadd.xlane.f32.xlu0 %v841_v8  ;;  %v2773_v38 = vld [vmem:[#allocation8 + $0xb4] ss:$8 sps:$4 sm:$0xff]  }
 0x1c0   : > { %v844_v60 = vadd.f32 %v760_v54, %v759_v12  ;;  %v3596_v45 = vsub.f32 %v3293_v15, %v628_v61  ;;  %v3599_v2 = vsub.f32 %v3381_v59, %v628_v61  ;;  %v3602_v11 = vsub.f32 %v3297_v17, %v629_v43  ;;  %1865 = vmatprep.subr.bf16.mxu0 %v2773_v38 }
 0x1c1   : > { %v3605_v51 = vsub.f32 %v3389_v63, %v629_v43  ;;  %v595_v42 = vpop.xlane.xlu1 %594  ;;  %v598_v35 = vpop.xlane.xlu0 %597  ;;  %v799_v12 = vadd.f32 %v730_v50, %v729_v10  ;;  %v847_v43 = vadd.f32 %v762_v1, %v761_v33  ;;  %1866 = vmatpush2.bf16.msra.mxu0 %v2775_v31  ;;  %2628 = vmatprep.subr.bf16.mxu1 %v2773_v38 }
 0x1c2   : > { %v644_v55 = vmul.f32 0.00390625, %v595_v42  ;;  %v645_v8 = vmul.f32 0.00390625, %v598_v35  ;;  %v731_v15 = vmul.f32 %v3596_v45, %v3596_v45  ;;  %v732_v59 = vmul.f32 %v3599_v2, %v3599_v2  ;;  %v2776_v42 = vld [vmem:[#allocation8 + $0xa4] ss:$8 sps:$4 sm:$0xff]   ;;  %2644 = vmatpush2.bf16.msra.mxu1 %v2775_v31 }
 0x1c3   : > { %845 = vadd.xlane.f32.xlu1 %v844_v60  ;;  %v733_v17 = vmul.f32 %v3602_v11, %v3602_v11  ;;  %v734_v63 = vmul.f32 %v3605_v51, %v3605_v51  ;;  %800 = vadd.xlane.f32.xlu0 %v799_v12 }
 0x1c4   : > { %v3616_v30 = vsub.f32 %v3291_v14, %v644_v55  ;;  %v3619_v10 = vsub.f32 %v3379_v58, %v644_v55  ;;  %v802_v61 = vadd.f32 %v732_v59, %v731_v15  ;;  %v3626_v14 = vsub.f32 %v3295_v16, %v645_v8  ;;  %v2778_v55 = vld [vmem:[#allocation8 + $0xa0] ss:$8 sps:$4 sm:$0xff]   ;;  %1867 = vmatprep.subr.bf16.mxu0 %v2776_v42 }
 0x1c5   : > { %v553_v50 = vpop.xlane.xlu1 %552  ;;  %v556_v54 = vpop.xlane.xlu0 %555  ;;  %v3629_v58 = vsub.f32 %v3387_v62, %v645_v8  ;;  %v805_v33 = vadd.f32 %v734_v63, %v733_v17  ;;  %1868 = vmatpush2.bf16.msra.mxu0 %v2778_v55  ;;  %2629 = vmatprep.subr.bf16.mxu1 %v2776_v42 }
 0x1c6   : > { %v763_v60 = vmul.f32 %v3616_v30, %v3616_v30  ;;  %v764_v35 = vmul.f32 %v3619_v10, %v3619_v10  ;;  %v630_v12 = vmul.f32 0.00390625, %v553_v50  ;;  %v631_v15 = vmul.f32 0.00390625, %v556_v54  ;;  %v2779_v54 = vld [vmem:[#allocation8 + $0x94] ss:$8 sps:$4 sm:$0xff]   ;;  %2645 = vmatpush2.bf16.msra.mxu1 %v2778_v55 }
 0x1c7   : > { %803 = vadd.xlane.f32.xlu1 %v802_v61  ;;  %848 = vadd.xlane.f32.xlu0 %v847_v43  ;;  %v765_v17 = vmul.f32 %v3626_v14, %v3626_v14 }
 0x1c8   : > { %v850_v46 = vadd.f32 %v764_v35, %v763_v60  ;;  %v3632_v1 = vsub.f32 %v3301_v19, %v630_v12  ;;  %v3635_v59 = vsub.f32 %v3397_v41, %v630_v12  ;;  %v3638_v16 = vsub.f32 %v3305_v21, %v631_v15  ;;  %v2781_v41 = vld [vmem:[#allocation8 + $0x90] ss:$8 sps:$4 sm:$0xff]   ;;  %1869 = vmatprep.subr.bf16.mxu0 %v2779_v54 }
 0x1c9   : > { %v3641_v62 = vsub.f32 %v3405_v49, %v631_v15  ;;  %v601_v8 = vpop.xlane.xlu1 %600  ;;  %v604_v50 = vpop.xlane.xlu0 %603  ;;  %v766_v19 = vmul.f32 %v3629_v58, %v3629_v58  ;;  %v4362_v35 = vld [vmem:[#allocation17_spill] sm:$0xff]  ;;  %1870 = vmatpush2.bf16.msra.mxu0 %v2781_v41  ;;  %2630 = vmatprep.subr.bf16.mxu1 %v2779_v54 }
 0x1ca   : > { %4361 = vst [vmem:[#allocation36_spill] sm:$0xff] %v3638_v16  ;;  %v646_v38 = vmul.f32 0.00390625, %v601_v8  ;;  %v647_v63 = vmul.f32 0.00390625, %v604_v50  ;;  %v735_v21 = vmul.f32 %v3632_v1, %v3632_v1  ;;  %v736_v49 = vmul.f32 %v3635_v59, %v3635_v59  ;;  %v2782_v50 = vld [vmem:[#allocation8 + $0x84] ss:$8 sps:$4 sm:$0xff]   ;;  %2646 = vmatpush2.bf16.msra.mxu1 %v2781_v41  ;;  %v4367_v41 = vld [vmem:[#allocation18_spill] sm:$0xff] }
 0x1cb   : > { %851 = vadd.xlane.f32.xlu1 %v850_v46  ;;  %v737_v31 = vmul.f32 %v3638_v16, %v3638_v16  ;;  %v738_v61 = vmul.f32 %v3641_v62, %v3641_v62  ;;  %806 = vadd.xlane.f32.xlu0 %v805_v33  ;;  %v2784_v33 = vld [vmem:[#allocation8 + $0x80] ss:$8 sps:$4 sm:$0xff]  }
 0x1cc   : > { %v3656_v43 = vsub.f32 %v3299_v18, %v646_v38  ;;  %v3659_v60 = vsub.f32 %v3395_v40, %v646_v38  ;;  %v3662_v42 = vsub.f32 %v3303_v20, %v647_v63  ;;  %v3665_v12 = vsub.f32 %v4362_v35, %v647_v63  ;;  %1871 = vmatprep.subr.bf16.mxu0 %v2782_v50 }
 0x1cd   : > { %v559_v15 = vpop.xlane.xlu1 %558  ;;  %v562_v46 = vpop.xlane.xlu0 %561  ;;  %v808_v8 = vadd.f32 %v736_v49, %v735_v21  ;;  %v853_v38 = vadd.f32 %v766_v19, %v765_v17  ;;  %v811_v35 = vadd.f32 %v738_v61, %v737_v31  ;;  %v4363_v17 = vld [vmem:[#allocation19_spill] sm:$0xff]  ;;  %1872 = vmatpush2.bf16.msra.mxu0 %v2784_v33  ;;  %2631 = vmatprep.subr.bf16.mxu1 %v2782_v50 }
 0x1ce   : > { %v767_v18 = vmul.f32 %v3656_v43, %v3656_v43  ;;  %v768_v40 = vmul.f32 %v3659_v60, %v3659_v60  ;;  %v632_v20 = vmul.f32 0.00390625, %v559_v15  ;;  %v633_v16 = vmul.f32 0.00390625, %v562_v46  ;;  %2647 = vmatpush2.bf16.msra.mxu1 %v2784_v33 }
 0x1cf   : > { %809 = vadd.xlane.f32.xlu1 %v808_v8  ;;  %854 = vadd.xlane.f32.xlu0 %v853_v38  ;;  %v769_v55 = vmul.f32 %v3662_v42, %v3662_v42  ;;  %v770_v21 = vmul.f32 %v3665_v12, %v3665_v12 }
 0x1d0   : > { %v856_v63 = vadd.f32 %v768_v40, %v767_v18  ;;  %v3676_v49 = vsub.f32 %v3309_v23, %v632_v20  ;;  %v3679_v19 = vsub.f32 %v4363_v17, %v632_v20  ;;  %v3682_v8 = vsub.f32 %v3313_v25, %v633_v16 }
 0x1d1   : > { %v607_v15 = vpop.xlane.xlu1 %606  ;;  %v610_v46 = vpop.xlane.xlu0 %609  ;;  %v3685_v54 = vsub.f32 %v3421_v37, %v633_v16  ;;  %v4369_v16 = vld [vmem:[#allocation20_spill] sm:$0xff] }
 0x1d2   : > { %4364 = vst [vmem:[#allocation17_spill] sm:$0xff] %v3682_v8  ;;  %v648_v31 = vmul.f32 0.00390625, %v607_v15  ;;  %v649_v61 = vmul.f32 0.00390625, %v610_v46  ;;  %v739_v23 = vmul.f32 %v3676_v49, %v3676_v49  ;;  %v740_v18 = vmul.f32 %v3679_v19, %v3679_v19 }
 0x1d3   : > { %4365 = vst [vmem:[#allocation19_spill] sm:$0xff] %v3685_v54  ;;  %857 = vadd.xlane.f32.xlu1 %v856_v63  ;;  %812 = vadd.xlane.f32.xlu0 %v811_v35  ;;  %v859_v15 = vadd.f32 %v770_v21, %v769_v55  ;;  %v741_v63 = vmul.f32 %v3682_v8, %v3682_v8 }
 0x1d4   : > { %v3692_v40 = vsub.f32 %v3307_v22, %v648_v31  ;;  %v3695_v25 = vsub.f32 %v4367_v41, %v648_v31  ;;  %v3698_v37 = vsub.f32 %v3311_v24, %v649_v61  ;;  %v3701_v38 = vsub.f32 %v4369_v16, %v649_v61  ;;  %v4375_v16 = vld [vmem:[#allocation23_spill] sm:$0xff] }
 0x1d5   : > { %v565_v50 = vpop.xlane.xlu1 %564  ;;  %v568_v20 = vpop.xlane.xlu0 %567  ;;  %v814_v17 = vadd.f32 %v740_v18, %v739_v23  ;;  %v742_v22 = vmul.f32 %v3685_v54, %v3685_v54  ;;  %v4372_v23 = vld [vmem:[#allocation22_spill] sm:$0xff] }
 0x1d6   : > { %4366 = vst [vmem:[#allocation37_spill] sm:$0xff] %v3692_v40  ;;  %4368 = vst [vmem:[#allocation18_spill] sm:$0xff] %v3698_v37  ;;  %v771_v46 = vmul.f32 %v3692_v40, %v3692_v40  ;;  %v772_v24 = vmul.f32 %v3695_v25, %v3695_v25  ;;  %v634_v31 = vmul.f32 0.00390625, %v565_v50  ;;  %v635_v61 = vmul.f32 0.00390625, %v568_v20 }
 0x1d7   : > { %4370 = vst [vmem:[#allocation20_spill] sm:$0xff] %v3701_v38  ;;  %815 = vadd.xlane.f32.xlu1 %v814_v17  ;;  %v773_v35 = vmul.f32 %v3698_v37, %v3698_v37  ;;  %v774_v33 = vmul.f32 %v3701_v38, %v3701_v38  ;;  %860 = vadd.xlane.f32.xlu0 %v859_v15 }
 0x1d8   : > { %v862_v55 = vadd.f32 %v772_v24, %v771_v46  ;;  %v3716_v21 = vsub.f32 %v3317_v27, %v634_v31  ;;  %v3719_v18 = vsub.f32 %v4372_v23, %v634_v31  ;;  %v3722_v41 = vsub.f32 %v3321_v29, %v635_v61  ;;  %v4378_v29 = vld [vmem:[#allocation21_spill] sm:$0xff] }
 0x1d9   : > { %v3725_v50 = vsub.f32 %v4375_v16, %v635_v61  ;;  %v613_v20 = vpop.xlane.xlu1 %612  ;;  %v616_v17 = vpop.xlane.xlu0 %615  ;;  %v817_v54 = vadd.f32 %v742_v22, %v741_v63  ;;  %v865_v23 = vadd.f32 %v774_v33, %v773_v35  ;;  %v4385_v35 = vld [vmem:[#allocation25_spill] sm:$0xff] }
 0x1da   : > { %4371 = vst [vmem:[#allocation38_spill] sm:$0xff] %v3716_v21  ;;  %4373 = vst [vmem:[#allocation22_spill] sm:$0xff] %v3719_v18  ;;  %v650_v37 = vmul.f32 0.00390625, %v613_v20  ;;  %v651_v8 = vmul.f32 0.00390625, %v616_v17  ;;  %v743_v15 = vmul.f32 %v3716_v21, %v3716_v21  ;;  %v744_v27 = vmul.f32 %v3719_v18, %v3719_v18 }
 0x1db   : > { %4374 = vst [vmem:[#allocation39_spill] sm:$0xff] %v3722_v41  ;;  %4376 = vst [vmem:[#allocation23_spill] sm:$0xff] %v3725_v50  ;;  %863 = vadd.xlane.f32.xlu1 %v862_v55  ;;  %818 = vadd.xlane.f32.xlu0 %v817_v54  ;;  %v745_v31 = vmul.f32 %v3722_v41, %v3722_v41  ;;  %v746_v63 = vmul.f32 %v3725_v50, %v3725_v50 }
 0x1dc   : > { %v3732_v46 = vsub.f32 %v3315_v26, %v650_v37  ;;  %v3735_v24 = vsub.f32 %v4378_v29, %v650_v37  ;;  %v820_v61 = vadd.f32 %v744_v27, %v743_v15  ;;  %v3746_v55 = vsub.f32 %v3319_v28, %v651_v8  ;;  %v4381_v37 = vld [vmem:[#allocation24_spill] sm:$0xff] }
 0x1dd   : > { %v571_v22 = vpop.xlane.xlu1 %570  ;;  %v3749_v54 = vsub.f32 %v4381_v37, %v651_v8  ;;  %v4383_v29 = vld [vmem:[#allocation16_spill] sm:$0xff]  ;;  %v823_v8 = vadd.f32 %v746_v63, %v745_v31 }
 0x1de   : > { %4377 = vst [vmem:[#allocation40_spill] sm:$0xff] %v3732_v46  ;;  %4379 = vst [vmem:[#allocation21_spill] sm:$0xff] %v3735_v24  ;;  %v775_v16 = vmul.f32 %v3732_v46, %v3732_v46  ;;  %v776_v26 = vmul.f32 %v3735_v24, %v3735_v24  ;;  %v636_v20 = vmul.f32 0.00390625, %v571_v22  ;;  %v777_v27 = vmul.f32 %v3746_v55, %v3746_v55 }
 0x1df   : > { %4380 = vst [vmem:[#allocation41_spill] sm:$0xff] %v3746_v55  ;;  %4382 = vst [vmem:[#allocation24_spill] sm:$0xff] %v3749_v54  ;;  %821 = vadd.xlane.f32.xlu1 %v820_v61  ;;  %866 = vadd.xlane.f32.xlu0 %v865_v23  ;;  %v778_v28 = vmul.f32 %v3749_v54, %v3749_v54  ;;  %v4387_v23 = vld [vmem:[#allocation15_spill] sm:$0xff] }
 0x1e0   : > { %v868_v17 = vadd.f32 %v776_v26, %v775_v16  ;;  %v3752_v41 = vsub.f32 %v4383_v29, %v636_v20  ;;  %v3755_v33 = vsub.f32 %v4385_v35, %v636_v20  ;;  %v4389_v26 = vld [vmem:[#allocation26_spill] sm:$0xff] }
 0x1e1   : > { %v619_v15 = vpop.xlane.xlu1 %618  ;;  %v871_v63 = vadd.f32 %v778_v28, %v777_v27 }
 0x1e2   : > { %4384 = vst [vmem:[#allocation16_spill] sm:$0xff] %v3752_v41  ;;  %4386 = vst [vmem:[#allocation25_spill] sm:$0xff] %v3755_v33  ;;  %v652_v50 = vmul.f32 0.00390625, %v619_v15  ;;  %v747_v22 = vmul.f32 %v3752_v41, %v3752_v41  ;;  %v748_v61 = vmul.f32 %v3755_v33, %v3755_v33 }
 0x1e3   : > { %869 = vadd.xlane.f32.xlu1 %v868_v17  ;;  %824 = vadd.xlane.f32.xlu0 %v823_v8 }
 0x1e4   : > { %v3766_v16 = vsub.f32 %v4387_v23, %v652_v50  ;;  %v3769_v37 = vsub.f32 %v4389_v26, %v652_v50  ;;  %v826_v20 = vadd.f32 %v748_v61, %v747_v22  ;;  %v1071_v22 = vlaneseq }
 0x1e6   : > { %4388 = vst [vmem:[#allocation15_spill] sm:$0xff] %v3766_v16  ;;  %4390 = vst [vmem:[#allocation26_spill] sm:$0xff] %v3769_v37  ;;  %v779_v29 = vmul.f32 %v3766_v16, %v3766_v16  ;;  %v780_v31 = vmul.f32 %v3769_v37, %v3769_v37  ;;  %v1072_v27 = vshrl.u32 %v1071_v22, 7 }
 0x1e7   : > { %827 = vadd.xlane.f32.xlu1 %v826_v20  ;;  %872 = vadd.xlane.f32.xlu0 %v871_v63 }
 0x1e8   : > { %v874_v35 = vadd.f32 %v780_v31, %v779_v29 }
 0x1eb   : > { %875 = vadd.xlane.f32.xlu1 %v874_v35 }
 0x22f   : > { %v783_v17 = vpop.xlane.xlu0 %782 }
 0x230   : > { %v877_v15 = vmul.f32 0.00390625, %v783_v17  ;;  %v3775_v17 = vsub.s32 0, %v1072_v27 }
 0x232   : > { %v909_v23 = vmax.f32 %v877_v15, 0.0  ;;  %4391 = vst [vmem:[#allocation42_spill] sm:$0xff] %v3775_v17 }
 0x234   : > { %v941_v55 = vadd.f32 1e-05, %v909_v23  ;;  %v786_v54 = vpop.xlane.xlu1 %785  ;;  %v1069_v23 = vld [vmem:[#allocation6] sm:$0x3] }
 0x235   : > { %v878_v50 = vmul.f32 0.00390625, %v786_v54 }
 0x236   : > { %2785 = vrsqrt.f32 %v941_v55 }
 0x237   : > { %v910_v8 = vmax.f32 %v878_v50, 0.0  ;;  %v3777_v50 = vsub.s32 1, %v1072_v27  ;;  %v1145_v27 = vld [vmem:[%s4268_s2] sm:$0x3] }
 0x238   : > { %v831_v61 = vpop.xlane.xlu0 %830 }
 0x239   : > { %v942_v26 = vadd.f32 1e-05, %v910_v8  ;;  %v893_v16 = vmul.f32 0.00390625, %v831_v61  ;;  %4392 = vst [vmem:[#allocation43_spill] sm:$0xff] %v3777_v50  ;;  %v3795_v38 = vrot.slane %v1145_v27, %v3777_v50 }
 0x23b   : > { %2787 = vrsqrt.f32 %v942_v26  ;;  %v925_v41 = vmax.f32 %v893_v16, 0.0  ;;  %v834_v37 = vpop.xlane.xlu1 %833 }
 0x23c   : > { %v894_v28 = vmul.f32 0.00390625, %v834_v37  ;;  %v789_v20 = vpop.xlane.xlu0 %788 }
 0x23d   : > { %v957_v29 = vadd.f32 1e-05, %v925_v41  ;;  %v879_v31 = vmul.f32 0.00390625, %v789_v20  ;;  %v3780_v41 = vrot.slane %v1069_v23, %v3775_v17  ;;  %v4393_v20 = vld [vmem:[#allocation28_spill] sm:$0xff] }
 0x23e   : > { %v926_v63 = vmax.f32 %v894_v28, 0.0 }
 0x23f   : > { %2789 = vrsqrt.f32 %v957_v29  ;;  %v911_v35 = vmax.f32 %v879_v31, 0.0  ;;  %v3784_v31 = vrot.slane %v1069_v23, %v3777_v50 }
 0x240   : > { %v958_v54 = vadd.f32 1e-05, %v926_v63  ;;  %v792_v55 = vpop.xlane.xlu1 %791  ;;  %v837_v15 = vpop.xlane.xlu0 %836  ;;  %v4394_v63 = vld [vmem:[#allocation27_spill] sm:$0xff] }
 0x241   : > { %v943_v8 = vadd.f32 1e-05, %v911_v35  ;;  %v880_v61 = vmul.f32 0.00390625, %v792_v55  ;;  %v895_v16 = vmul.f32 0.00390625, %v837_v15 }
 0x242   : > { %2791 = vrsqrt.f32 %v958_v54 }
 0x243   : > { %v2786_v22 = vpop.eup %2785  ;;  %v912_v37 = vmax.f32 %v880_v61, 0.0  ;;  %v927_v26 = vmax.f32 %v895_v16, 0.0  ;;  %2793 = vrsqrt.f32 %v943_v8  ;;  %v3791_v8 = vrot.slane %v1145_v27, %v3775_v17 }
 0x244   : > { %v840_v28 = vpop.xlane.xlu1 %839  ;;  %v1006_v29 = vmul.f32 %v2786_v22, %v4393_v20  ;;  %v1005_v35 = vmul.f32 %v2786_v22, %v4394_v63  ;;  %v795_v15 = vpop.xlane.xlu0 %794 }
 0x245   : > { %v944_v54 = vadd.f32 1e-05, %v912_v37  ;;  %v896_v55 = vmul.f32 0.00390625, %v840_v28  ;;  %v959_v61 = vadd.f32 1e-05, %v927_v26  ;;  %v881_v16 = vmul.f32 0.00390625, %v795_v15 }
 0x246   : > { %v1082_v24 = vmul.f32 %v3784_v31, %v1006_v29  ;;  %v1081_v22 = vmul.f32 %v3780_v41, %v1005_v35  ;;  %v4395_v26 = vld [vmem:[#allocation30_spill] sm:$0xff] }
 0x247   : > { %2795 = vrsqrt.f32 %v944_v54  ;;  %v928_v33 = vmax.f32 %v896_v55, 0.0  ;;  %v913_v46 = vmax.f32 %v881_v16, 0.0  ;;  %v4396_v54 = vld [vmem:[#allocation29_spill] sm:$0xff] }
 0x248   : > { %v2788_v20 = vpop.eup %2787  ;;  %v798_v23 = vpop.xlane.xlu1 %797  ;;  %2797 = vrsqrt.f32 %v959_v61 }
 0x249   : > { %v960_v37 = vadd.f32 1e-05, %v928_v33  ;;  %v882_v28 = vmul.f32 0.00390625, %v798_v23  ;;  %v843_v63 = vpop.xlane.xlu0 %842  ;;  %v1008_v15 = vmul.f32 %v2788_v20, %v4395_v26  ;;  %v1007_v55 = vmul.f32 %v2788_v20, %v4396_v54 }
 0x24a   : > { %v945_v17 = vadd.f32 1e-05, %v913_v46  ;;  %v897_v21 = vmul.f32 0.00390625, %v843_v63  ;;  %v1158_v33 = vadd.f32 %v3795_v38, %v1082_v24  ;;  %v1157_v23 = vadd.f32 %v3791_v8, %v1081_v22 }
 0x24b   : > { %2799 = vrsqrt.f32 %v960_v37  ;;  %v914_v16 = vmax.f32 %v882_v28, 0.0  ;;  %v1084_v18 = vmul.f32 %v3784_v31, %v1008_v15  ;;  %v1083_v29 = vmul.f32 %v3780_v41, %v1007_v55 }
 0x24c   : > { %v2790_v27 = vpop.eup %2789  ;;  %2801 = vrsqrt.f32 %v945_v17  ;;  %v929_v50 = vmax.f32 %v897_v21, 0.0  ;;  %v846_v35 = vpop.xlane.xlu1 %845 }
 0x24d   : > { %v946_v26 = vadd.f32 1e-05, %v914_v16  ;;  %v898_v40 = vmul.f32 0.00390625, %v846_v35  ;;  %v801_v20 = vpop.xlane.xlu0 %800  ;;  %v1160_v46 = vadd.f32 %v3795_v38, %v1084_v18  ;;  %v1159_v61 = vadd.f32 %v3791_v8, %v1083_v29 }
 0x24e   : > { %v961_v37 = vadd.f32 1e-05, %v929_v50  ;;  %v883_v28 = vmul.f32 0.00390625, %v801_v20  ;;  %v1038_v63 = vmul.f32 %v2790_v27, %v3479_v3  ;;  %v1037_v15 = vmul.f32 %v2790_v27, %v3476_v48 }
 0x24f   : > { %v2792_v17 = vpop.eup %2791  ;;  %2803 = vrsqrt.f32 %v946_v26  ;;  %v930_v21 = vmax.f32 %v898_v40, 0.0  ;;  %v2585_v54 = vpack.c.bf16 %v1160_v46, %v1158_v33  ;;  %v2584_v24 = vpack.c.bf16 %v1159_v61, %v1157_v23 }
 0x250   : > { %2805 = vrsqrt.f32 %v961_v37  ;;  %v915_v22 = vmax.f32 %v883_v28, 0.0  ;;  %v804_v55 = vpop.xlane.xlu1 %803  ;;  %v1040_v16 = vmul.f32 %v2792_v17, %v3499_v44  ;;  %v1114_v18 = vmul.f32 %v3784_v31, %v1038_v63  ;;  %v2794_v35 = vpop.eup %2793  ;;  %v4397_v63 = vld [vmem:[#allocation32_spill] sm:$0xff] }
 0x251   : > { %v962_v29 = vadd.f32 1e-05, %v930_v21  ;;  %v884_v50 = vmul.f32 0.00390625, %v804_v55  ;;  %v849_v20 = vpop.xlane.xlu0 %848  ;;  %1873 = vmatprep.mubr.bf16.mxu0 %v2585_v54  ;;  %v1039_v3 = vmul.f32 %v2792_v17, %v3496_v39  ;;  %v1113_v48 = vmul.f32 %v3780_v41, %v1037_v15 }
 0x252   : > { %v947_v27 = vadd.f32 1e-05, %v915_v22  ;;  %v899_v40 = vmul.f32 0.00390625, %v849_v20  ;;  %1874 = vmatmul.mubr.bf16.vlgmr.msra.gmra.mxu0 %v2584_v24  ;;  %v1116_v33 = vmul.f32 %v3784_v31, %v1040_v16  ;;  %v1190_v23 = vadd.f32 %v3795_v38, %v1114_v18 }
 0x253   : > { %2807 = vrsqrt.f32 %v962_v29  ;;  %v916_v44 = vmax.f32 %v884_v50, 0.0  ;;  %v1115_v26 = vmul.f32 %v3780_v41, %v1039_v3  ;;  %v1189_v46 = vadd.f32 %v3791_v8, %v1113_v48 }
 0x254   : > { %v2796_v61 = vpop.eup %2795  ;;  %2809 = vrsqrt.f32 %v947_v27  ;;  %v931_v37 = vmax.f32 %v899_v40, 0.0  ;;  %v852_v28 = vpop.xlane.xlu1 %851  ;;  %v1192_v39 = vadd.f32 %v3795_v38, %v1116_v33  ;;  %v1010_v15 = vmul.f32 %v2794_v35, %v4397_v63 }
 0x255   : > { %v948_v17 = vadd.f32 1e-05, %v916_v44  ;;  %v900_v21 = vmul.f32 0.00390625, %v852_v28  ;;  %v807_v54 = vpop.xlane.xlu0 %806  ;;  %v1191_v24 = vadd.f32 %v3791_v8, %v1115_v26  ;;  %v1012_v22 = vmul.f32 %v2796_v61, %v3519_v32  ;;  %v2798_v50 = vpop.eup %2797  ;;  %v4398_v26 = vld [vmem:[#allocation31_spill] sm:$0xff] }
 0x256   : > { %v963_v55 = vadd.f32 1e-05, %v931_v37  ;;  %v885_v16 = vmul.f32 0.00390625, %v807_v54  ;;  %v2601_v18 = vpack.c.bf16 %v1192_v39, %v1190_v23  ;;  %v1086_v29 = vmul.f32 %v3784_v31, %v1010_v15  ;;  %v4399_v54 = vld [vmem:[#allocation34_spill] sm:$0xff] }
 0x257   : > { %2811 = vrsqrt.f32 %v948_v17  ;;  %v932_v20 = vmax.f32 %v900_v21, 0.0  ;;  %v2600_v3 = vpack.c.bf16 %v1191_v24, %v1189_v46  ;;  %v1088_v48 = vmul.f32 %v3784_v31, %v1012_v22 }
 0x258   : > { %v2800_v27 = vpop.eup %2799  ;;  %2813 = vrsqrt.f32 %v963_v55  ;;  %v917_v40 = vmax.f32 %v885_v16, 0.0  ;;  %v810_v33 = vpop.xlane.xlu1 %809  ;;  %1953 = vmatprep.mubr.bf16.mxu1 %v2601_v18  ;;  %v1162_v44 = vadd.f32 %v3795_v38, %v1086_v29  ;;  %v1009_v32 = vmul.f32 %v2794_v35, %v4398_v26 }
 0x259   : > { %v3824_v37 = vpop.eup %2801  ;;  %v964_v23 = vadd.f32 1e-05, %v932_v20  ;;  %v886_v28 = vmul.f32 0.00390625, %v810_v33  ;;  %v855_v39 = vpop.xlane.xlu0 %854  ;;  %1954 = vmatmul.mubr.bf16.vlgmr.msra.gmra.mxu1 %v2600_v3  ;;  %v1164_v63 = vadd.f32 %v3795_v38, %v1088_v48  ;;  %v1011_v46 = vmul.f32 %v2796_v61, %v3516_v56 }
 0x25a   : > { %v949_v15 = vadd.f32 1e-05, %v917_v40  ;;  %v901_v17 = vmul.f32 0.00390625, %v855_v39  ;;  %v1085_v21 = vmul.f32 %v3780_v41, %v1009_v32  ;;  %v1042_v24 = vmul.f32 %v2798_v50, %v4399_v54 }
 0x25b   : > { %2815 = vrsqrt.f32 %v964_v23  ;;  %v918_v22 = vmax.f32 %v886_v28, 0.0  ;;  %v2587_v55 = vpack.c.bf16 %v1164_v63, %v1162_v44  ;;  %v1087_v35 = vmul.f32 %v3780_v41, %v1011_v46  ;;  %v4400_v28 = vld [vmem:[#allocation33_spill] sm:$0xff] }
 0x25c   : > { %v2804_v16 = vpop.eup %2803  ;;  %2817 = vrsqrt.f32 %v949_v15  ;;  %v933_v18 = vmax.f32 %v901_v17, 0.0  ;;  %v858_v29 = vpop.xlane.xlu1 %857  ;;  %v1161_v20 = vadd.f32 %v3791_v8, %v1085_v21  ;;  %v1044_v3 = vmul.f32 %v2800_v27, %v3539_v52 }
 0x25d   : > { %v3833_v56 = vpop.eup %2805  ;;  %v950_v61 = vadd.f32 1e-05, %v918_v22  ;;  %v902_v48 = vmul.f32 0.00390625, %v858_v29  ;;  %v813_v40 = vpop.xlane.xlu0 %812  ;;  %1883 = vmatprep.mubr.bf16.mxu0 %v2587_v55  ;;  %v1163_v33 = vadd.f32 %v3791_v8, %v1087_v35  ;;  %v1118_v44 = vmul.f32 %v3784_v31, %v1042_v24 }
 0x25e   : > { %v965_v26 = vadd.f32 1e-05, %v933_v18  ;;  %v887_v32 = vmul.f32 0.00390625, %v813_v40  ;;  %v1120_v23 = vmul.f32 %v3784_v31, %v1044_v3  ;;  %v1041_v39 = vmul.f32 %v2798_v50, %v4400_v28 }
 0x25f   : > { %2819 = vrsqrt.f32 %v950_v61  ;;  %v934_v63 = vmax.f32 %v902_v48, 0.0  ;;  %v2586_v46 = vpack.c.bf16 %v1163_v33, %v1161_v20  ;;  %v1194_v52 = vadd.f32 %v3795_v38, %v1118_v44 }
 0x260   : > { %v3840_v15 = vpop.eup %2807  ;;  %2821 = vrsqrt.f32 %v965_v26  ;;  %v919_v17 = vmax.f32 %v887_v32, 0.0  ;;  %v816_v21 = vpop.xlane.xlu1 %815  ;;  %v1196_v54 = vadd.f32 %v3795_v38, %v1120_v23  ;;  %v1043_v24 = vmul.f32 %v2800_v27, %v3536_v0 }
 0x261   : > { %v3844_v22 = vpop.eup %2809  ;;  %v966_v55 = vadd.f32 1e-05, %v934_v63  ;;  %1884 = vmatmul.mubr.bf16.gmra.mxu0 %v2586_v46  ;;  %v888_v35 = vmul.f32 0.00390625, %v816_v21  ;;  %v861_v50 = vpop.xlane.xlu0 %860  ;;  %v1117_v18 = vmul.f32 %v3780_v41, %v1041_v39  ;;  %v1014_v29 = vmul.f32 %v3824_v37, %v3525_v36 }
 0x262   : > { %v951_v20 = vadd.f32 1e-05, %v919_v17  ;;  %v903_v3 = vmul.f32 0.00390625, %v861_v50  ;;  %v2603_v61 = vpack.c.bf16 %v1196_v54, %v1194_v52  ;;  %v1119_v48 = vmul.f32 %v3780_v41, %v1043_v24 }
 0x263   : > { %2823 = vrsqrt.f32 %v966_v55  ;;  %v920_v40 = vmax.f32 %v888_v35, 0.0  ;;  %v1193_v0 = vadd.f32 %v3791_v8, %v1117_v18  ;;  %v1016_v27 = vmul.f32 %v2804_v16, %v3559_v7 }
 0x264   : > { %v3852_v33 = vpop.eup %2811  ;;  %2825 = vrsqrt.f32 %v951_v20  ;;  %v935_v44 = vmax.f32 %v903_v3, 0.0  ;;  %1963 = vmatprep.mubr.bf16.mxu1 %v2603_v61  ;;  %v1195_v26 = vadd.f32 %v3791_v8, %v1119_v48  ;;  %v864_v32 = vpop.xlane.xlu1 %863  ;;  %v1090_v36 = vmul.f32 %v3784_v31, %v1014_v29 }
 0x265   : > { %v3856_v23 = vpop.eup %2813  ;;  %v952_v28 = vadd.f32 1e-05, %v920_v40  ;;  %v904_v39 = vmul.f32 0.00390625, %v864_v32  ;;  %v819_v63 = vpop.xlane.xlu0 %818  ;;  %v1092_v46 = vmul.f32 %v3784_v31, %v1016_v27  ;;  %v1013_v7 = vmul.f32 %v3824_v37, %v3522_v5 }
 0x266   : > { %v967_v52 = vadd.f32 1e-05, %v935_v44  ;;  %v2602_v17 = vpack.c.bf16 %v1195_v26, %v1193_v0  ;;  %v889_v21 = vmul.f32 0.00390625, %v819_v63  ;;  %v1166_v54 = vadd.f32 %v3795_v38, %v1090_v36 }
 0x267   : > { %2827 = vrsqrt.f32 %v952_v28  ;;  %v936_v24 = vmax.f32 %v904_v39, 0.0  ;;  %v1168_v55 = vadd.f32 %v3795_v38, %v1092_v46  ;;  %v1015_v35 = vmul.f32 %v2804_v16, %v3556_v34 }
 0x268   : > { %v3864_v50 = vpop.eup %2815  ;;  %2829 = vrsqrt.f32 %v967_v52  ;;  %1964 = vmatmul.mubr.bf16.gmra.mxu1 %v2602_v17  ;;  %v921_v18 = vmax.f32 %v889_v21, 0.0  ;;  %v1089_v29 = vmul.f32 %v3780_v41, %v1013_v7  ;;  %v822_v20 = vpop.xlane.xlu1 %821  ;;  %v1046_v5 = vmul.f32 %v3833_v56, %v3545_v57 }
 0x269   : > { %v3869_v37 = vpop.eup %2817  ;;  %v968_v3 = vadd.f32 1e-05, %v936_v24  ;;  %v2589_v61 = vpack.c.bf16 %v1168_v55, %v1166_v54  ;;  %v1091_v48 = vmul.f32 %v3780_v41, %v1015_v35  ;;  %v890_v40 = vmul.f32 0.00390625, %v822_v20  ;;  %v867_v0 = vpop.xlane.xlu0 %866 }
 0x26a   : > { %v953_v34 = vadd.f32 1e-05, %v921_v18  ;;  %v1165_v16 = vadd.f32 %v3791_v8, %v1089_v29  ;;  %v905_v27 = vmul.f32 0.00390625, %v867_v0  ;;  %v1048_v44 = vmul.f32 %v3840_v15, %v3575_v13 }
 0x26b   : > { %2831 = vrsqrt.f32 %v968_v3  ;;  %1893 = vmatprep.mubr.bf16.mxu0 %v2589_v61  ;;  %v1167_v26 = vadd.f32 %v3791_v8, %v1091_v48  ;;  %v922_v57 = vmax.f32 %v890_v40, 0.0  ;;  %v1122_v32 = vmul.f32 %v3784_v31, %v1046_v5 }
 0x26c   : > { %v3877_v36 = vpop.eup %2819  ;;  %2833 = vrsqrt.f32 %v953_v34  ;;  %v937_v28 = vmax.f32 %v905_v27, 0.0  ;;  %v1124_v39 = vmul.f32 %v3784_v31, %v1048_v44  ;;  %v1045_v63 = vmul.f32 %v3833_v56, %v3542_v53  ;;  %v870_v46 = vpop.xlane.xlu1 %869 }
 0x26d   : > { %v3882_v7 = vpop.eup %2821  ;;  %v2588_v13 = vpack.c.bf16 %v1167_v26, %v1165_v16  ;;  %v954_v52 = vadd.f32 1e-05, %v922_v57  ;;  %v1198_v17 = vadd.f32 %v3795_v38, %v1122_v32  ;;  %v1047_v21 = vmul.f32 %v3840_v15, %v3572_v4  ;;  %v825_v54 = vpop.xlane.xlu0 %824 }
 0x26e   : > { %v969_v24 = vadd.f32 1e-05, %v937_v28  ;;  %v1200_v55 = vadd.f32 %v3795_v38, %v1124_v39  ;;  %v1121_v35 = vmul.f32 %v3780_v41, %v1045_v63  ;;  %v906_v18 = vmul.f32 0.00390625, %v870_v46 }
 0x26f   : > { %1894 = vmatmul.mubr.bf16.gmra.mxu0 %v2588_v13  ;;  %2835 = vrsqrt.f32 %v954_v52  ;;  %v1123_v53 = vmul.f32 %v3780_v41, %v1047_v21  ;;  %v891_v56 = vmul.f32 0.00390625, %v825_v54  ;;  %v1018_v29 = vmul.f32 %v3844_v22, %v3565_v47 }
 0x270   : > { %v3892_v20 = vpop.eup %2823  ;;  %2837 = vrsqrt.f32 %v969_v24  ;;  %v2605_v5 = vpack.c.bf16 %v1200_v55, %v1198_v17  ;;  %v1197_v4 = vadd.f32 %v3791_v8, %v1121_v35  ;;  %v938_v15 = vmax.f32 %v906_v18, 0.0  ;;  %v828_v3 = vpop.xlane.xlu1 %827 }
 0x271   : > { %v3895_v61 = vpop.eup %2825  ;;  %v1199_v48 = vadd.f32 %v3791_v8, %v1123_v53  ;;  %v923_v40 = vmax.f32 %v891_v56, 0.0  ;;  %v1020_v0 = vmul.f32 %v3852_v33, %v3599_v2  ;;  %v1094_v34 = vmul.f32 %v3784_v31, %v1018_v29  ;;  %v873_v26 = vpop.xlane.xlu0 %872  ;;  %v4401_v53 = vld [vmem:[#allocation35_spill] sm:$0xff] }
 0x272   : > { %1973 = vmatprep.mubr.bf16.mxu1 %v2605_v5  ;;  %v970_v47 = vadd.f32 1e-05, %v938_v15  ;;  %v1017_v16 = vmul.f32 %v3844_v22, %v3562_v9  ;;  %v1019_v27 = vmul.f32 %v3852_v33, %v3596_v45  ;;  %v892_v44 = vmul.f32 0.00390625, %v828_v3 }
 0x273   : > { %v2604_v57 = vpack.c.bf16 %v1199_v48, %v1197_v4  ;;  %v955_v32 = vadd.f32 1e-05, %v923_v40  ;;  %v1096_v28 = vmul.f32 %v3784_v31, %v1020_v0  ;;  %v1170_v39 = vadd.f32 %v3795_v38, %v1094_v34 }
 0x274   : > { %v3907_v63 = vpop.eup %2827  ;;  %2839 = vrsqrt.f32 %v970_v47  ;;  %v1093_v2 = vmul.f32 %v3780_v41, %v1017_v16  ;;  %v1095_v46 = vmul.f32 %v3780_v41, %v1019_v27  ;;  %v924_v13 = vmax.f32 %v892_v44, 0.0  ;;  %v876_v24 = vpop.xlane.xlu1 %875 }
 0x275   : > { %v3911_v9 = vpop.eup %2829  ;;  %1974 = vmatmul.mubr.bf16.gmra.mxu1 %v2604_v57  ;;  %2841 = vrsqrt.f32 %v955_v32  ;;  %v1172_v45 = vadd.f32 %v3795_v38, %v1096_v28  ;;  %v907_v22 = vmul.f32 0.00390625, %v873_v26  ;;  %v1050_v33 = vmul.f32 %v3856_v23, %v3581_v6 }
 0x276   : > { %v1169_v52 = vadd.f32 %v3791_v8, %v1093_v2  ;;  %v1171_v17 = vadd.f32 %v3791_v8, %v1095_v46  ;;  %v956_v21 = vadd.f32 1e-05, %v924_v13  ;;  %v1052_v54 = vmul.f32 %v3864_v50, %v3619_v10 }
 0x277   : > { %v2591_v55 = vpack.c.bf16 %v1172_v45, %v1170_v39  ;;  %v939_v35 = vmax.f32 %v907_v22, 0.0  ;;  %v1126_v18 = vmul.f32 %v3784_v31, %v1050_v33  ;;  %v1049_v56 = vmul.f32 %v3856_v23, %v4401_v53 }
 0x278   : > { %v3923_v29 = vpop.eup %2831  ;;  %v2590_v5 = vpack.c.bf16 %v1171_v17, %v1169_v52  ;;  %2843 = vrsqrt.f32 %v956_v21  ;;  %v1128_v6 = vmul.f32 %v3784_v31, %v1052_v54  ;;  %v1051_v4 = vmul.f32 %v3864_v50, %v3616_v30 }
 0x279   : > { %v3928_v15 = vpop.eup %2833  ;;  %1903 = vmatprep.mubr.bf16.mxu0 %v2591_v55  ;;  %v971_v10 = vadd.f32 1e-05, %v939_v35  ;;  %v1202_v3 = vadd.f32 %v3795_v38, %v1126_v18  ;;  %v1125_v48 = vmul.f32 %v3780_v41, %v1049_v56  ;;  %v908_v40 = vmul.f32 0.00390625, %v876_v24 }
 0x27a   : > { %1904 = vmatmul.mubr.bf16.gmra.mxu0 %v2590_v5  ;;  %v1204_v23 = vadd.f32 %v3795_v38, %v1128_v6  ;;  %v1127_v0 = vmul.f32 %v3780_v41, %v1051_v4  ;;  %v1022_v34 = vmul.f32 %v3869_v37, %v3605_v51  ;;  %v1024_v30 = vmul.f32 %v3877_v36, %v3635_v59 }
 0x27b   : > { %2845 = vrsqrt.f32 %v971_v10  ;;  %v1201_v50 = vadd.f32 %v3791_v8, %v1125_v48  ;;  %v940_v47 = vmax.f32 %v908_v40, 0.0  ;;  %v1021_v16 = vmul.f32 %v3869_v37, %v3602_v11 }
 0x27c   : > { %v3941_v27 = vpop.eup %2835  ;;  %v2607_v44 = vpack.c.bf16 %v1204_v23, %v1202_v3  ;;  %v1203_v26 = vadd.f32 %v3791_v8, %v1127_v0  ;;  %v1098_v57 = vmul.f32 %v3784_v31, %v1022_v34  ;;  %v1100_v32 = vmul.f32 %v3784_v31, %v1024_v30 }
 0x27d   : > { %v3946_v51 = vpop.eup %2837  ;;  %v972_v28 = vadd.f32 1e-05, %v940_v47  ;;  %v1023_v59 = vmul.f32 %v3877_v36, %v3632_v1  ;;  %v1097_v39 = vmul.f32 %v3780_v41, %v1021_v16  ;;  %v1054_v11 = vmul.f32 %v3882_v7, %v3629_v58  ;;  %v4403_v47 = vld [vmem:[#allocation37_spill] sm:$0xff] }
 0x27e   : > { %1983 = vmatprep.mubr.bf16.mxu1 %v2607_v44  ;;  %v2606_v37 = vpack.c.bf16 %v1203_v26, %v1201_v50  ;;  %v1174_v2 = vadd.f32 %v3795_v38, %v1098_v57  ;;  %v1176_v46 = vadd.f32 %v3795_v38, %v1100_v32  ;;  %v1056_v13 = vmul.f32 %v3892_v20, %v3659_v60  ;;  %v4404_v57 = vld [vmem:[#allocation19_spill] sm:$0xff]  ;;  %v4405_v32 = vld [vmem:[#allocation22_spill] sm:$0xff] }
 0x27f   : > { %2847 = vrsqrt.f32 %v972_v28  ;;  %v1099_v45 = vmul.f32 %v3780_v41, %v1023_v59  ;;  %v1173_v22 = vadd.f32 %v3791_v8, %v1097_v39  ;;  %v1130_v1 = vmul.f32 %v3784_v31, %v1054_v11  ;;  %v4406_v39 = vld [vmem:[#allocation17_spill] sm:$0xff] }
 0x280   : > { %1984 = vmatmul.mubr.bf16.gmra.mxu1 %v2606_v37  ;;  %v2593_v36 = vpack.c.bf16 %v1176_v46, %v1174_v2  ;;  %v1132_v58 = vmul.f32 %v3784_v31, %v1056_v13  ;;  %v1053_v33 = vmul.f32 %v3882_v7, %v3626_v14  ;;  %v1055_v52 = vmul.f32 %v3892_v20, %v3656_v43  ;;  %v4402_v20 = vld [vmem:[#allocation36_spill] sm:$0xff] }
 0x281   : > { %v3965_v17 = vpop.eup %2839  ;;  %v1175_v60 = vadd.f32 %v3791_v8, %v1099_v45  ;;  %v1206_v21 = vadd.f32 %v3795_v38, %v1130_v1  ;;  %v1026_v54 = vmul.f32 %v3895_v61, %v3641_v62  ;;  %v1028_v24 = vmul.f32 %v3907_v63, %v3679_v19  ;;  %v4407_v45 = vld [vmem:[#allocation38_spill] sm:$0xff] }
 0x282   : > { %v3973_v55 = vpop.eup %2841  ;;  %1913 = vmatprep.mubr.bf16.mxu0 %v2593_v36  ;;  %v1208_v14 = vadd.f32 %v3795_v38, %v1132_v58  ;;  %v1129_v7 = vmul.f32 %v3780_v41, %v1053_v33  ;;  %v1131_v43 = vmul.f32 %v3780_v41, %v1055_v52  ;;  %v1025_v35 = vmul.f32 %v3895_v61, %v4402_v20  ;;  %v4408_v36 = vld [vmem:[#allocation20_spill] sm:$0xff] }
 0x283   : > { %v2592_v18 = vpack.c.bf16 %v1175_v60, %v1173_v22  ;;  %v1102_v53 = vmul.f32 %v3784_v31, %v1026_v54  ;;  %v1104_v62 = vmul.f32 %v3784_v31, %v1028_v24  ;;  %v1027_v19 = vmul.f32 %v3907_v63, %v3676_v49 }
 0x284   : > { %v2609_v56 = vpack.c.bf16 %v1208_v14, %v1206_v21  ;;  %v1205_v5 = vadd.f32 %v3791_v8, %v1129_v7  ;;  %v1207_v6 = vadd.f32 %v3791_v8, %v1131_v43  ;;  %v1101_v4 = vmul.f32 %v3780_v41, %v1025_v35  ;;  %v4409_v21 = vld [vmem:[#allocation21_spill] sm:$0xff]  ;;  %v4410_v35 = vld [vmem:[#allocation18_spill] sm:$0xff] }
 0x285   : > { %v3987_v10 = vpop.eup %2843  ;;  %1914 = vmatmul.mubr.bf16.gmra.mxu0 %v2592_v18  ;;  %v1178_v61 = vadd.f32 %v3795_v38, %v1102_v53  ;;  %v1180_v3 = vadd.f32 %v3795_v38, %v1104_v62  ;;  %v1103_v48 = vmul.f32 %v3780_v41, %v1027_v19  ;;  %v1058_v40 = vmul.f32 %v3911_v9, %v3665_v12  ;;  %v4411_v53 = vld [vmem:[#allocation40_spill] sm:$0xff] }
 0x286   : > { %1993 = vmatprep.mubr.bf16.mxu1 %v2609_v56  ;;  %v2608_v49 = vpack.c.bf16 %v1207_v6, %v1205_v5  ;;  %v1177_v63 = vadd.f32 %v3791_v8, %v1101_v4  ;;  %v1060_v23 = vmul.f32 %v3923_v29, %v3695_v25  ;;  %v1057_v0 = vmul.f32 %v3911_v9, %v3662_v42  ;;  %v4412_v5 = vld [vmem:[#allocation23_spill] sm:$0xff]  ;;  %v4413_v4 = vld [vmem:[#allocation25_spill] sm:$0xff] }
 0x287   : > { %v2595_v34 = vpack.c.bf16 %v1180_v3, %v1178_v61  ;;  %v1179_v30 = vadd.f32 %v3791_v8, %v1103_v48  ;;  %v1134_v50 = vmul.f32 %v3784_v31, %v1058_v40  ;;  %v1059_v16 = vmul.f32 %v3923_v29, %v4403_v47 }
 0x288   : > { %v2846_v44 = vpop.eup %2845  ;;  %1994 = vmatmul.mubr.bf16.gmra.mxu1 %v2608_v49  ;;  %v1136_v12 = vmul.f32 %v3784_v31, %v1060_v23  ;;  %v1133_v26 = vmul.f32 %v3780_v41, %v1057_v0  ;;  %v1030_v25 = vmul.f32 %v3928_v15, %v4404_v57  ;;  %v1032_v42 = vmul.f32 %v3941_v27, %v4405_v32  ;;  %v4416_v57 = vld [vmem:[#allocation24_spill] sm:$0xff] }
 0x289   : > { %1923 = vmatprep.mubr.bf16.mxu0 %v2595_v34  ;;  %v2594_v9 = vpack.c.bf16 %v1179_v30, %v1177_v63  ;;  %v1210_v28 = vadd.f32 %v3795_v38, %v1134_v50  ;;  %v1135_v59 = vmul.f32 %v3780_v41, %v1059_v16  ;;  %v1029_v29 = vmul.f32 %v3928_v15, %v4406_v39  ;;  %v4414_v63 = vld [vmem:[#allocation39_spill] sm:$0xff]  ;;  %v4415_v50 = vld [vmem:[#allocation16_spill] sm:$0xff] }
 0x28a   : > { %v1212_v11 = vadd.f32 %v3795_v38, %v1136_v12  ;;  %v1209_v37 = vadd.f32 %v3791_v8, %v1133_v26  ;;  %v1106_v2 = vmul.f32 %v3784_v31, %v1030_v25  ;;  %v1108_v46 = vmul.f32 %v3784_v31, %v1032_v42  ;;  %v4417_v42 = vld [vmem:[#allocation26_spill] sm:$0xff] }
 0x28b   : > { %v1211_v13 = vadd.f32 %v3791_v8, %v1135_v59  ;;  %v1031_v22 = vmul.f32 %v3941_v27, %v4407_v45  ;;  %v1105_v1 = vmul.f32 %v3780_v41, %v1029_v29  ;;  %v1062_v58 = vmul.f32 %v3946_v51, %v4408_v36  ;;  %v4419_v29 = vld [vmem:[#allocation15_spill] sm:$0xff] }
 0x28c   : > { %v2848_v33 = vpop.eup %2847  ;;  %v2611_v15 = vpack.c.bf16 %v1212_v11, %v1210_v28  ;;  %v1182_v52 = vadd.f32 %v3795_v38, %v1106_v2  ;;  %v1184_v60 = vadd.f32 %v3795_v38, %v1108_v46  ;;  %v1064_v54 = vmul.f32 %v3965_v17, %v4409_v21  ;;  %v4418_v28 = vld [vmem:[#allocation41_spill] sm:$0xff] }
 0x28d   : > { %1924 = vmatmul.mubr.bf16.gmra.mxu0 %v2594_v9  ;;  %v2610_v24 = vpack.c.bf16 %v1211_v13, %v1209_v37  ;;  %v1107_v14 = vmul.f32 %v3780_v41, %v1031_v22  ;;  %v1181_v27 = vadd.f32 %v3791_v8, %v1105_v1  ;;  %v1138_v7 = vmul.f32 %v3784_v31, %v1062_v58 }
 0x28e   : > { %2003 = vmatprep.mubr.bf16.mxu1 %v2611_v15  ;;  %v2597_v43 = vpack.c.bf16 %v1184_v60, %v1182_v52  ;;  %v1140_v20 = vmul.f32 %v3784_v31, %v1064_v54  ;;  %v1061_v18 = vmul.f32 %v3946_v51, %v4410_v35  ;;  %v1063_v62 = vmul.f32 %v3965_v17, %v4411_v53  ;;  %v4420_v15 = vld [vmem:[#allocation42_spill] sm:$0xff]  ;;  %v4421_v60 = vld [vmem:[#allocation43_spill] sm:$0xff] }
 0x28f   : > { %v1183_v19 = vadd.f32 %v3791_v8, %v1107_v14  ;;  %v1214_v56 = vadd.f32 %v3795_v38, %v1138_v7  ;;  %v1034_v6 = vmul.f32 %v3973_v55, %v4412_v5  ;;  %v1036_v61 = vmul.f32 %v3987_v10, %v4413_v4 }
 0x290   : > { %2004 = vmatmul.mubr.bf16.gmra.mxu1 %v2610_v24  ;;  %1933 = vmatprep.mubr.bf16.mxu0 %v2597_v43  ;;  %v1216_v3 = vadd.f32 %v3795_v38, %v1140_v20  ;;  %v1137_v48 = vmul.f32 %v3780_v41, %v1061_v18  ;;  %v1139_v51 = vmul.f32 %v3780_v41, %v1063_v62 }
 0x291   : > { %v2596_v40 = vpack.c.bf16 %v1183_v19, %v1181_v27  ;;  %v1110_v17 = vmul.f32 %v3784_v31, %v1034_v6  ;;  %v1112_v49 = vmul.f32 %v3784_v31, %v1036_v61  ;;  %v1033_v23 = vmul.f32 %v3973_v55, %v4414_v63 }
 0x292   : > { %v2613_v0 = vpack.c.bf16 %v1216_v3, %v1214_v56  ;;  %v1213_v34 = vadd.f32 %v3791_v8, %v1137_v48  ;;  %v1215_v30 = vadd.f32 %v3791_v8, %v1139_v51  ;;  %v1035_v47 = vmul.f32 %v3987_v10, %v4415_v50 }
 0x293   : > { %v1186_v16 = vadd.f32 %v3795_v38, %v1110_v17  ;;  %v1188_v12 = vadd.f32 %v3795_v38, %v1112_v49  ;;  %v1109_v26 = vmul.f32 %v3780_v41, %v1033_v23  ;;  %v1066_v25 = vmul.f32 %v2846_v44, %v4416_v57 }
 0x294   : > { %2013 = vmatprep.mubr.bf16.mxu1 %v2613_v0  ;;  %v2612_v32 = vpack.c.bf16 %v1215_v30, %v1213_v34  ;;  %v1111_v55 = vmul.f32 %v3780_v41, %v1035_v47  ;;  %v1068_v9 = vmul.f32 %v2848_v33, %v4417_v42  ;;  %v1065_v59 = vmul.f32 %v2846_v44, %v4418_v28 }
 0x295   : > { %1934 = vmatmul.mubr.bf16.gmra.mxu0 %v2596_v40  ;;  %v2599_v39 = vpack.c.bf16 %v1188_v12, %v1186_v16  ;;  %v1142_v10 = vmul.f32 %v3784_v31, %v1066_v25  ;;  %v1067_v11 = vmul.f32 %v2848_v33, %v4419_v29  ;;  %v1185_v13 = vadd.f32 %v3791_v8, %v1109_v26 }
 0x296   : > { %v1187_v37 = vadd.f32 %v3791_v8, %v1111_v55  ;;  %v1144_v2 = vmul.f32 %v3784_v31, %v1068_v9  ;;  %v1141_v46 = vmul.f32 %v3780_v41, %v1065_v59 }
 0x297   : > { %1943 = vmatprep.mubr.bf16.mxu0 %v2599_v39  ;;  %v1143_v45 = vmul.f32 %v3780_v41, %v1067_v11  ;;  %v1218_v44 = vadd.f32 %v3795_v38, %v1142_v10  ;;  %v1509_v41 = vld [vmem:[%s4270_s4] sm:$0x3] }
 0x298   : > { %2014 = vmatmul.mubr.bf16.gmra.mxu1 %v2612_v32  ;;  %v1220_v22 = vadd.f32 %v3795_v38, %v1144_v2  ;;  %v2598_v1 = vpack.c.bf16 %v1187_v37, %v1185_v13  ;;  %v1217_v33 = vadd.f32 %v3791_v8, %v1141_v46  ;;  %v4074_v52 = vrot.slane %v1509_v41, %v4420_v15 }
 0x299   : > { %v1219_v36 = vadd.f32 %v3791_v8, %v1143_v45  ;;  %v4077_v38 = vrot.slane %v1509_v41, %v4421_v60 }
 0x29a   : > { %v2615_v58 = vpack.c.bf16 %v1220_v22, %v1218_v44 }
 0x29b   : > { %v2614_v31 = vpack.c.bf16 %v1219_v36, %v1217_v33 }
 0x29c   : > { %2023 = vmatprep.mubr.bf16.mxu1 %v2615_v58 }
 0x29d   : > { %1944 = vmatmul.mubr.bf16.gmra.mxu0 %v2598_v1 }
 0x2a0   : > { %2024 = vmatmul.mubr.bf16.gmra.mxu1 %v2614_v31 }
 0x312   : > { %v1875_v21 = vpop.f32.mrf.mxu0 }
 0x313   : > { %v1876_v54 = vadd.f32 %v1875_v21, %v4074_v52 }
 0x314   : > { %v1877_v24 = vpop.f32.mrf.mxu0 }
 0x315   : > { %vm2034_vm0 = vcmp.ge.f32.partialorder %v1876_v54, 0.0  ;;  %v2098_v8 = vmul.f32 0.01, %v1876_v54  ;;  %v1878_v14 = vadd.f32 %v1877_v24, %v4077_v38 }
 0x316   : > { %v1879_v27 = vpop.f32.mrf.mxu0 }
 0x317   : > { %v2162_v7 = vsel %vm2034_vm0, %v1876_v54, %v2098_v8  ;;  %vm2035_vm1 = vcmp.ge.f32.partialorder %v1878_v14, 0.0  ;;  %v2099_v43 = vmul.f32 0.01, %v1878_v14  ;;  %v1880_v20 = vadd.f32 %v1879_v27, %v4074_v52 }
 0x318   : > { %2226 = vst [vmem:[%s4084_s7] sm:$0xff] %v2162_v7  ;;  %v1881_v35 = vpop.f32.mrf.mxu0 }
 0x319   : > { %v2163_v18 = vsel %vm2035_vm1, %v1878_v14, %v2099_v43  ;;  %vm2036_vm2 = vcmp.ge.f32.partialorder %v1880_v20, 0.0  ;;  %v2100_v53 = vmul.f32 0.01, %v1880_v20  ;;  %v1882_v62 = vadd.f32 %v1881_v35, %v4077_v38  ;;  %v1955_v19 = vpop.f32.mrf.mxu1 }
 0x31a   : > { %2227 = vst [vmem:[%s4084_s7 + $0x8] sm:$0xff] %v2163_v18  ;;  %v1956_v56 = vadd.f32 %v1955_v19, %v4074_v52 }
 0x31b   : > { %v2164_v5 = vsel %vm2036_vm2, %v1880_v20, %v2100_v53  ;;  %vm2037_vm3 = vcmp.ge.f32.partialorder %v1882_v62, 0.0  ;;  %v2101_v6 = vmul.f32 0.01, %v1882_v62  ;;  %v1957_v4 = vpop.f32.mrf.mxu1 }
 0x31c   : > { %2228 = vst [vmem:[%s4084_s7 + $0x10] sm:$0xff] %v2164_v5  ;;  %vm2066_vm4 = vcmp.ge.f32.partialorder %v1956_v56, 0.0  ;;  %v2130_v61 = vmul.f32 0.01, %v1956_v56  ;;  %v1958_v3 = vadd.f32 %v1957_v4, %v4077_v38 }
 0x31d   : > { %v2165_v48 = vsel %vm2037_vm3, %v1882_v62, %v2101_v6  ;;  %v1959_v51 = vpop.f32.mrf.mxu1 }
 0x31e   : > { %2229 = vst [vmem:[%s4084_s7 + $0x18] sm:$0xff] %v2165_v48  ;;  %v2194_v40 = vsel %vm2066_vm4, %v1956_v56, %v2130_v61  ;;  %vm2067_vm5 = vcmp.ge.f32.partialorder %v1958_v3, 0.0  ;;  %v2131_v17 = vmul.f32 0.01, %v1958_v3  ;;  %v1960_v49 = vadd.f32 %v1959_v51, %v4074_v52 }
 0x31f   : > { %2258 = vst [vmem:[%s4084_s7 + $0x100] sm:$0xff] %v2194_v40  ;;  %v1961_v63 = vpop.f32.mrf.mxu1 }
 0x320   : > { %v2195_v23 = vsel %vm2067_vm5, %v1958_v3, %v2131_v17  ;;  %vm2068_vm6 = vcmp.ge.f32.partialorder %v1960_v49, 0.0  ;;  %v2132_v0 = vmul.f32 0.01, %v1960_v49  ;;  %v1962_v34 = vadd.f32 %v1961_v63, %v4077_v38 }
 0x321   : > { %2259 = vst [vmem:[%s4084_s7 + $0x108] sm:$0xff] %v2195_v23  ;;  %v1885_v30 = vpop.f32.mrf.mxu0 }
 0x322   : > { %v1886_v50 = vadd.f32 %v1885_v30, %v4074_v52  ;;  %v2196_v47 = vsel %vm2068_vm6, %v1960_v49, %v2132_v0  ;;  %vm2069_vm7 = vcmp.ge.f32.partialorder %v1962_v34, 0.0  ;;  %v2133_v16 = vmul.f32 0.01, %v1962_v34 }
 0x323   : > { %2260 = vst [vmem:[%s4084_s7 + $0x110] sm:$0xff] %v2196_v47  ;;  %v1887_v12 = vpop.f32.mrf.mxu0 }
 0x324   : > { %vm2038_vm8 = vcmp.ge.f32.partialorder %v1886_v50, 0.0  ;;  %v2102_v26 = vmul.f32 0.01, %v1886_v50  ;;  %v1888_v57 = vadd.f32 %v1887_v12, %v4077_v38  ;;  %v2197_v25 = vsel %vm2069_vm7, %v1962_v34, %v2133_v16 }
 0x325   : > { %2261 = vst [vmem:[%s4084_s7 + $0x118] sm:$0xff] %v2197_v25  ;;  %v1889_v32 = vpop.f32.mrf.mxu0 }
 0x326   : > { %v2166_v55 = vsel %vm2038_vm8, %v1886_v50, %v2102_v26  ;;  %vm2039_vm9 = vcmp.ge.f32.partialorder %v1888_v57, 0.0  ;;  %v2103_v42 = vmul.f32 0.01, %v1888_v57  ;;  %v1890_v9 = vadd.f32 %v1889_v32, %v4074_v52 }
 0x327   : > { %2230 = vst [vmem:[%s4084_s7 + $0x20] sm:$0xff] %v2166_v55  ;;  %v1891_v28 = vpop.f32.mrf.mxu0 }
 0x328   : > { %v2167_v59 = vsel %vm2039_vm9, %v1888_v57, %v2103_v42  ;;  %vm2040_vm10 = vcmp.ge.f32.partialorder %v1890_v9, 0.0  ;;  %v2104_v39 = vmul.f32 0.01, %v1890_v9  ;;  %v1965_v10 = vpop.f32.mrf.mxu1  ;;  %v1892_v29 = vadd.f32 %v1891_v28, %v4077_v38 }
 0x329   : > { %2231 = vst [vmem:[%s4084_s7 + $0x28] sm:$0xff] %v2167_v59  ;;  %v1966_v11 = vadd.f32 %v1965_v10, %v4074_v52 }
 0x32a   : > { %v2168_v37 = vsel %vm2040_vm10, %v1890_v9, %v2104_v39  ;;  %vm2041_vm11 = vcmp.ge.f32.partialorder %v1892_v29, 0.0  ;;  %v2105_v2 = vmul.f32 0.01, %v1892_v29  ;;  %v1967_v46 = vpop.f32.mrf.mxu1 }
 0x32b   : > { %2232 = vst [vmem:[%s4084_s7 + $0x30] sm:$0xff] %v2168_v37  ;;  %vm2070_vm12 = vcmp.ge.f32.partialorder %v1966_v11, 0.0  ;;  %v2134_v13 = vmul.f32 0.01, %v1966_v11  ;;  %v1968_v45 = vadd.f32 %v1967_v46, %v4077_v38 }
 0x32c   : > { %v2169_v44 = vsel %vm2041_vm11, %v1892_v29, %v2105_v2  ;;  %v1969_v22 = vpop.f32.mrf.mxu1 }
 0x32d   : > { %v2198_v1 = vsel %vm2070_vm12, %v1966_v11, %v2134_v13  ;;  %2233 = vst [vmem:[%s4084_s7 + $0x38] sm:$0xff] %v2169_v44  ;;  %vm2071_vm13 = vcmp.ge.f32.partialorder %v1968_v45, 0.0  ;;  %v2135_v36 = vmul.f32 0.01, %v1968_v45  ;;  %v1970_v58 = vadd.f32 %v1969_v22, %v4074_v52 }
 0x32e   : > { %2262 = vst [vmem:[%s4084_s7 + $0x120] sm:$0xff] %v2198_v1  ;;  %v1971_v33 = vpop.f32.mrf.mxu1 }
 0x32f   : > { %v2199_v31 = vsel %vm2071_vm13, %v1968_v45, %v2135_v36  ;;  %v1895_v41 = vpop.f32.mrf.mxu0  ;;  %vm2072_vm14 = vcmp.ge.f32.partialorder %v1970_v58, 0.0  ;;  %v2136_v15 = vmul.f32 0.01, %v1970_v58  ;;  %v1972_v60 = vadd.f32 %v1971_v33, %v4077_v38 }
 0x330   : > { %2263 = vst [vmem:[%s4084_s7 + $0x128] sm:$0xff] %v2199_v31  ;;  %v1896_v21 = vadd.f32 %v1895_v41, %v4074_v52 }
 0x331   : > { %v2200_v54 = vsel %vm2072_vm14, %v1970_v58, %v2136_v15  ;;  %v1897_v24 = vpop.f32.mrf.mxu0  ;;  %vm2073_vm15 = vcmp.ge.f32.partialorder %v1972_v60, 0.0  ;;  %v2137_v8 = vmul.f32 0.01, %v1972_v60 }
 0x332   : > { %vm2042_vm0 = vcmp.ge.f32.partialorder %v1896_v21, 0.0  ;;  %v2106_v14 = vmul.f32 0.01, %v1896_v21  ;;  %2264 = vst [vmem:[%s4084_s7 + $0x130] sm:$0xff] %v2200_v54  ;;  %v1898_v27 = vadd.f32 %v1897_v24, %v4077_v38 }
 0x333   : > { %v2201_v7 = vsel %vm2073_vm15, %v1972_v60, %v2137_v8  ;;  %v1899_v43 = vpop.f32.mrf.mxu0 }
 0x334   : > { %v2170_v20 = vsel %vm2042_vm0, %v1896_v21, %v2106_v14  ;;  %vm2043_vm1 = vcmp.ge.f32.partialorder %v1898_v27, 0.0  ;;  %v2107_v35 = vmul.f32 0.01, %v1898_v27  ;;  %2265 = vst [vmem:[%s4084_s7 + $0x138] sm:$0xff] %v2201_v7  ;;  %v1900_v18 = vadd.f32 %v1899_v43, %v4074_v52 }
 0x335   : > { %2234 = vst [vmem:[%s4084_s7 + $0x40] sm:$0xff] %v2170_v20  ;;  %v1975_v53 = vpop.f32.mrf.mxu1  ;;  %v1901_v62 = vpop.f32.mrf.mxu0 }
 0x336   : > { %v2171_v19 = vsel %vm2043_vm1, %v1898_v27, %v2107_v35  ;;  %vm2044_vm2 = vcmp.ge.f32.partialorder %v1900_v18, 0.0  ;;  %v2108_v56 = vmul.f32 0.01, %v1900_v18  ;;  %v1976_v5 = vadd.f32 %v1975_v53, %v4074_v52 }
 0x337   : > { %2235 = vst [vmem:[%s4084_s7 + $0x48] sm:$0xff] %v2171_v19  ;;  %v1902_v6 = vadd.f32 %v1901_v62, %v4077_v38  ;;  %v1977_v4 = vpop.f32.mrf.mxu1 }
 0x338   : > { %v2172_v61 = vsel %vm2044_vm2, %v1900_v18, %v2108_v56  ;;  %vm2074_vm3 = vcmp.ge.f32.partialorder %v1976_v5, 0.0  ;;  %v2138_v3 = vmul.f32 0.01, %v1976_v5  ;;  %v1978_v48 = vadd.f32 %v1977_v4, %v4077_v38 }
 0x339   : > { %2236 = vst [vmem:[%s4084_s7 + $0x50] sm:$0xff] %v2172_v61  ;;  %vm2045_vm4 = vcmp.ge.f32.partialorder %v1902_v6, 0.0  ;;  %v2109_v51 = vmul.f32 0.01, %v1902_v6  ;;  %v1979_v40 = vpop.f32.mrf.mxu1 }
 0x33a   : > { %v2202_v17 = vsel %vm2074_vm3, %v1976_v5, %v2138_v3  ;;  %vm2075_vm5 = vcmp.ge.f32.partialorder %v1978_v48, 0.0  ;;  %v2139_v49 = vmul.f32 0.01, %v1978_v48  ;;  %v1905_v63 = vpop.f32.mrf.mxu0  ;;  %v1980_v23 = vadd.f32 %v1979_v40, %v4074_v52 }
 0x33b   : > { %2266 = vst [vmem:[%s4084_s7 + $0x140] sm:$0xff] %v2202_v17  ;;  %v2173_v0 = vsel %vm2045_vm4, %v1902_v6, %v2109_v51  ;;  %v1906_v34 = vadd.f32 %v1905_v63, %v4074_v52  ;;  %v1981_v30 = vpop.f32.mrf.mxu1 }
 0x33c   : > { %2237 = vst [vmem:[%s4084_s7 + $0x58] sm:$0xff] %v2173_v0  ;;  %v2203_v50 = vsel %vm2075_vm5, %v1978_v48, %v2139_v49  ;;  %vm2076_vm6 = vcmp.ge.f32.partialorder %v1980_v23, 0.0  ;;  %v2140_v47 = vmul.f32 0.01, %v1980_v23  ;;  %v1907_v16 = vpop.f32.mrf.mxu0  ;;  %v1982_v12 = vadd.f32 %v1981_v30, %v4077_v38 }
 0x33d   : > { %2267 = vst [vmem:[%s4084_s7 + $0x148] sm:$0xff] %v2203_v50  ;;  %vm2046_vm7 = vcmp.ge.f32.partialorder %v1906_v34, 0.0  ;;  %v2110_v26 = vmul.f32 0.01, %v1906_v34  ;;  %v1908_v57 = vadd.f32 %v1907_v16, %v4077_v38 }
 0x33e   : > { %v2204_v25 = vsel %vm2076_vm6, %v1980_v23, %v2140_v47  ;;  %vm2077_vm8 = vcmp.ge.f32.partialorder %v1982_v12, 0.0  ;;  %v2141_v32 = vmul.f32 0.01, %v1982_v12  ;;  %v1909_v55 = vpop.f32.mrf.mxu0 }
 0x33f   : > { %v2174_v42 = vsel %vm2046_vm7, %v1906_v34, %v2110_v26  ;;  %2268 = vst [vmem:[%s4084_s7 + $0x150] sm:$0xff] %v2204_v25  ;;  %vm2047_vm9 = vcmp.ge.f32.partialorder %v1908_v57, 0.0  ;;  %v2111_v9 = vmul.f32 0.01, %v1908_v57  ;;  %v1910_v28 = vadd.f32 %v1909_v55, %v4074_v52 }
 0x340   : > { %2238 = vst [vmem:[%s4084_s7 + $0x60] sm:$0xff] %v2174_v42  ;;  %v2205_v59 = vsel %vm2077_vm8, %v1982_v12, %v2141_v32  ;;  %v1985_v39 = vpop.f32.mrf.mxu1  ;;  %v1911_v10 = vpop.f32.mrf.mxu0 }
 0x341   : > { %v2175_v29 = vsel %vm2047_vm9, %v1908_v57, %v2111_v9  ;;  %2269 = vst [vmem:[%s4084_s7 + $0x158] sm:$0xff] %v2205_v59  ;;  %vm2048_vm10 = vcmp.ge.f32.partialorder %v1910_v28, 0.0  ;;  %v2112_v11 = vmul.f32 0.01, %v1910_v28  ;;  %v1986_v37 = vadd.f32 %v1985_v39, %v4074_v52 }
 0x342   : > { %2239 = vst [vmem:[%s4084_s7 + $0x68] sm:$0xff] %v2175_v29  ;;  %v1912_v2 = vadd.f32 %v1911_v10, %v4077_v38  ;;  %v1987_v46 = vpop.f32.mrf.mxu1 }
 0x343   : > { %v2176_v13 = vsel %vm2048_vm10, %v1910_v28, %v2112_v11  ;;  %vm2078_vm11 = vcmp.ge.f32.partialorder %v1986_v37, 0.0  ;;  %v2142_v45 = vmul.f32 0.01, %v1986_v37  ;;  %v1988_v44 = vadd.f32 %v1987_v46, %v4077_v38 }
 0x344   : > { %2240 = vst [vmem:[%s4084_s7 + $0x70] sm:$0xff] %v2176_v13  ;;  %vm2049_vm12 = vcmp.ge.f32.partialorder %v1912_v2, 0.0  ;;  %v2113_v22 = vmul.f32 0.01, %v1912_v2  ;;  %v1989_v1 = vpop.f32.mrf.mxu1 }
 0x345   : > { %v2206_v36 = vsel %vm2078_vm11, %v1986_v37, %v2142_v45  ;;  %vm2079_vm13 = vcmp.ge.f32.partialorder %v1988_v44, 0.0  ;;  %v2143_v58 = vmul.f32 0.01, %v1988_v44  ;;  %v1915_v33 = vpop.f32.mrf.mxu0  ;;  %v1990_v31 = vadd.f32 %v1989_v1, %v4074_v52 }
 0x346   : > { %2270 = vst [vmem:[%s4084_s7 + $0x160] sm:$0xff] %v2206_v36  ;;  %v2177_v41 = vsel %vm2049_vm12, %v1912_v2, %v2113_v22  ;;  %v1916_v15 = vadd.f32 %v1915_v33, %v4074_v52  ;;  %v1991_v60 = vpop.f32.mrf.mxu1 }
 0x347   : > { %2241 = vst [vmem:[%s4084_s7 + $0x78] sm:$0xff] %v2177_v41  ;;  %v2207_v21 = vsel %vm2079_vm13, %v1988_v44, %v2143_v58  ;;  %vm2080_vm14 = vcmp.ge.f32.partialorder %v1990_v31, 0.0  ;;  %v2144_v54 = vmul.f32 0.01, %v1990_v31  ;;  %v1917_v24 = vpop.f32.mrf.mxu0  ;;  %v1992_v8 = vadd.f32 %v1991_v60, %v4077_v38 }
 0x348   : > { %2271 = vst [vmem:[%s4084_s7 + $0x168] sm:$0xff] %v2207_v21  ;;  %vm2050_vm15 = vcmp.ge.f32.partialorder %v1916_v15, 0.0  ;;  %v2114_v14 = vmul.f32 0.01, %v1916_v15  ;;  %v1918_v27 = vadd.f32 %v1917_v24, %v4077_v38  ;;  %v1995_v7 = vpop.f32.mrf.mxu1 }
 0x349   : > { %v2208_v43 = vsel %vm2080_vm14, %v1990_v31, %v2144_v54  ;;  %vm2081_vm0 = vcmp.ge.f32.partialorder %v1992_v8, 0.0  ;;  %v2145_v20 = vmul.f32 0.01, %v1992_v8  ;;  %v1919_v35 = vpop.f32.mrf.mxu0  ;;  %v1996_v18 = vadd.f32 %v1995_v7, %v4074_v52 }
 0x34a   : > { %v2178_v53 = vsel %vm2050_vm15, %v1916_v15, %v2114_v14  ;;  %2272 = vst [vmem:[%s4084_s7 + $0x170] sm:$0xff] %v2208_v43  ;;  %vm2051_vm1 = vcmp.ge.f32.partialorder %v1918_v27, 0.0  ;;  %v2115_v62 = vmul.f32 0.01, %v1918_v27  ;;  %v1920_v19 = vadd.f32 %v1919_v35, %v4074_v52  ;;  %v1997_v56 = vpop.f32.mrf.mxu1 }
 0x34b   : > { %2242 = vst [vmem:[%s4084_s7 + $0x80] sm:$0xff] %v2178_v53  ;;  %v2209_v5 = vsel %vm2081_vm0, %v1992_v8, %v2145_v20  ;;  %vm2082_vm2 = vcmp.ge.f32.partialorder %v1996_v18, 0.0  ;;  %v2146_v6 = vmul.f32 0.01, %v1996_v18  ;;  %v1921_v4 = vpop.f32.mrf.mxu0  ;;  %v1998_v61 = vadd.f32 %v1997_v56, %v4077_v38 }
 0x34c   : > { %v2179_v3 = vsel %vm2051_vm1, %v1918_v27, %v2115_v62  ;;  %2273 = vst [vmem:[%s4084_s7 + $0x178] sm:$0xff] %v2209_v5  ;;  %vm2052_vm3 = vcmp.ge.f32.partialorder %v1920_v19, 0.0  ;;  %v2116_v48 = vmul.f32 0.01, %v1920_v19  ;;  %v1922_v51 = vadd.f32 %v1921_v4, %v4077_v38  ;;  %v1999_v40 = vpop.f32.mrf.mxu1 }
 0x34d   : > { %2243 = vst [vmem:[%s4084_s7 + $0x88] sm:$0xff] %v2179_v3  ;;  %v2210_v17 = vsel %vm2082_vm2, %v1996_v18, %v2146_v6  ;;  %vm2083_vm4 = vcmp.ge.f32.partialorder %v1998_v61, 0.0  ;;  %v2147_v49 = vmul.f32 0.01, %v1998_v61  ;;  %v1925_v63 = vpop.f32.mrf.mxu0  ;;  %v2000_v23 = vadd.f32 %v1999_v40, %v4074_v52 }
 0x34e   : > { %v2180_v0 = vsel %vm2052_vm3, %v1920_v19, %v2116_v48  ;;  %2274 = vst [vmem:[%s4084_s7 + $0x180] sm:$0xff] %v2210_v17  ;;  %vm2053_vm5 = vcmp.ge.f32.partialorder %v1922_v51, 0.0  ;;  %v2117_v34 = vmul.f32 0.01, %v1922_v51  ;;  %v1926_v30 = vadd.f32 %v1925_v63, %v4074_v52  ;;  %v2001_v50 = vpop.f32.mrf.mxu1 }
 0x34f   : > { %2244 = vst [vmem:[%s4084_s7 + $0x90] sm:$0xff] %v2180_v0  ;;  %v2211_v47 = vsel %vm2083_vm4, %v1998_v61, %v2147_v49  ;;  %vm2084_vm6 = vcmp.ge.f32.partialorder %v2000_v23, 0.0  ;;  %v2148_v16 = vmul.f32 0.01, %v2000_v23  ;;  %v1927_v12 = vpop.f32.mrf.mxu0  ;;  %v2002_v26 = vadd.f32 %v2001_v50, %v4077_v38 }
 0x350   : > { %v2181_v57 = vsel %vm2053_vm5, %v1922_v51, %v2117_v34  ;;  %2275 = vst [vmem:[%s4084_s7 + $0x188] sm:$0xff] %v2211_v47  ;;  %vm2054_vm7 = vcmp.ge.f32.partialorder %v1926_v30, 0.0  ;;  %v2118_v25 = vmul.f32 0.01, %v1926_v30  ;;  %v1928_v32 = vadd.f32 %v1927_v12, %v4077_v38  ;;  %v2005_v55 = vpop.f32.mrf.mxu1 }
 0x351   : > { %2245 = vst [vmem:[%s4084_s7 + $0x98] sm:$0xff] %v2181_v57  ;;  %v2212_v42 = vsel %vm2084_vm6, %v2000_v23, %v2148_v16  ;;  %vm2085_vm8 = vcmp.ge.f32.partialorder %v2002_v26, 0.0  ;;  %v2149_v9 = vmul.f32 0.01, %v2002_v26  ;;  %v1929_v28 = vpop.f32.mrf.mxu0  ;;  %v2006_v59 = vadd.f32 %v2005_v55, %v4074_v52 }
 0x352   : > { %v2182_v39 = vsel %vm2054_vm7, %v1926_v30, %v2118_v25  ;;  %2276 = vst [vmem:[%s4084_s7 + $0x190] sm:$0xff] %v2212_v42  ;;  %vm2055_vm9 = vcmp.ge.f32.partialorder %v1928_v32, 0.0  ;;  %v2119_v10 = vmul.f32 0.01, %v1928_v32  ;;  %v1930_v29 = vadd.f32 %v1929_v28, %v4074_v52  ;;  %v2007_v11 = vpop.f32.mrf.mxu1 }
 0x353   : > { %2246 = vst [vmem:[%s4084_s7 + $0xa0] sm:$0xff] %v2182_v39  ;;  %v2213_v37 = vsel %vm2085_vm8, %v2002_v26, %v2149_v9  ;;  %vm2086_vm10 = vcmp.ge.f32.partialorder %v2006_v59, 0.0  ;;  %v2150_v2 = vmul.f32 0.01, %v2006_v59  ;;  %v1931_v46 = vpop.f32.mrf.mxu0  ;;  %v2008_v13 = vadd.f32 %v2007_v11, %v4077_v38 }
 0x354   : > { %v2183_v45 = vsel %vm2055_vm9, %v1928_v32, %v2119_v10  ;;  %2277 = vst [vmem:[%s4084_s7 + $0x198] sm:$0xff] %v2213_v37  ;;  %vm2056_vm11 = vcmp.ge.f32.partialorder %v1930_v29, 0.0  ;;  %v2120_v44 = vmul.f32 0.01, %v1930_v29  ;;  %v1932_v22 = vadd.f32 %v1931_v46, %v4077_v38  ;;  %v2009_v1 = vpop.f32.mrf.mxu1 }
 0x355   : > { %2247 = vst [vmem:[%s4084_s7 + $0xa8] sm:$0xff] %v2183_v45  ;;  %v2214_v36 = vsel %vm2086_vm10, %v2006_v59, %v2150_v2  ;;  %vm2087_vm12 = vcmp.ge.f32.partialorder %v2008_v13, 0.0  ;;  %v2151_v58 = vmul.f32 0.01, %v2008_v13  ;;  %v1935_v33 = vpop.f32.mrf.mxu0  ;;  %v2010_v31 = vadd.f32 %v2009_v1, %v4074_v52 }
 0x356   : > { %v2184_v41 = vsel %vm2056_vm11, %v1930_v29, %v2120_v44  ;;  %2278 = vst [vmem:[%s4084_s7 + $0x1a0] sm:$0xff] %v2214_v36  ;;  %vm2057_vm13 = vcmp.ge.f32.partialorder %v1932_v22, 0.0  ;;  %v2121_v15 = vmul.f32 0.01, %v1932_v22  ;;  %v1936_v60 = vadd.f32 %v1935_v33, %v4074_v52  ;;  %v2011_v21 = vpop.f32.mrf.mxu1 }
 0x357   : > { %2248 = vst [vmem:[%s4084_s7 + $0xb0] sm:$0xff] %v2184_v41  ;;  %v2215_v54 = vsel %vm2087_vm12, %v2008_v13, %v2151_v58  ;;  %vm2088_vm14 = vcmp.ge.f32.partialorder %v2010_v31, 0.0  ;;  %v2152_v24 = vmul.f32 0.01, %v2010_v31  ;;  %v1937_v8 = vpop.f32.mrf.mxu0  ;;  %v2012_v14 = vadd.f32 %v2011_v21, %v4077_v38 }
 0x358   : > { %v2185_v27 = vsel %vm2057_vm13, %v1932_v22, %v2121_v15  ;;  %2279 = vst [vmem:[%s4084_s7 + $0x1a8] sm:$0xff] %v2215_v54  ;;  %vm2058_vm15 = vcmp.ge.f32.partialorder %v1936_v60, 0.0  ;;  %v2122_v7 = vmul.f32 0.01, %v1936_v60  ;;  %v1938_v43 = vadd.f32 %v1937_v8, %v4077_v38  ;;  %v2015_v20 = vpop.f32.mrf.mxu1 }
 0x359   : > { %2249 = vst [vmem:[%s4084_s7 + $0xb8] sm:$0xff] %v2185_v27  ;;  %v2216_v35 = vsel %vm2088_vm14, %v2010_v31, %v2152_v24  ;;  %vm2089_vm0 = vcmp.ge.f32.partialorder %v2012_v14, 0.0  ;;  %v2153_v18 = vmul.f32 0.01, %v2012_v14  ;;  %v1939_v53 = vpop.f32.mrf.mxu0  ;;  %v2016_v62 = vadd.f32 %v2015_v20, %v4074_v52 }
 0x35a   : > { %v2186_v19 = vsel %vm2058_vm15, %v1936_v60, %v2122_v7  ;;  %2280 = vst [vmem:[%s4084_s7 + $0x1b0] sm:$0xff] %v2216_v35  ;;  %vm2059_vm1 = vcmp.ge.f32.partialorder %v1938_v43, 0.0  ;;  %v2123_v56 = vmul.f32 0.01, %v1938_v43  ;;  %v1940_v5 = vadd.f32 %v1939_v53, %v4074_v52  ;;  %v2017_v6 = vpop.f32.mrf.mxu1 }
 0x35b   : > { %2250 = vst [vmem:[%s4084_s7 + $0xc0] sm:$0xff] %v2186_v19  ;;  %v2217_v4 = vsel %vm2089_vm0, %v2012_v14, %v2153_v18  ;;  %vm2090_vm2 = vcmp.ge.f32.partialorder %v2016_v62, 0.0  ;;  %v2154_v61 = vmul.f32 0.01, %v2016_v62  ;;  %v1941_v3 = vpop.f32.mrf.mxu0  ;;  %v2018_v48 = vadd.f32 %v2017_v6, %v4077_v38 }
 0x35c   : > { %v2187_v51 = vsel %vm2059_vm1, %v1938_v43, %v2123_v56  ;;  %2281 = vst [vmem:[%s4084_s7 + $0x1b8] sm:$0xff] %v2217_v4  ;;  %vm2060_vm3 = vcmp.ge.f32.partialorder %v1940_v5, 0.0  ;;  %v2124_v40 = vmul.f32 0.01, %v1940_v5  ;;  %v1942_v17 = vadd.f32 %v1941_v3, %v4077_v38  ;;  %v2019_v49 = vpop.f32.mrf.mxu1 }
 0x35d   : > { %2251 = vst [vmem:[%s4084_s7 + $0xc8] sm:$0xff] %v2187_v51  ;;  %v2218_v63 = vsel %vm2090_vm2, %v2016_v62, %v2154_v61  ;;  %vm2091_vm4 = vcmp.ge.f32.partialorder %v2018_v48, 0.0  ;;  %v2155_v23 = vmul.f32 0.01, %v2018_v48  ;;  %v1945_v0 = vpop.f32.mrf.mxu0  ;;  %v2020_v34 = vadd.f32 %v2019_v49, %v4074_v52 }
 0x35e   : > { %v2188_v30 = vsel %vm2060_vm3, %v1940_v5, %v2124_v40  ;;  %2282 = vst [vmem:[%s4084_s7 + $0x1c0] sm:$0xff] %v2218_v63  ;;  %vm2061_vm5 = vcmp.ge.f32.partialorder %v1942_v17, 0.0  ;;  %v2125_v50 = vmul.f32 0.01, %v1942_v17  ;;  %v1946_v47 = vadd.f32 %v1945_v0, %v4074_v52  ;;  %v2021_v16 = vpop.f32.mrf.mxu1 }
 0x35f   : > { %2252 = vst [vmem:[%s4084_s7 + $0xd0] sm:$0xff] %v2188_v30  ;;  %v2219_v12 = vsel %vm2091_vm4, %v2018_v48, %v2155_v23  ;;  %vm2092_vm6 = vcmp.ge.f32.partialorder %v2020_v34, 0.0  ;;  %v2156_v26 = vmul.f32 0.01, %v2020_v34  ;;  %v1947_v57 = vpop.f32.mrf.mxu0  ;;  %v2022_v25 = vadd.f32 %v2021_v16, %v4077_v38 }
 0x360   : > { %v2189_v32 = vsel %vm2061_vm5, %v1942_v17, %v2125_v50  ;;  %2283 = vst [vmem:[%s4084_s7 + $0x1c8] sm:$0xff] %v2219_v12  ;;  %vm2062_vm7 = vcmp.ge.f32.partialorder %v1946_v47, 0.0  ;;  %v2126_v55 = vmul.f32 0.01, %v1946_v47  ;;  %v1948_v42 = vadd.f32 %v1947_v57, %v4077_v38  ;;  %v2025_v9 = vpop.f32.mrf.mxu1 }
 0x361   : > { %2253 = vst [vmem:[%s4084_s7 + $0xd8] sm:$0xff] %v2189_v32  ;;  %v2220_v28 = vsel %vm2092_vm6, %v2020_v34, %v2156_v26  ;;  %vm2093_vm8 = vcmp.ge.f32.partialorder %v2022_v25, 0.0  ;;  %v2157_v59 = vmul.f32 0.01, %v2022_v25  ;;  %v1949_v39 = vpop.f32.mrf.mxu0  ;;  %v2026_v10 = vadd.f32 %v2025_v9, %v4074_v52 }
 0x362   : > { %v2190_v29 = vsel %vm2062_vm7, %v1946_v47, %v2126_v55  ;;  %2284 = vst [vmem:[%s4084_s7 + $0x1d0] sm:$0xff] %v2220_v28  ;;  %vm2063_vm9 = vcmp.ge.f32.partialorder %v1948_v42, 0.0  ;;  %v2127_v11 = vmul.f32 0.01, %v1948_v42  ;;  %v1950_v37 = vadd.f32 %v1949_v39, %v4074_v52  ;;  %v2027_v2 = vpop.f32.mrf.mxu1 }
 0x363   : > { %2254 = vst [vmem:[%s4084_s7 + $0xe0] sm:$0xff] %v2190_v29  ;;  %v2221_v46 = vsel %vm2093_vm8, %v2022_v25, %v2157_v59  ;;  %vm2094_vm10 = vcmp.ge.f32.partialorder %v2026_v10, 0.0  ;;  %v2158_v13 = vmul.f32 0.01, %v2026_v10  ;;  %v1951_v45 = vpop.f32.mrf.mxu0  ;;  %v2028_v44 = vadd.f32 %v2027_v2, %v4077_v38 }
 0x364   : > { %v2191_v22 = vsel %vm2063_vm9, %v1948_v42, %v2127_v11  ;;  %2285 = vst [vmem:[%s4084_s7 + $0x1d8] sm:$0xff] %v2221_v46  ;;  %vm2064_vm11 = vcmp.ge.f32.partialorder %v1950_v37, 0.0  ;;  %v2128_v1 = vmul.f32 0.01, %v1950_v37  ;;  %v1952_v36 = vadd.f32 %v1951_v45, %v4077_v38  ;;  %v2029_v58 = vpop.f32.mrf.mxu1 }
 0x365   : > { %2255 = vst [vmem:[%s4084_s7 + $0xe8] sm:$0xff] %v2191_v22  ;;  %v2222_v33 = vsel %vm2094_vm10, %v2026_v10, %v2158_v13  ;;  %vm2095_vm12 = vcmp.ge.f32.partialorder %v2028_v44, 0.0  ;;  %v2159_v31 = vmul.f32 0.01, %v2028_v44  ;;  %v2030_v41 = vadd.f32 %v2029_v58, %v4074_v52 }
 0x366   : > { %v2192_v15 = vsel %vm2064_vm11, %v1950_v37, %v2128_v1  ;;  %2286 = vst [vmem:[%s4084_s7 + $0x1e0] sm:$0xff] %v2222_v33  ;;  %vm2065_vm13 = vcmp.ge.f32.partialorder %v1952_v36, 0.0  ;;  %v2129_v60 = vmul.f32 0.01, %v1952_v36  ;;  %v2031_v21 = vpop.f32.mrf.mxu1 }
 0x367   : > { %2256 = vst [vmem:[%s4084_s7 + $0xf0] sm:$0xff] %v2192_v15  ;;  %v2223_v54 = vsel %vm2095_vm12, %v2028_v44, %v2159_v31  ;;  %vm2096_vm14 = vcmp.ge.f32.partialorder %v2030_v41, 0.0  ;;  %v2160_v24 = vmul.f32 0.01, %v2030_v41  ;;  %v2032_v8 = vadd.f32 %v2031_v21, %v4077_v38 }
 0x368   : > { %v2193_v14 = vsel %vm2065_vm13, %v1952_v36, %v2129_v60  ;;  %2287 = vst [vmem:[%s4084_s7 + $0x1e8] sm:$0xff] %v2223_v54 }
 0x369   : > { %2257 = vst [vmem:[%s4084_s7 + $0xf8] sm:$0xff] %v2193_v14  ;;  %v2224_v52 = vsel %vm2096_vm14, %v2030_v41, %v2160_v24  ;;  %vm2097_vm15 = vcmp.ge.f32.partialorder %v2032_v8, 0.0  ;;  %v2161_v27 = vmul.f32 0.01, %v2032_v8 }
 0x36a   : > { %2288 = vst [vmem:[%s4084_s7 + $0x1f0] sm:$0xff] %v2224_v52 }
 0x36b   : > { %v2225_v7 = vsel %vm2097_vm15, %v2032_v8, %v2161_v27 }
 0x36c   : > { %2289 = vst [vmem:[%s4084_s7 + $0x1f8] sm:$0xff] %v2225_v7 }
 0x36d   : > { %2942 = shalt.err (!%p2939_p2)
}
 0x36e   : > { %s2943_s16 = scalar_lea.hbm %s4214_s21, 8192  ;;  %s2947_s23 = scalar_lea.hbm %s4271_s5, 16384 }
 0x36f   : > { %p2944_p6 = scmp.ne.s32.totalorder %s4214_s21, %s2943_s16  ;;  %p2948_p0 = scmp.lt.s32.totalorder %s4214_s21, %s4271_s5 }
 0x370   : > { %p2949_p10 = scmp.lt.s32.totalorder %s2947_s23, %s2943_s16 }
 0x371   : > { %p2945_p11 = pnand %p2944_p6, %p4422_p7 }
 0x372   : > { %p2950_p5 = por %p2949_p10, %p2948_p0 }
 0x373   : > { %p2946_p1 = pneg %p2945_p11 }
 0x375   : > { %p2951_p3 = pnand %p2950_p5, %p2946_p1 }
 0x377   : > { %2954 = shalt.err (!%p2951_p3)
}
 0x378   : > { %s3023_s6 = smov 256   ;;  %s3024_s7 = smov 16  }
 0x379   : > { %2658 = dma.vmem_to_hbm [thread:$0]  (%p4422_p7), %s4216_s17, 8192, %s4214_s21, %s2291_s28, %s3023_s6, %s3023_s6, %s3024_s7  }
 0x37a PF: > { %s4423_s10 = sld [smem:[#allocation14_spill]]  ;;  %s2324_s25 = sand.u32 1, %s2993_s18  }
 0x37b   : > { %s4424_s12 = sld [smem:[#allocation13_spill]]  ;;  %s2325_s8 = scalar_lea.sflag [#allocation5], %s2324_s25 }
 0x380   : > { %p4425_p8 = scmp.ne.s32.totalorder %s4423_s10, 0 }
 0x381   : > { %p4426_p9 = scmp.ge.s32.totalorder %s4424_s12, 2 }
 0x383   : > { %p2672_p12 = pnand %p4426_p9, %p4425_p8 }
 0x385   : > { %p2673_p13 = pneg %p2672_p12 }
 0x387   : > { %2988 = dma.done.wait (%p2673_p13), %s2325_s8, 8192  }
 0x388   : > { %2990 = vsyncadd (%p2673_p13), %s2325_s8, 4294959104  ;;  %s22_s23 = sadd.s32 1, %s4424_s12   ;;  %s4427_s18 = smov %s2997_s19 }
 0x389   : > { %p19_p4 = scmp.ge.s32.totalorder %s22_s23, 4   ;;  %s4428_s19 = smov %s3001_s20 }
 0x38a   : > { %s4429_s20 = smov %s3178_s14  ;;  %s4430_s21 = smov %s3009_s22 }
 0x38b   : > { %s4431_s22 = smov %s4433_s11  ;;  %21 = sbr.rel (!%p19_p4) target bundleno = 9 (0x9), region = 101 }
 0x390   :  { %2330 = vsyncpa [#allocation4], 1 }
 0x391   :  { %2332 = vsyncpa [#allocation4 + $0x1], 1 }
 0x392   :  { %2333 = vsyncpa [#allocation7], 1 }
 0x393   :  { %2334 = vsyncpa [#allocation5], 1 }
 0x394   :  { %2336 = vsyncpa [#allocation5 + $0x1], 1 }

// kernel: tpu_custom_call.1
= control target key start
LH: loop header
LB: loop body
LE: loop exit
PB: predicated region body
PF: predicated region fallthrough
CT: control target
= control target key end

     0   :  { %s4266_s0 = inlined_call_operand.hbm [shape: f32[2,256,256], index: 0, kind: input, shape index: {}]   ;;  %s4267_s1 = inlined_call_operand.hbm [shape: f32[1,256], index: 1, kind: input, shape index: {}]   ;;  %s4268_s2 = inlined_call_operand.vmem [shape: f32[1,256], index: 2, kind: input, shape index: {}]   ;;  %s4269_s3 = inlined_call_operand.hbm [shape: bf16[256,256], index: 3, kind: input, shape index: {}]   ;;  %s4270_s4 = inlined_call_operand.vmem [shape: f32[1,256], index: 4, kind: input, shape index: {}]   ;;  %s4271_s5 = inlined_call_operand.hbm [shape: f32[2,256,256], index: 5, kind: output, shape index: {}]  }
   0x1   :  { %4322 = sst [smem:[#allocation44_spill]] %s4267_s1 }
   0x2   :  { %10 = vsyncpa [#allocation4], 0 }
   0x3   :  { %12 = vsyncpa [#allocation4 + $0x1], 0 }
   0x4   :  { %13 = vsyncpa [#allocation7], 0 }
   0x5   :  { %14 = vsyncpa [#allocation5], 0 }
   0x6   :  { %16 = vsyncpa [#allocation5 + $0x1], 0  ;;  %s3055_s18 = smov 0   ;;  %s3057_s19 = smov 0  }
   0x7   :  { %s3059_s20 = smov 0   ;;  %s3061_s21 = smov 0  }
   0x8   :  { %s3063_s22 = smov 0   ;;  %s3065_s23 = smov 0  }
   0x9 LB: > { %4323 = sst [smem:[#allocation13_spill]] %s3013_s23  ;;  %s2434_s24 = sadd.s32 4294967295, %s3013_s23   ;;  %s3013_s23 = sphi %s3065_s23, %s22_s23   ;;  %s3009_s22 = sphi %s3063_s22, %s4431_s22   ;;  %s3005_s21 = sphi %s3061_s21, %s4430_s21   ;;  %s3001_s20 = sphi %s3059_s20, %s4429_s20   ;;  %s2997_s19 = sphi %s3057_s19, %s4428_s19   ;;  %s2993_s18 = sphi %s3055_s18, %s4427_s18  }
   0xa   : > { %s2435_s25 = sadd.s32 4294967294, %s3013_s23   ;;  %p57_p0 = scmp.ne.s32.totalorder %s3001_s20, %s2997_s19 }
   0xb   : > { %p58_p1 = scmp.eq.s32.totalorder %s3013_s23, 0  ;;  %p63_p2 = scmp.ne.s32.totalorder %s2997_s19, %s2993_s18 }
   0xc   : > { %p3093_p3 = scmp.eq.s32.totalorder %s2434_s24, 0  ;;  %p185_p4 = scmp.eq.s32.totalorder %s2434_s24, 1 }
   0xd   : > { %p3097_p5 = por %p58_p1, %p57_p0  ;;  %p191_p6 = scmp.eq.s32.totalorder %s2435_s25, 1 }
   0xe   : > { %s4324_s27 = scalar_select %p3093_p3, 1, 0 }
   0xf   : > { %p3103_p7 = por %p3093_p3, %p63_p2  ;;  %p3107_p8 = por %p185_p4, %p57_p0 }
  0x10   : > { %p3111_p9 = por %p191_p6, %p63_p2  ;;  %p2436_p10 = scmp.ge.s32.totalorder %s3013_s23, 1 }
  0x11   : > { %s4326_s29 = scalar_select %p3103_p7, 1, 0 }
  0x12   : > { %s4327_s30 = scalar_select %p3107_p8, 1, 0 }
  0x13   : > { %s4328_s6 = scalar_select %p3111_p9, 1, 0 }
  0x14   : > { %p198_p11 = scmp.lt.s32.totalorder %s3013_s23, 3  ;;  %s3015_s8 = smov [#allocation6]  }
  0x15   : > { %4329 = sst [smem:[#allocation14_spill]] %s4328_s6  ;;  %s211_s9 = sshll.u32 %s3015_s8, 4  ;;  %s212_s9 = int_to_ptr.vmem [resolvable:$true] %s211_s9 }
  0x16   : > { %p3118_p13 = pnand %p2436_p10, %p198_p11  ;;  %p2677_p1 = scmp.lt.s32.totalorder %s3013_s23, 2 }
  0x17   : > { %s3016_s11 = smov [#allocation8]   ;;  %s2860_s14 = scalar_lea.vmem %s212_s9, 32 }
  0x18   : > { %s4330_s7 = scalar_select %p3118_p13, 1, 0 }
  0x19   : > { %p2660_p0 = pneg %p3118_p13  ;;  %p3127_p4 = pnand %p2677_p1, %p3097_p5 }
  0x1a   : > { %s227_s12 = sshll.u32 %s3016_s11, 4  ;;  %p2861_p10 = scmp.ne.s32.totalorder %s212_s9, %s2860_s14  ;;  %s228_s12 = int_to_ptr.vmem [resolvable:$true] %s227_s12 }
  0x1b   : > { %s4331_s10 = scalar_select %p3127_p4, 1, 0 }
  0x1c   : > { %p3133_p2 = pnand %p2660_p0, %p3093_p3  ;;  %p2868_p1 = scmp.lt.s32.totalorder %s212_s9, %s212_s9 }
  0x1d   : > { %p2869_p12 = scmp.lt.s32.totalorder %s2860_s14, %s2860_s14 }
  0x1e   : > { %p2851_p6 = pneg %p3133_p2 }
  0x1f   : > { %p2870_p9 = por %p2869_p12, %p2868_p1 }
  0x20   : > { %p2863_p5 = pnand %p2861_p10, %p2851_p6 }
  0x22   : > { %p2864_p11 = pneg %p2863_p5 }
  0x24   : > { %p2871_p8 = pnand %p2870_p9, %p2864_p11 }
  0x26   : > { %2874 = shalt.err (!%p2871_p8)
}
  0x27   : > { %s4333_s1 = sld [smem:[#allocation44_spill]]  ;;  %s2886_s17 = scalar_lea.vmem %s228_s12, 4096 }
  0x28   : > { %p2887_p0 = scmp.ne.s32.totalorder %s228_s12, %s2886_s17  ;;  %p2894_p10 = scmp.lt.s32.totalorder %s228_s12, %s228_s12 }
  0x29   : > { %p2895_p5 = scmp.lt.s32.totalorder %s2886_s17, %s2886_s17 }
  0x2a   : > { %p2889_p3 = pnand %p2887_p0, %p2851_p6 }
  0x2b   : > { %p2896_p13 = por %p2895_p5, %p2894_p10 }
  0x2c   : > { %p2890_p7 = pneg %p2889_p3 }
  0x2d   : > { %2663 = dma.hbm_to_vmem [thread:$0]  (!%p3133_p2), %s4333_s1, 32, %s212_s9, [#allocation7]  }
  0x2e   : > { %p2897_p4 = pnand %p2896_p13, %p2890_p7 }
  0x30   : > { %2900 = shalt.err (!%p2897_p4)
}
  0x31   : > { %s3017_s24 = smov 128   ;;  %s3018_s25 = smov 8  }
  0x32   : > { %2666 = dma.hbm_to_vmem [thread:$0]  (!%p3133_p2), %s4269_s3, 4096, %s228_s12, [#allocation7], %s3017_s24, %s3017_s24, %s3018_s25  }
  0x33   : > { %s249_s9 = sand.u32 1, %s3001_s20   ;;  %s41_s11 = sadd.s32 1, %s3009_s22 }
  0x34   : > { %s2441_s14 = sshll.u32 %s249_s9, 9  ;;  %p43_p3 = scmp.ge.s32.totalorder %s41_s11, 2 }
  0x35   : > { %s2550_s15 = sshll.u32 %s3009_s22, 13  ;;  %s253_s16 = scalar_lea.vmem [#allocation3], %s2441_s14 }
  0x36   : > { %s262_s17 = sshll.u32 %s253_s16, 4  ;;  %s4433_s11 = smov (%p43_p3, %s41_s11), 0  ;;  %s263_s17 = int_to_ptr.vmem [resolvable:$true] %s262_s17 }
  0x37   : > { %s261_s23 = scalar_lea.hbm %s4266_s0, %s2550_s15  ;;  %s45_s13 = ssub.s32 %s3009_s22, %s4433_s11 }
  0x38   : > { %p3165_p7 = scmp.eq.s32.totalorder %s45_s13, 0  ;;  %s250_s12 = scalar_lea.sflag [#allocation4], %s249_s9 }
  0x39   : > { %p4335_p8 = scmp.ne.s32.totalorder %s4331_s10, 0  ;;  %s2914_s24 = scalar_lea.vmem %s263_s17, 8192 }
  0x3a   : > { %p2915_p12 = scmp.ne.s32.totalorder %s263_s17, %s2914_s24  ;;  %s3019_s25 = smov [#allocation3]  }
  0x3b   : > { %p2903_p9 = pneg %p4335_p8  ;;  %s2919_s28 = sshll.u32 %s3019_s25, 4  ;;  %s2920_s28 = int_to_ptr.vmem [resolvable:$false] %s2919_s28 }
  0x3c   : > { %s2921_s8 = scalar_lea.vmem %s2920_s28, 16384  ;;  %p2922_p2 = scmp.lt.s32.totalorder %s263_s17, %s2920_s28 }
  0x3d   : > { %p2917_p13 = pnand %p2915_p12, %p2903_p9  ;;  %p2923_p6 = scmp.lt.s32.totalorder %s2921_s8, %s2914_s24 }
  0x3f   : > { %p2918_p4 = pneg %p2917_p13  ;;  %p2924_p11 = por %p2923_p6, %p2922_p2 }
  0x41   : > { %p2925_p1 = pnand %p2924_p11, %p2918_p4 }
  0x43   : > { %2928 = shalt.err (!%p2925_p1)
}
  0x44   : > { %s3020_s1 = smov 256   ;;  %s3021_s26 = smov 16  }
  0x45   : > { %2670 = dma.hbm_to_vmem [thread:$0]  (!%p4335_p8), %s261_s23, 8192, %s263_s17, %s250_s12, %s3020_s1, %s3020_s1, %s3021_s26  }
  0x46   : > { %s4336_s9 = sadd.s32 1, %s3001_s20  ;;  %p4337_p0 = scmp.ne.s32.totalorder %s4330_s7, 0 }
  0x47   : > { %s3178_s14 = scalar_select %p3165_p7, %s3001_s20, %s4336_s9  }
  0x48   : > { %274 = sbr.rel (%p4337_p0) target bundleno = 890 (0x37a), region = 40 }
  0x4d   : > { %s3183_s15 = sand.u32 1, %s2997_s19   ;;  %p4338_p10 = scmp.ne.s32.totalorder %s4326_s29, 0 }
  0x4e   : > { %s2445_s16 = sshll.u32 %s3183_s15, 9  ;;  %s277_s13 = scalar_lea.sflag [#allocation4], %s3183_s15 }
  0x4f   : > { %s3189_s24 = scalar_lea.vmem [#allocation3], %s2445_s16 }
  0x50   : > { %2980 = dma.done.wait (%p4338_p10), %s277_s13, 8192  }
  0x51   : > { %2982 = vsyncadd (%p4338_p10), %s277_s13, 4294959104  ;;  %p4339_p5 = scmp.ne.s32.totalorder %s4324_s27, 0 }
  0x53   : > { %2984 = dma.done.wait (%p4339_p5), [#allocation7], 4128  }
  0x54   : > { %2986 = vsyncadd (%p4339_p5), [#allocation7], 4294963168  ;;  %v333_v0 = vld [vmem:[%s3189_s24 + $0x8] sm:$0xff]  ;;  %v332_v1 = vld [vmem:[%s3189_s24] sm:$0xff]  ;;  %s4084_s7 = scalar_lea.vmem [#allocation9], %s2445_s16  ;;  %s2583_s10 = sshll.u32 %s3005_s21, 13 }
  0x55   : > { %428 = vxpose.xlu1.b32.start [1/16] %v333_v0, 128  ;;  %396 = vxpose.xlu0.b32.start [1/16] %v332_v1, 128  ;;  %v335_v2 = vld [vmem:[%s3189_s24 + $0x18] sm:$0xff]  ;;  %v334_v3 = vld [vmem:[%s3189_s24 + $0x10] sm:$0xff]  ;;  %v337_v4 = vld [vmem:[%s3189_s24 + $0x28] sm:$0xff]  ;;  %s2309_s17 = sshll.u32 %s4084_s7, 4  ;;  %s4214_s21 = scalar_lea.hbm %s4271_s5, %s2583_s10  ;;  %s4216_s17 = int_to_ptr.vmem [resolvable:$true] %s2309_s17 }
  0x56   : > { %v336_v5 = vld [vmem:[%s3189_s24 + $0x20] sm:$0xff]  ;;  %v339_v6 = vld [vmem:[%s3189_s24 + $0x38] sm:$0xff]  ;;  %v338_v7 = vld [vmem:[%s3189_s24 + $0x30] sm:$0xff]  ;;  %s2291_s28 = scalar_lea.sflag [#allocation5], %s3183_s15  ;;  %s2929_s8 = scalar_lea.vmem %s4216_s17, 8192 }
  0x57   : > { %v341_v8 = vld [vmem:[%s3189_s24 + $0x48] sm:$0xff]  ;;  %v340_v9 = vld [vmem:[%s3189_s24 + $0x40] sm:$0xff]  ;;  %v343_v10 = vld [vmem:[%s3189_s24 + $0x58] sm:$0xff]  ;;  %p2930_p3 = scmp.ne.s32.totalorder %s4216_s17, %s2929_s8  ;;  %p4422_p7 = scmp.ne.s32.totalorder %s4327_s30, 0 }
  0x58   : > { %v342_v11 = vld [vmem:[%s3189_s24 + $0x50] sm:$0xff]  ;;  %v345_v12 = vld [vmem:[%s3189_s24 + $0x68] sm:$0xff]  ;;  %v344_v13 = vld [vmem:[%s3189_s24 + $0x60] sm:$0xff]  ;;  %s3022_s1 = smov [#allocation9]  }
  0x59   : > { %429 = vxpose.xlu1.b32.cont [2/16] %v335_v2, 128  ;;  %397 = vxpose.xlu0.b32.cont [2/16] %v334_v3, 128  ;;  %v347_v14 = vld [vmem:[%s3189_s24 + $0x78] sm:$0xff]  ;;  %v346_v15 = vld [vmem:[%s3189_s24 + $0x70] sm:$0xff]  ;;  %v349_v16 = vld [vmem:[%s3189_s24 + $0x88] sm:$0xff]  ;;  %p2931_p8 = pnand %p2930_p3, %p4422_p7  ;;  %s2933_s26 = sshll.u32 %s3022_s1, 4  ;;  %s2934_s26 = int_to_ptr.vmem [resolvable:$false] %s2933_s26 }
  0x5a   : > { %v348_v17 = vld [vmem:[%s3189_s24 + $0x80] sm:$0xff]  ;;  %v351_v18 = vld [vmem:[%s3189_s24 + $0x98] sm:$0xff]  ;;  %v350_v19 = vld [vmem:[%s3189_s24 + $0x90] sm:$0xff]  ;;  %s2935_s9 = scalar_lea.vmem %s2934_s26, 16384  ;;  %p2936_p12 = scmp.lt.s32.totalorder %s4216_s17, %s2934_s26 }
  0x5b   : > { %v353_v20 = vld [vmem:[%s3189_s24 + $0xa8] sm:$0xff]  ;;  %v352_v21 = vld [vmem:[%s3189_s24 + $0xa0] sm:$0xff]  ;;  %v355_v22 = vld [vmem:[%s3189_s24 + $0xb8] sm:$0xff]  ;;  %p2932_p9 = pneg %p2931_p8  ;;  %p2937_p13 = scmp.lt.s32.totalorder %s2935_s9, %s2929_s8 }
  0x5c   : > { %v354_v23 = vld [vmem:[%s3189_s24 + $0xb0] sm:$0xff]  ;;  %v357_v24 = vld [vmem:[%s3189_s24 + $0xc8] sm:$0xff]  ;;  %v356_v25 = vld [vmem:[%s3189_s24 + $0xc0] sm:$0xff] }
  0x5d   : > { %430 = vxpose.xlu1.b32.cont [3/16] %v337_v4, 128  ;;  %398 = vxpose.xlu0.b32.cont [3/16] %v336_v5, 128  ;;  %v359_v26 = vld [vmem:[%s3189_s24 + $0xd8] sm:$0xff]  ;;  %v358_v27 = vld [vmem:[%s3189_s24 + $0xd0] sm:$0xff]  ;;  %v361_v28 = vld [vmem:[%s3189_s24 + $0xe8] sm:$0xff]  ;;  %p2938_p4 = por %p2937_p13, %p2936_p12 }
  0x5e   : > { %v360_v29 = vld [vmem:[%s3189_s24 + $0xe0] sm:$0xff]  ;;  %v363_v30 = vld [vmem:[%s3189_s24 + $0xf8] sm:$0xff]  ;;  %v362_v31 = vld [vmem:[%s3189_s24 + $0xf0] sm:$0xff] }
  0x5f   : > { %v365_v32 = vld [vmem:[%s3189_s24 + $0x108] sm:$0xff]  ;;  %v364_v33 = vld [vmem:[%s3189_s24 + $0x100] sm:$0xff]  ;;  %v367_v34 = vld [vmem:[%s3189_s24 + $0x118] sm:$0xff]  ;;  %p2939_p2 = pnand %p2938_p4, %p2932_p9 }
  0x60   : > { %v366_v35 = vld [vmem:[%s3189_s24 + $0x110] sm:$0xff]  ;;  %v369_v36 = vld [vmem:[%s3189_s24 + $0x128] sm:$0xff]  ;;  %v368_v37 = vld [vmem:[%s3189_s24 + $0x120] sm:$0xff] }
  0x61   : > { %431 = vxpose.xlu1.b32.cont [4/16] %v339_v6, 128  ;;  %399 = vxpose.xlu0.b32.cont [4/16] %v338_v7, 128  ;;  %v371_v38 = vld [vmem:[%s3189_s24 + $0x138] sm:$0xff]  ;;  %v370_v39 = vld [vmem:[%s3189_s24 + $0x130] sm:$0xff]  ;;  %v373_v40 = vld [vmem:[%s3189_s24 + $0x148] sm:$0xff] }
  0x62   : > { %v372_v41 = vld [vmem:[%s3189_s24 + $0x140] sm:$0xff]  ;;  %v375_v42 = vld [vmem:[%s3189_s24 + $0x158] sm:$0xff]  ;;  %v374_v43 = vld [vmem:[%s3189_s24 + $0x150] sm:$0xff] }
  0x63   : > { %v377_v44 = vld [vmem:[%s3189_s24 + $0x168] sm:$0xff]  ;;  %v376_v45 = vld [vmem:[%s3189_s24 + $0x160] sm:$0xff]  ;;  %v379_v46 = vld [vmem:[%s3189_s24 + $0x178] sm:$0xff] }
  0x64   : > { %v378_v47 = vld [vmem:[%s3189_s24 + $0x170] sm:$0xff]  ;;  %v381_v48 = vld [vmem:[%s3189_s24 + $0x188] sm:$0xff]  ;;  %v380_v49 = vld [vmem:[%s3189_s24 + $0x180] sm:$0xff] }
  0x65   : > { %432 = vxpose.xlu1.b32.cont [5/16] %v341_v8, 128  ;;  %400 = vxpose.xlu0.b32.cont [5/16] %v340_v9, 128  ;;  %v383_v50 = vld [vmem:[%s3189_s24 + $0x198] sm:$0xff]  ;;  %v382_v51 = vld [vmem:[%s3189_s24 + $0x190] sm:$0xff]  ;;  %v385_v52 = vld [vmem:[%s3189_s24 + $0x1a8] sm:$0xff] }
  0x66   : > { %v384_v53 = vld [vmem:[%s3189_s24 + $0x1a0] sm:$0xff]  ;;  %v387_v54 = vld [vmem:[%s3189_s24 + $0x1b8] sm:$0xff]  ;;  %v386_v55 = vld [vmem:[%s3189_s24 + $0x1b0] sm:$0xff] }
  0x67   : > { %v389_v56 = vld [vmem:[%s3189_s24 + $0x1c8] sm:$0xff]  ;;  %v388_v57 = vld [vmem:[%s3189_s24 + $0x1c0] sm:$0xff]  ;;  %v391_v58 = vld [vmem:[%s3189_s24 + $0x1d8] sm:$0xff] }
  0x68   : > { %v390_v59 = vld [vmem:[%s3189_s24 + $0x1d0] sm:$0xff]  ;;  %v393_v60 = vld [vmem:[%s3189_s24 + $0x1e8] sm:$0xff]  ;;  %v392_v61 = vld [vmem:[%s3189_s24 + $0x1e0] sm:$0xff] }
  0x69   : > { %433 = vxpose.xlu1.b32.cont [6/16] %v343_v10, 128  ;;  %401 = vxpose.xlu0.b32.cont [6/16] %v342_v11, 128  ;;  %v395_v62 = vld [vmem:[%s3189_s24 + $0x1f8] sm:$0xff]  ;;  %v394_v63 = vld [vmem:[%s3189_s24 + $0x1f0] sm:$0xff] }
  0x6d   : > { %434 = vxpose.xlu1.b32.cont [7/16] %v345_v12, 128  ;;  %402 = vxpose.xlu0.b32.cont [7/16] %v344_v13, 128 }
  0x71   : > { %435 = vxpose.xlu1.b32.cont [8/16] %v347_v14, 128  ;;  %403 = vxpose.xlu0.b32.cont [8/16] %v346_v15, 128 }
  0x75   : > { %436 = vxpose.xlu1.b32.cont [9/16] %v349_v16, 128  ;;  %404 = vxpose.xlu0.b32.cont [9/16] %v348_v17, 128 }
  0x79   : > { %437 = vxpose.xlu1.b32.cont [10/16] %v351_v18, 128  ;;  %405 = vxpose.xlu0.b32.cont [10/16] %v350_v19, 128 }
  0x7d   : > { %438 = vxpose.xlu1.b32.cont [11/16] %v353_v20, 128  ;;  %406 = vxpose.xlu0.b32.cont [11/16] %v352_v21, 128 }
  0x81   : > { %439 = vxpose.xlu1.b32.cont [12/16] %v355_v22, 128  ;;  %407 = vxpose.xlu0.b32.cont [12/16] %v354_v23, 128 }
  0x85   : > { %440 = vxpose.xlu1.b32.cont [13/16] %v357_v24, 128  ;;  %408 = vxpose.xlu0.b32.cont [13/16] %v356_v25, 128 }
  0x89   : > { %441 = vxpose.xlu1.b32.cont [14/16] %v359_v26, 128  ;;  %409 = vxpose.xlu0.b32.cont [14/16] %v358_v27, 128 }
  0x8d   : > { %442 = vxpose.xlu1.b32.cont [15/16] %v361_v28, 128  ;;  %410 = vxpose.xlu0.b32.cont [15/16] %v360_v29, 128 }
  0x91   : > { %443 = vxpose.xlu1.b32.end [16/16] %v363_v30, 128  ;;  %411 = vxpose.xlu0.b32.end [16/16] %v362_v31, 128 }
  0x95   : > { %492 = vxpose.xlu1.b32.start [1/16] %v365_v32, 128  ;;  %460 = vxpose.xlu0.b32.start [1/16] %v364_v33, 128 }
  0x99   : > { %493 = vxpose.xlu1.b32.cont [2/16] %v367_v34, 128  ;;  %461 = vxpose.xlu0.b32.cont [2/16] %v366_v35, 128 }
  0x9d   : > { %494 = vxpose.xlu1.b32.cont [3/16] %v369_v36, 128  ;;  %462 = vxpose.xlu0.b32.cont [3/16] %v368_v37, 128 }
  0xa1   : > { %495 = vxpose.xlu1.b32.cont [4/16] %v371_v38, 128  ;;  %463 = vxpose.xlu0.b32.cont [4/16] %v370_v39, 128 }
  0xa5   : > { %496 = vxpose.xlu1.b32.cont [5/16] %v373_v40, 128  ;;  %464 = vxpose.xlu0.b32.cont [5/16] %v372_v41, 128 }
  0xa9   : > { %497 = vxpose.xlu1.b32.cont [6/16] %v375_v42, 128  ;;  %465 = vxpose.xlu0.b32.cont [6/16] %v374_v43, 128 }
  0xad   : > { %498 = vxpose.xlu1.b32.cont [7/16] %v377_v44, 128  ;;  %466 = vxpose.xlu0.b32.cont [7/16] %v376_v45, 128 }
  0xb1   : > { %499 = vxpose.xlu1.b32.cont [8/16] %v379_v46, 128  ;;  %467 = vxpose.xlu0.b32.cont [8/16] %v378_v47, 128 }
  0xb5   : > { %500 = vxpose.xlu1.b32.cont [9/16] %v381_v48, 128  ;;  %468 = vxpose.xlu0.b32.cont [9/16] %v380_v49, 128 }
  0xb9   : > { %501 = vxpose.xlu1.b32.cont [10/16] %v383_v50, 128  ;;  %469 = vxpose.xlu0.b32.cont [10/16] %v382_v51, 128 }
  0xbd   : > { %502 = vxpose.xlu1.b32.cont [11/16] %v385_v52, 128  ;;  %470 = vxpose.xlu0.b32.cont [11/16] %v384_v53, 128 }
  0xc1   : > { %503 = vxpose.xlu1.b32.cont [12/16] %v387_v54, 128  ;;  %471 = vxpose.xlu0.b32.cont [12/16] %v386_v55, 128 }
  0xc5   : > { %504 = vxpose.xlu1.b32.cont [13/16] %v389_v56, 128  ;;  %472 = vxpose.xlu0.b32.cont [13/16] %v388_v57, 128 }
  0xc9   : > { %505 = vxpose.xlu1.b32.cont [14/16] %v391_v58, 128  ;;  %473 = vxpose.xlu0.b32.cont [14/16] %v390_v59, 128 }
  0xcd   : > { %506 = vxpose.xlu1.b32.cont [15/16] %v393_v60, 128  ;;  %474 = vxpose.xlu0.b32.cont [15/16] %v392_v61, 128 }
  0xd1   : > { %507 = vxpose.xlu1.b32.end [16/16] %v395_v62, 128  ;;  %v3263_v0 = vpop.trf.xlu1  ;;  %475 = vxpose.xlu0.b32.end [16/16] %v394_v63, 128  ;;  %v3265_v1 = vpop.trf.xlu0 }
  0xd5   : > { %v3267_v2 = vpop.trf.xlu1  ;;  %v3269_v3 = vpop.trf.xlu0 }
  0xd9   : > { %v3271_v4 = vpop.trf.xlu1  ;;  %v3273_v5 = vpop.trf.xlu0 }
  0xdd   : > { %v3275_v6 = vpop.trf.xlu1  ;;  %v3277_v7 = vpop.trf.xlu0 }
  0xe1   : > { %v3279_v8 = vpop.trf.xlu1  ;;  %v3281_v9 = vpop.trf.xlu0 }
  0xe5   : > { %v3283_v10 = vpop.trf.xlu1  ;;  %v3285_v11 = vpop.trf.xlu0 }
  0xe9   : > { %v3287_v12 = vpop.trf.xlu1  ;;  %v3289_v13 = vpop.trf.xlu0 }
  0xed   : > { %v3291_v14 = vpop.trf.xlu1  ;;  %v3293_v15 = vpop.trf.xlu0 }
  0xf1   : > { %v3295_v16 = vpop.trf.xlu1  ;;  %v3297_v17 = vpop.trf.xlu0 }
  0xf5   : > { %v3299_v18 = vpop.trf.xlu1  ;;  %v3301_v19 = vpop.trf.xlu0 }
  0xf9   : > { %v3303_v20 = vpop.trf.xlu1  ;;  %v3305_v21 = vpop.trf.xlu0 }
  0xfd   : > { %v3307_v22 = vpop.trf.xlu1  ;;  %v3309_v23 = vpop.trf.xlu0 }
 0x101   : > { %v3311_v24 = vpop.trf.xlu1  ;;  %v3313_v25 = vpop.trf.xlu0 }
 0x105   : > { %v3315_v26 = vpop.trf.xlu1  ;;  %v3317_v27 = vpop.trf.xlu0 }
 0x109   : > { %v3319_v28 = vpop.trf.xlu1  ;;  %v3321_v29 = vpop.trf.xlu0 }
 0x10d   : > { %v3323_v30 = vpop.trf.xlu1  ;;  %v3325_v31 = vpop.trf.xlu0 }
 0x10e   : > { %4340 = vst [vmem:[#allocation15_spill] sm:$0xff] %v3323_v30  ;;  %4341 = vst [vmem:[#allocation16_spill] sm:$0xff] %v3325_v31 }
 0x111   : > { %v3327_v32 = vpop.trf.xlu1  ;;  %v3329_v33 = vpop.trf.xlu0 }
 0x112   : > { %v524_v34 = vadd.f32 %v3329_v33, %v3265_v1  ;;  %v572_v40 = vadd.f32 %v3327_v32, %v3263_v0 }
 0x114   : > { %525 = vadd.xlane.f32.xlu0 %v524_v34 }
 0x115   : > { %v3333_v35 = vpop.trf.xlu1  ;;  %v3335_v36 = vpop.trf.xlu0 }
 0x116   : > { %v527_v37 = vadd.f32 %v3335_v36, %v3269_v3  ;;  %v575_v44 = vadd.f32 %v3333_v35, %v3267_v2 }
 0x118   : > { %528 = vadd.xlane.f32.xlu1 %v527_v37 }
 0x119   : > { %v3339_v38 = vpop.trf.xlu1  ;;  %v3341_v39 = vpop.trf.xlu0 }
 0x11a   : > { %v530_v41 = vadd.f32 %v3341_v39, %v3273_v5  ;;  %v578_v45 = vadd.f32 %v3339_v38, %v3271_v4 }
 0x11c   : > { %573 = vadd.xlane.f32.xlu1 %v572_v40  ;;  %531 = vadd.xlane.f32.xlu0 %v530_v41 }
 0x11d   : > { %v3347_v42 = vpop.trf.xlu1  ;;  %v3349_v43 = vpop.trf.xlu0 }
 0x11e   : > { %v533_v48 = vadd.f32 %v3349_v43, %v3277_v7  ;;  %v581_v52 = vadd.f32 %v3347_v42, %v3275_v6 }
 0x120   : > { %576 = vadd.xlane.f32.xlu1 %v575_v44  ;;  %579 = vadd.xlane.f32.xlu0 %v578_v45 }
 0x121   : > { %v3355_v46 = vpop.trf.xlu1  ;;  %v3357_v47 = vpop.trf.xlu0 }
 0x122   : > { %v536_v49 = vadd.f32 %v3357_v47, %v3281_v9  ;;  %v584_v53 = vadd.f32 %v3355_v46, %v3279_v8 }
 0x124   : > { %534 = vadd.xlane.f32.xlu1 %v533_v48  ;;  %537 = vadd.xlane.f32.xlu0 %v536_v49 }
 0x125   : > { %v3363_v50 = vpop.trf.xlu1  ;;  %v3365_v51 = vpop.trf.xlu0 }
 0x126   : > { %v539_v56 = vadd.f32 %v3365_v51, %v3285_v11  ;;  %v587_v60 = vadd.f32 %v3363_v50, %v3283_v10 }
 0x128   : > { %582 = vadd.xlane.f32.xlu1 %v581_v52  ;;  %585 = vadd.xlane.f32.xlu0 %v584_v53 }
 0x129   : > { %v3371_v54 = vpop.trf.xlu1  ;;  %v3373_v55 = vpop.trf.xlu0 }
 0x12a   : > { %v542_v57 = vadd.f32 %v3373_v55, %v3289_v13  ;;  %v590_v61 = vadd.f32 %v3371_v54, %v3287_v12 }
 0x12c   : > { %540 = vadd.xlane.f32.xlu1 %v539_v56  ;;  %543 = vadd.xlane.f32.xlu0 %v542_v57 }
 0x12d   : > { %v3379_v58 = vpop.trf.xlu1  ;;  %v3381_v59 = vpop.trf.xlu0 }
 0x12e   : > { %v545_v34 = vadd.f32 %v3381_v59, %v3293_v15  ;;  %v593_v44 = vadd.f32 %v3379_v58, %v3291_v14 }
 0x130   : > { %588 = vadd.xlane.f32.xlu1 %v587_v60  ;;  %591 = vadd.xlane.f32.xlu0 %v590_v61 }
 0x131   : > { %v3387_v62 = vpop.trf.xlu1  ;;  %v3389_v63 = vpop.trf.xlu0 }
 0x132   : > { %v548_v37 = vadd.f32 %v3389_v63, %v3297_v17  ;;  %v596_v45 = vadd.f32 %v3387_v62, %v3295_v16 }
 0x134   : > { %546 = vadd.xlane.f32.xlu1 %v545_v34  ;;  %549 = vadd.xlane.f32.xlu0 %v548_v37 }
 0x135   : > { %v3395_v40 = vpop.trf.xlu1  ;;  %v3397_v41 = vpop.trf.xlu0 }
 0x136   : > { %v551_v52 = vadd.f32 %v3397_v41, %v3301_v19  ;;  %v599_v60 = vadd.f32 %v3395_v40, %v3299_v18 }
 0x138   : > { %594 = vadd.xlane.f32.xlu1 %v593_v44  ;;  %597 = vadd.xlane.f32.xlu0 %v596_v45 }
 0x139   : > { %v3403_v48 = vpop.trf.xlu1  ;;  %v3405_v49 = vpop.trf.xlu0 }
 0x13a   : > { %4342 = vst [vmem:[#allocation17_spill] sm:$0xff] %v3403_v48  ;;  %v554_v53 = vadd.f32 %v3405_v49, %v3305_v21  ;;  %v602_v61 = vadd.f32 %v3403_v48, %v3303_v20 }
 0x13c   : > { %552 = vadd.xlane.f32.xlu1 %v551_v52  ;;  %555 = vadd.xlane.f32.xlu0 %v554_v53 }
 0x13d   : > { %v3411_v56 = vpop.trf.xlu1  ;;  %v3413_v57 = vpop.trf.xlu0 }
 0x13e   : > { %4343 = vst [vmem:[#allocation18_spill] sm:$0xff] %v3411_v56  ;;  %4344 = vst [vmem:[#allocation19_spill] sm:$0xff] %v3413_v57  ;;  %v557_v44 = vadd.f32 %v3413_v57, %v3309_v23 }
 0x140   : > { %600 = vadd.xlane.f32.xlu1 %v599_v60  ;;  %603 = vadd.xlane.f32.xlu0 %v602_v61  ;;  %v605_v60 = vadd.f32 %v3411_v56, %v3307_v22 }
 0x141   : > { %v3419_v34 = vpop.trf.xlu1  ;;  %v3421_v37 = vpop.trf.xlu0 }
 0x142   : > { %4345 = vst [vmem:[#allocation20_spill] sm:$0xff] %v3419_v34  ;;  %v560_v45 = vadd.f32 %v3421_v37, %v3313_v25  ;;  %v608_v61 = vadd.f32 %v3419_v34, %v3311_v24 }
 0x144   : > { %558 = vadd.xlane.f32.xlu1 %v557_v44  ;;  %561 = vadd.xlane.f32.xlu0 %v560_v45 }
 0x145   : > { %v3427_v52 = vpop.trf.xlu1  ;;  %v3429_v53 = vpop.trf.xlu0 }
 0x146   : > { %4346 = vst [vmem:[#allocation21_spill] sm:$0xff] %v3427_v52  ;;  %4347 = vst [vmem:[#allocation22_spill] sm:$0xff] %v3429_v53  ;;  %v563_v57 = vadd.f32 %v3429_v53, %v3317_v27  ;;  %v611_v56 = vadd.f32 %v3427_v52, %v3315_v26  ;;  %v2740_v52 = vld [vmem:[#allocation8 + $0x64] ss:$8 sps:$4 sm:$0xff]  }
 0x148   : > { %606 = vadd.xlane.f32.xlu1 %v605_v60  ;;  %609 = vadd.xlane.f32.xlu0 %v608_v61 }
 0x149   : > { %v3435_v48 = vpop.trf.xlu0  ;;  %v3441_v45 = vpop.trf.xlu1 }
 0x14a   : > { %4348 = vst [vmem:[#allocation23_spill] sm:$0xff] %v3435_v48  ;;  %v566_v44 = vadd.f32 %v3435_v48, %v3321_v29  ;;  %4349 = vst [vmem:[#allocation24_spill] sm:$0xff] %v3441_v45  ;;  %v614_v34 = vadd.f32 %v3441_v45, %v3319_v28  ;;  %v2739_v48 = vld [vmem:[#allocation8 + $0x70] ss:$8 sps:$4 sm:$0xff]   ;;  %v2742_v45 = vld [vmem:[#allocation8 + $0x60] ss:$8 sps:$4 sm:$0xff]  }
 0x14c   : > { %564 = vadd.xlane.f32.xlu1 %v563_v57  ;;  %567 = vadd.xlane.f32.xlu0 %v566_v44  ;;  %v2737_v44 = vld [vmem:[#allocation8 + $0x74] ss:$8 sps:$4 sm:$0xff]  }
 0x14d   : > { %v3447_v60 = vpop.trf.xlu0  ;;  %v3451_v53 = vpop.trf.xlu1  ;;  %1841 = vmatprep.subr.bf16.mxu0 %v2737_v44  ;;  %2616 = vmatprep.subr.bf16.mxu1 %v2737_v44  ;;  %v2751_v44 = vld [vmem:[#allocation8 + $0x30] ss:$8 sps:$4 sm:$0xff]  }
 0x14e   : > { %4350 = vst [vmem:[#allocation25_spill] sm:$0xff] %v3447_v60  ;;  %v569_v61 = vadd.f32 %v3447_v60, %v3325_v31  ;;  %4351 = vst [vmem:[#allocation26_spill] sm:$0xff] %v3451_v53  ;;  %v617_v57 = vadd.f32 %v3451_v53, %v3323_v30  ;;  %1842 = vmatpush1.bf16.msra.mxu0 %v2739_v48  ;;  %2632 = vmatpush1.bf16.msra.mxu1 %v2739_v48  ;;  %v2748_v53 = vld [vmem:[#allocation8 + $0x40] ss:$8 sps:$4 sm:$0xff]   ;;  %v2752_v48 = vld [vmem:[#allocation8 + $0x24] ss:$8 sps:$4 sm:$0xff]  }
 0x14f   : > { %1843 = vmatprep.subr.bf16.mxu0 %v2740_v52  ;;  %2617 = vmatprep.subr.bf16.mxu1 %v2740_v52  ;;  %v2754_v52 = vld [vmem:[#allocation8 + $0x20] ss:$8 sps:$4 sm:$0xff]  }
 0x150   : > { %612 = vadd.xlane.f32.xlu1 %v611_v56  ;;  %615 = vadd.xlane.f32.xlu0 %v614_v34  ;;  %v2743_v56 = vld [vmem:[#allocation8 + $0x54] ss:$8 sps:$4 sm:$0xff]   ;;  %v2745_v34 = vld [vmem:[#allocation8 + $0x50] ss:$8 sps:$4 sm:$0xff]  }
 0x152   : > { %1844 = vmatpush1.bf16.msra.mxu0 %v2742_v45  ;;  %2633 = vmatpush1.bf16.msra.mxu1 %v2742_v45  ;;  %v2755_v45 = vld [vmem:[#allocation8 + $0x14] ss:$8 sps:$4 sm:$0xff]  }
 0x153   : > { %1845 = vmatprep.subr.bf16.mxu0 %v2743_v56  ;;  %2618 = vmatprep.subr.bf16.mxu1 %v2743_v56  ;;  %v2757_v56 = vld [vmem:[#allocation8 + $0x10] ss:$8 sps:$4 sm:$0xff]  }
 0x154   : > { %570 = vadd.xlane.f32.xlu1 %v569_v61  ;;  %v2746_v61 = vld [vmem:[#allocation8 + $0x44] ss:$8 sps:$4 sm:$0xff]  }
 0x156   : > { %1846 = vmatpush1.bf16.msra.mxu0 %v2745_v34  ;;  %2634 = vmatpush1.bf16.msra.mxu1 %v2745_v34  ;;  %v2758_v34 = vld [vmem:[#allocation8 + $0x4] ss:$8 sps:$4 sm:$0xff]  }
 0x157   : > { %1847 = vmatprep.subr.bf16.mxu0 %v2746_v61  ;;  %2619 = vmatprep.subr.bf16.mxu1 %v2746_v61  ;;  %v2760_v61 = vld [vmem:[#allocation8] ss:$8 sps:$4 sm:$0xff]  }
 0x158   : > { %618 = vadd.xlane.f32.xlu1 %v617_v57  ;;  %v2749_v57 = vld [vmem:[#allocation8 + $0x34] ss:$8 sps:$4 sm:$0xff]  }
 0x15a   : > { %1848 = vmatpush1.bf16.msra.mxu0 %v2748_v53  ;;  %2635 = vmatpush1.bf16.msra.mxu1 %v2748_v53 }
 0x15b   : > { %1849 = vmatprep.subr.bf16.mxu0 %v2749_v57  ;;  %2620 = vmatprep.subr.bf16.mxu1 %v2749_v57 }
 0x15e   : > { %1850 = vmatpush1.bf16.msra.mxu0 %v2751_v44  ;;  %2636 = vmatpush1.bf16.msra.mxu1 %v2751_v44 }
 0x15f   : > { %1851 = vmatprep.subr.bf16.mxu0 %v2752_v48  ;;  %2621 = vmatprep.subr.bf16.mxu1 %v2752_v48 }
 0x162   : > { %1852 = vmatpush1.bf16.msra.mxu0 %v2754_v52  ;;  %2637 = vmatpush1.bf16.msra.mxu1 %v2754_v52 }
 0x163   : > { %1853 = vmatprep.subr.bf16.mxu0 %v2755_v45  ;;  %2622 = vmatprep.subr.bf16.mxu1 %v2755_v45 }
 0x166   : > { %1854 = vmatpush1.bf16.msra.mxu0 %v2757_v56  ;;  %2638 = vmatpush1.bf16.msra.mxu1 %v2757_v56 }
 0x167   : > { %1855 = vmatprep.subr.bf16.mxu0 %v2758_v34  ;;  %2623 = vmatprep.subr.bf16.mxu1 %v2758_v34 }
 0x16a   : > { %1856 = vmatpush1.bf16.msra.mxu0 %v2760_v61  ;;  %2639 = vmatpush1.bf16.msra.mxu1 %v2760_v61 }
 0x19d   : > { %v526_v53 = vpop.xlane.xlu0 %525 }
 0x19e   : > { %v621_v57 = vmul.f32 0.00390625, %v526_v53 }
 0x1a0   : > { %v3456_v44 = vsub.f32 %v3265_v1, %v621_v57  ;;  %v3459_v48 = vsub.f32 %v3329_v33, %v621_v57 }
 0x1a1   : > { %v529_v30 = vpop.xlane.xlu1 %528 }
 0x1a2   : > { %4352 = vst [vmem:[#allocation27_spill] sm:$0xff] %v3456_v44  ;;  %4353 = vst [vmem:[#allocation28_spill] sm:$0xff] %v3459_v48  ;;  %v622_v52 = vmul.f32 0.00390625, %v529_v30  ;;  %v717_v45 = vmul.f32 %v3456_v44, %v3456_v44  ;;  %v718_v56 = vmul.f32 %v3459_v48, %v3459_v48 }
 0x1a4   : > { %v3466_v34 = vsub.f32 %v3269_v3, %v622_v52  ;;  %v3469_v61 = vsub.f32 %v3335_v36, %v622_v52  ;;  %v781_v53 = vadd.f32 %v718_v56, %v717_v45 }
 0x1a5   : > { %v574_v1 = vpop.xlane.xlu1 %573  ;;  %v532_v60 = vpop.xlane.xlu0 %531 }
 0x1a6   : > { %4354 = vst [vmem:[#allocation29_spill] sm:$0xff] %v3466_v34  ;;  %4355 = vst [vmem:[#allocation30_spill] sm:$0xff] %v3469_v61  ;;  %v719_v33 = vmul.f32 %v3466_v34, %v3466_v34  ;;  %v720_v30 = vmul.f32 %v3469_v61, %v3469_v61  ;;  %v637_v57 = vmul.f32 0.00390625, %v574_v1  ;;  %v623_v44 = vmul.f32 0.00390625, %v532_v60  ;;  %782 = vadd.xlane.f32.xlu0 %v781_v53 }
 0x1a8   : > { %v3476_v48 = vsub.f32 %v3263_v0, %v637_v57  ;;  %v3479_v3 = vsub.f32 %v3327_v32, %v637_v57  ;;  %v3482_v36 = vsub.f32 %v3273_v5, %v623_v44  ;;  %v3485_v52 = vsub.f32 %v3341_v39, %v623_v44 }
 0x1a9   : > { %v577_v45 = vpop.xlane.xlu1 %576  ;;  %v580_v56 = vpop.xlane.xlu0 %579  ;;  %v784_v34 = vadd.f32 %v720_v30, %v719_v33 }
 0x1aa   : > { %4356 = vst [vmem:[#allocation31_spill] sm:$0xff] %v3482_v36  ;;  %4357 = vst [vmem:[#allocation32_spill] sm:$0xff] %v3485_v52  ;;  %v638_v31 = vmul.f32 0.00390625, %v577_v45  ;;  %v639_v61 = vmul.f32 0.00390625, %v580_v56  ;;  %v721_v60 = vmul.f32 %v3482_v36, %v3482_v36  ;;  %v722_v0 = vmul.f32 %v3485_v52, %v3485_v52 }
 0x1ab   : > { %785 = vadd.xlane.f32.xlu1 %v784_v34  ;;  %v749_v32 = vmul.f32 %v3476_v48, %v3476_v48  ;;  %v750_v5 = vmul.f32 %v3479_v3, %v3479_v3 }
 0x1ac   : > { %v3496_v39 = vsub.f32 %v3267_v2, %v638_v31  ;;  %v3499_v44 = vsub.f32 %v3333_v35, %v638_v31  ;;  %v3502_v53 = vsub.f32 %v3271_v4, %v639_v61  ;;  %v3505_v1 = vsub.f32 %v3339_v38, %v639_v61 }
 0x1ad   : > { %v535_v33 = vpop.xlane.xlu1 %534  ;;  %v538_v34 = vpop.xlane.xlu0 %537  ;;  %v829_v30 = vadd.f32 %v750_v5, %v749_v32  ;;  %v787_v61 = vadd.f32 %v722_v0, %v721_v60 }
 0x1ae   : > { %4358 = vst [vmem:[#allocation33_spill] sm:$0xff] %v3502_v53  ;;  %4359 = vst [vmem:[#allocation34_spill] sm:$0xff] %v3505_v1  ;;  %v751_v57 = vmul.f32 %v3496_v39, %v3496_v39  ;;  %v752_v45 = vmul.f32 %v3499_v44, %v3499_v44  ;;  %v753_v2 = vmul.f32 %v3502_v53, %v3502_v53  ;;  %v624_v4 = vmul.f32 0.00390625, %v535_v33 }
 0x1af   : > { %v754_v31 = vmul.f32 %v3505_v1, %v3505_v1  ;;  %v625_v35 = vmul.f32 0.00390625, %v538_v34  ;;  %830 = vadd.xlane.f32.xlu0 %v829_v30  ;;  %v2761_v1 = vld [vmem:[#allocation8 + $0xf4] ss:$8 sps:$4 sm:$0xff]   ;;  %v2763_v30 = vld [vmem:[#allocation8 + $0xf0] ss:$8 sps:$4 sm:$0xff]  }
 0x1b0   : > { %v832_v38 = vadd.f32 %v752_v45, %v751_v57  ;;  %v3516_v56 = vsub.f32 %v3277_v7, %v624_v4  ;;  %v3519_v32 = vsub.f32 %v3349_v43, %v624_v4  ;;  %1857 = vmatprep.subr.bf16.mxu0 %v2761_v1  ;;  %v2764_v4 = vld [vmem:[#allocation8 + $0xe4] ss:$8 sps:$4 sm:$0xff]   ;;  %2624 = vmatprep.subr.bf16.mxu1 %v2761_v1 }
 0x1b1   : > { %v3522_v5 = vsub.f32 %v3281_v9, %v625_v35  ;;  %v3525_v36 = vsub.f32 %v3357_v47, %v625_v35  ;;  %v583_v53 = vpop.xlane.xlu1 %582  ;;  %v586_v52 = vpop.xlane.xlu0 %585  ;;  %v835_v60 = vadd.f32 %v754_v31, %v753_v2  ;;  %1858 = vmatpush2.bf16.msra.mxu0 %v2763_v30  ;;  %v2766_v35 = vld [vmem:[#allocation8 + $0xe0] ss:$8 sps:$4 sm:$0xff]   ;;  %2640 = vmatpush2.bf16.msra.mxu1 %v2763_v30 }
 0x1b2   : > { %v640_v33 = vmul.f32 0.00390625, %v583_v53  ;;  %v641_v34 = vmul.f32 0.00390625, %v586_v52  ;;  %833 = vadd.xlane.f32.xlu1 %v832_v38  ;;  %v723_v7 = vmul.f32 %v3516_v56, %v3516_v56  ;;  %v724_v43 = vmul.f32 %v3519_v32, %v3519_v32  ;;  %1859 = vmatprep.subr.bf16.mxu0 %v2764_v4 }
 0x1b3   : > { %788 = vadd.xlane.f32.xlu0 %v787_v61  ;;  %v725_v9 = vmul.f32 %v3522_v5, %v3522_v5  ;;  %v726_v47 = vmul.f32 %v3525_v36, %v3525_v36  ;;  %2625 = vmatprep.subr.bf16.mxu1 %v2764_v4 }
 0x1b4   : > { %v3536_v0 = vsub.f32 %v3275_v6, %v640_v33  ;;  %v3539_v52 = vsub.f32 %v3347_v42, %v640_v33  ;;  %v3542_v53 = vsub.f32 %v3279_v8, %v641_v34  ;;  %v3545_v57 = vsub.f32 %v3355_v46, %v641_v34 }
 0x1b5   : > { %v541_v45 = vpop.xlane.xlu1 %540  ;;  %v544_v2 = vpop.xlane.xlu0 %543  ;;  %v790_v31 = vadd.f32 %v724_v43, %v723_v7  ;;  %v793_v61 = vadd.f32 %v726_v47, %v725_v9  ;;  %1860 = vmatpush2.bf16.msra.mxu0 %v2766_v35  ;;  %2641 = vmatpush2.bf16.msra.mxu1 %v2766_v35 }
 0x1b6   : > { %v755_v6 = vmul.f32 %v3536_v0, %v3536_v0  ;;  %v756_v42 = vmul.f32 %v3539_v52, %v3539_v52  ;;  %v626_v38 = vmul.f32 0.00390625, %v541_v45  ;;  %v627_v8 = vmul.f32 0.00390625, %v544_v2 }
 0x1b7   : > { %791 = vadd.xlane.f32.xlu1 %v790_v31  ;;  %836 = vadd.xlane.f32.xlu0 %v835_v60  ;;  %v757_v33 = vmul.f32 %v3542_v53, %v3542_v53  ;;  %v758_v1 = vmul.f32 %v3545_v57, %v3545_v57  ;;  %v2767_v60 = vld [vmem:[#allocation8 + $0xd4] ss:$8 sps:$4 sm:$0xff]   ;;  %v2769_v31 = vld [vmem:[#allocation8 + $0xd0] ss:$8 sps:$4 sm:$0xff]  }
 0x1b8   : > { %v838_v46 = vadd.f32 %v756_v42, %v755_v6  ;;  %v3556_v34 = vsub.f32 %v3285_v11, %v626_v38  ;;  %v3559_v7 = vsub.f32 %v3365_v51, %v626_v38  ;;  %v3562_v9 = vsub.f32 %v3289_v13, %v627_v8  ;;  %1861 = vmatprep.subr.bf16.mxu0 %v2767_v60 }
 0x1b9   : > { %v589_v30 = vpop.xlane.xlu1 %588  ;;  %v592_v43 = vpop.xlane.xlu0 %591  ;;  %v3565_v47 = vsub.f32 %v3373_v55, %v627_v8  ;;  %v841_v8 = vadd.f32 %v758_v1, %v757_v33  ;;  %2626 = vmatprep.subr.bf16.mxu1 %v2767_v60  ;;  %1862 = vmatpush2.bf16.msra.mxu0 %v2769_v31 }
 0x1ba   : > { %v642_v45 = vmul.f32 0.00390625, %v589_v30  ;;  %v643_v2 = vmul.f32 0.00390625, %v592_v43  ;;  %v727_v11 = vmul.f32 %v3556_v34, %v3556_v34  ;;  %v728_v51 = vmul.f32 %v3559_v7, %v3559_v7  ;;  %v2770_v30 = vld [vmem:[#allocation8 + $0xc4] ss:$8 sps:$4 sm:$0xff]   ;;  %2642 = vmatpush2.bf16.msra.mxu1 %v2769_v31  ;;  %v2775_v31 = vld [vmem:[#allocation8 + $0xb0] ss:$8 sps:$4 sm:$0xff]  }
 0x1bb   : > { %839 = vadd.xlane.f32.xlu1 %v838_v46  ;;  %794 = vadd.xlane.f32.xlu0 %v793_v61  ;;  %v2772_v46 = vld [vmem:[#allocation8 + $0xc0] ss:$8 sps:$4 sm:$0xff]  }
 0x1bc   : > { %v3572_v4 = vsub.f32 %v3283_v10, %v642_v45  ;;  %v3575_v13 = vsub.f32 %v3363_v50, %v642_v45  ;;  %v3578_v55 = vsub.f32 %v3287_v12, %v643_v2  ;;  %v3581_v6 = vsub.f32 %v3371_v54, %v643_v2  ;;  %1863 = vmatprep.subr.bf16.mxu0 %v2770_v30 }
 0x1bd   : > { %v547_v42 = vpop.xlane.xlu1 %546  ;;  %v550_v35 = vpop.xlane.xlu0 %549  ;;  %v796_v38 = vadd.f32 %v728_v51, %v727_v11  ;;  %v729_v10 = vmul.f32 %v3562_v9, %v3562_v9  ;;  %v730_v50 = vmul.f32 %v3565_v47, %v3565_v47  ;;  %2627 = vmatprep.subr.bf16.mxu1 %v2770_v30  ;;  %1864 = vmatpush2.bf16.msra.mxu0 %v2772_v46 }
 0x1be   : > { %4360 = vst [vmem:[#allocation35_spill] sm:$0xff] %v3578_v55  ;;  %v759_v12 = vmul.f32 %v3572_v4, %v3572_v4  ;;  %v760_v54 = vmul.f32 %v3575_v13, %v3575_v13  ;;  %v628_v61 = vmul.f32 0.00390625, %v547_v42  ;;  %v629_v43 = vmul.f32 0.00390625, %v550_v35  ;;  %2643 = vmatpush2.bf16.msra.mxu1 %v2772_v46 }
 0x1bf   : > { %797 = vadd.xlane.f32.xlu1 %v796_v38  ;;  %v761_v33 = vmul.f32 %v3578_v55, %v3578_v55  ;;  %v762_v1 = vmul.f32 %v3581_v6, %v3581_v6  ;;  %842 = vadd.xlane.f32.xlu0 %v841_v8  ;;  %v2773_v38 = vld [vmem:[#allocation8 + $0xb4] ss:$8 sps:$4 sm:$0xff]  }
 0x1c0   : > { %v844_v60 = vadd.f32 %v760_v54, %v759_v12  ;;  %v3596_v45 = vsub.f32 %v3293_v15, %v628_v61  ;;  %v3599_v2 = vsub.f32 %v3381_v59, %v628_v61  ;;  %v3602_v11 = vsub.f32 %v3297_v17, %v629_v43  ;;  %1865 = vmatprep.subr.bf16.mxu0 %v2773_v38 }
 0x1c1   : > { %v3605_v51 = vsub.f32 %v3389_v63, %v629_v43  ;;  %v595_v42 = vpop.xlane.xlu1 %594  ;;  %v598_v35 = vpop.xlane.xlu0 %597  ;;  %v799_v12 = vadd.f32 %v730_v50, %v729_v10  ;;  %v847_v43 = vadd.f32 %v762_v1, %v761_v33  ;;  %1866 = vmatpush2.bf16.msra.mxu0 %v2775_v31  ;;  %2628 = vmatprep.subr.bf16.mxu1 %v2773_v38 }
 0x1c2   : > { %v644_v55 = vmul.f32 0.00390625, %v595_v42  ;;  %v645_v8 = vmul.f32 0.00390625, %v598_v35  ;;  %v731_v15 = vmul.f32 %v3596_v45, %v3596_v45  ;;  %v732_v59 = vmul.f32 %v3599_v2, %v3599_v2  ;;  %v2776_v42 = vld [vmem:[#allocation8 + $0xa4] ss:$8 sps:$4 sm:$0xff]   ;;  %2644 = vmatpush2.bf16.msra.mxu1 %v2775_v31 }
 0x1c3   : > { %845 = vadd.xlane.f32.xlu1 %v844_v60  ;;  %v733_v17 = vmul.f32 %v3602_v11, %v3602_v11  ;;  %v734_v63 = vmul.f32 %v3605_v51, %v3605_v51  ;;  %800 = vadd.xlane.f32.xlu0 %v799_v12 }
 0x1c4   : > { %v3616_v30 = vsub.f32 %v3291_v14, %v644_v55  ;;  %v3619_v10 = vsub.f32 %v3379_v58, %v644_v55  ;;  %v802_v61 = vadd.f32 %v732_v59, %v731_v15  ;;  %v3626_v14 = vsub.f32 %v3295_v16, %v645_v8  ;;  %v2778_v55 = vld [vmem:[#allocation8 + $0xa0] ss:$8 sps:$4 sm:$0xff]   ;;  %1867 = vmatprep.subr.bf16.mxu0 %v2776_v42 }
 0x1c5   : > { %v553_v50 = vpop.xlane.xlu1 %552  ;;  %v556_v54 = vpop.xlane.xlu0 %555  ;;  %v3629_v58 = vsub.f32 %v3387_v62, %v645_v8  ;;  %v805_v33 = vadd.f32 %v734_v63, %v733_v17  ;;  %1868 = vmatpush2.bf16.msra.mxu0 %v2778_v55  ;;  %2629 = vmatprep.subr.bf16.mxu1 %v2776_v42 }
 0x1c6   : > { %v763_v60 = vmul.f32 %v3616_v30, %v3616_v30  ;;  %v764_v35 = vmul.f32 %v3619_v10, %v3619_v10  ;;  %v630_v12 = vmul.f32 0.00390625, %v553_v50  ;;  %v631_v15 = vmul.f32 0.00390625, %v556_v54  ;;  %v2779_v54 = vld [vmem:[#allocation8 + $0x94] ss:$8 sps:$4 sm:$0xff]   ;;  %2645 = vmatpush2.bf16.msra.mxu1 %v2778_v55 }
 0x1c7   : > { %803 = vadd.xlane.f32.xlu1 %v802_v61  ;;  %848 = vadd.xlane.f32.xlu0 %v847_v43  ;;  %v765_v17 = vmul.f32 %v3626_v14, %v3626_v14 }
 0x1c8   : > { %v850_v46 = vadd.f32 %v764_v35, %v763_v60  ;;  %v3632_v1 = vsub.f32 %v3301_v19, %v630_v12  ;;  %v3635_v59 = vsub.f32 %v3397_v41, %v630_v12  ;;  %v3638_v16 = vsub.f32 %v3305_v21, %v631_v15  ;;  %v2781_v41 = vld [vmem:[#allocation8 + $0x90] ss:$8 sps:$4 sm:$0xff]   ;;  %1869 = vmatprep.subr.bf16.mxu0 %v2779_v54 }
 0x1c9   : > { %v3641_v62 = vsub.f32 %v3405_v49, %v631_v15  ;;  %v601_v8 = vpop.xlane.xlu1 %600  ;;  %v604_v50 = vpop.xlane.xlu0 %603  ;;  %v766_v19 = vmul.f32 %v3629_v58, %v3629_v58  ;;  %v4362_v35 = vld [vmem:[#allocation17_spill] sm:$0xff]  ;;  %1870 = vmatpush2.bf16.msra.mxu0 %v2781_v41  ;;  %2630 = vmatprep.subr.bf16.mxu1 %v2779_v54 }
 0x1ca   : > { %4361 = vst [vmem:[#allocation36_spill] sm:$0xff] %v3638_v16  ;;  %v646_v38 = vmul.f32 0.00390625, %v601_v8  ;;  %v647_v63 = vmul.f32 0.00390625, %v604_v50  ;;  %v735_v21 = vmul.f32 %v3632_v1, %v3632_v1  ;;  %v736_v49 = vmul.f32 %v3635_v59, %v3635_v59  ;;  %v2782_v50 = vld [vmem:[#allocation8 + $0x84] ss:$8 sps:$4 sm:$0xff]   ;;  %2646 = vmatpush2.bf16.msra.mxu1 %v2781_v41  ;;  %v4367_v41 = vld [vmem:[#allocation18_spill] sm:$0xff] }
 0x1cb   : > { %851 = vadd.xlane.f32.xlu1 %v850_v46  ;;  %v737_v31 = vmul.f32 %v3638_v16, %v3638_v16  ;;  %v738_v61 = vmul.f32 %v3641_v62, %v3641_v62  ;;  %806 = vadd.xlane.f32.xlu0 %v805_v33  ;;  %v2784_v33 = vld [vmem:[#allocation8 + $0x80] ss:$8 sps:$4 sm:$0xff]  }
 0x1cc   : > { %v3656_v43 = vsub.f32 %v3299_v18, %v646_v38  ;;  %v3659_v60 = vsub.f32 %v3395_v40, %v646_v38  ;;  %v3662_v42 = vsub.f32 %v3303_v20, %v647_v63  ;;  %v3665_v12 = vsub.f32 %v4362_v35, %v647_v63  ;;  %1871 = vmatprep.subr.bf16.mxu0 %v2782_v50 }
 0x1cd   : > { %v559_v15 = vpop.xlane.xlu1 %558  ;;  %v562_v46 = vpop.xlane.xlu0 %561  ;;  %v808_v8 = vadd.f32 %v736_v49, %v735_v21  ;;  %v853_v38 = vadd.f32 %v766_v19, %v765_v17  ;;  %v811_v35 = vadd.f32 %v738_v61, %v737_v31  ;;  %v4363_v17 = vld [vmem:[#allocation19_spill] sm:$0xff]  ;;  %1872 = vmatpush2.bf16.msra.mxu0 %v2784_v33  ;;  %2631 = vmatprep.subr.bf16.mxu1 %v2782_v50 }
 0x1ce   : > { %v767_v18 = vmul.f32 %v3656_v43, %v3656_v43  ;;  %v768_v40 = vmul.f32 %v3659_v60, %v3659_v60  ;;  %v632_v20 = vmul.f32 0.00390625, %v559_v15  ;;  %v633_v16 = vmul.f32 0.00390625, %v562_v46  ;;  %2647 = vmatpush2.bf16.msra.mxu1 %v2784_v33 }
 0x1cf   : > { %809 = vadd.xlane.f32.xlu1 %v808_v8  ;;  %854 = vadd.xlane.f32.xlu0 %v853_v38  ;;  %v769_v55 = vmul.f32 %v3662_v42, %v3662_v42  ;;  %v770_v21 = vmul.f32 %v3665_v12, %v3665_v12 }
 0x1d0   : > { %v856_v63 = vadd.f32 %v768_v40, %v767_v18  ;;  %v3676_v49 = vsub.f32 %v3309_v23, %v632_v20  ;;  %v3679_v19 = vsub.f32 %v4363_v17, %v632_v20  ;;  %v3682_v8 = vsub.f32 %v3313_v25, %v633_v16 }
 0x1d1   : > { %v607_v15 = vpop.xlane.xlu1 %606  ;;  %v610_v46 = vpop.xlane.xlu0 %609  ;;  %v3685_v54 = vsub.f32 %v3421_v37, %v633_v16  ;;  %v4369_v16 = vld [vmem:[#allocation20_spill] sm:$0xff] }
 0x1d2   : > { %4364 = vst [vmem:[#allocation17_spill] sm:$0xff] %v3682_v8  ;;  %v648_v31 = vmul.f32 0.00390625, %v607_v15  ;;  %v649_v61 = vmul.f32 0.00390625, %v610_v46  ;;  %v739_v23 = vmul.f32 %v3676_v49, %v3676_v49  ;;  %v740_v18 = vmul.f32 %v3679_v19, %v3679_v19 }
 0x1d3   : > { %4365 = vst [vmem:[#allocation19_spill] sm:$0xff] %v3685_v54  ;;  %857 = vadd.xlane.f32.xlu1 %v856_v63  ;;  %812 = vadd.xlane.f32.xlu0 %v811_v35  ;;  %v859_v15 = vadd.f32 %v770_v21, %v769_v55  ;;  %v741_v63 = vmul.f32 %v3682_v8, %v3682_v8 }
 0x1d4   : > { %v3692_v40 = vsub.f32 %v3307_v22, %v648_v31  ;;  %v3695_v25 = vsub.f32 %v4367_v41, %v648_v31  ;;  %v3698_v37 = vsub.f32 %v3311_v24, %v649_v61  ;;  %v3701_v38 = vsub.f32 %v4369_v16, %v649_v61  ;;  %v4375_v16 = vld [vmem:[#allocation23_spill] sm:$0xff] }
 0x1d5   : > { %v565_v50 = vpop.xlane.xlu1 %564  ;;  %v568_v20 = vpop.xlane.xlu0 %567  ;;  %v814_v17 = vadd.f32 %v740_v18, %v739_v23  ;;  %v742_v22 = vmul.f32 %v3685_v54, %v3685_v54  ;;  %v4372_v23 = vld [vmem:[#allocation22_spill] sm:$0xff] }
 0x1d6   : > { %4366 = vst [vmem:[#allocation37_spill] sm:$0xff] %v3692_v40  ;;  %4368 = vst [vmem:[#allocation18_spill] sm:$0xff] %v3698_v37  ;;  %v771_v46 = vmul.f32 %v3692_v40, %v3692_v40  ;;  %v772_v24 = vmul.f32 %v3695_v25, %v3695_v25  ;;  %v634_v31 = vmul.f32 0.00390625, %v565_v50  ;;  %v635_v61 = vmul.f32 0.00390625, %v568_v20 }
 0x1d7   : > { %4370 = vst [vmem:[#allocation20_spill] sm:$0xff] %v3701_v38  ;;  %815 = vadd.xlane.f32.xlu1 %v814_v17  ;;  %v773_v35 = vmul.f32 %v3698_v37, %v3698_v37  ;;  %v774_v33 = vmul.f32 %v3701_v38, %v3701_v38  ;;  %860 = vadd.xlane.f32.xlu0 %v859_v15 }
 0x1d8   : > { %v862_v55 = vadd.f32 %v772_v24, %v771_v46  ;;  %v3716_v21 = vsub.f32 %v3317_v27, %v634_v31  ;;  %v3719_v18 = vsub.f32 %v4372_v23, %v634_v31  ;;  %v3722_v41 = vsub.f32 %v3321_v29, %v635_v61  ;;  %v4378_v29 = vld [vmem:[#allocation21_spill] sm:$0xff] }
 0x1d9   : > { %v3725_v50 = vsub.f32 %v4375_v16, %v635_v61  ;;  %v613_v20 = vpop.xlane.xlu1 %612  ;;  %v616_v17 = vpop.xlane.xlu0 %615  ;;  %v817_v54 = vadd.f32 %v742_v22, %v741_v63  ;;  %v865_v23 = vadd.f32 %v774_v33, %v773_v35  ;;  %v4385_v35 = vld [vmem:[#allocation25_spill] sm:$0xff] }
 0x1da   : > { %4371 = vst [vmem:[#allocation38_spill] sm:$0xff] %v3716_v21  ;;  %4373 = vst [vmem:[#allocation22_spill] sm:$0xff] %v3719_v18  ;;  %v650_v37 = vmul.f32 0.00390625, %v613_v20  ;;  %v651_v8 = vmul.f32 0.00390625, %v616_v17  ;;  %v743_v15 = vmul.f32 %v3716_v21, %v3716_v21  ;;  %v744_v27 = vmul.f32 %v3719_v18, %v3719_v18 }
 0x1db   : > { %4374 = vst [vmem:[#allocation39_spill] sm:$0xff] %v3722_v41  ;;  %4376 = vst [vmem:[#allocation23_spill] sm:$0xff] %v3725_v50  ;;  %863 = vadd.xlane.f32.xlu1 %v862_v55  ;;  %818 = vadd.xlane.f32.xlu0 %v817_v54  ;;  %v745_v31 = vmul.f32 %v3722_v41, %v3722_v41  ;;  %v746_v63 = vmul.f32 %v3725_v50, %v3725_v50 }
 0x1dc   : > { %v3732_v46 = vsub.f32 %v3315_v26, %v650_v37  ;;  %v3735_v24 = vsub.f32 %v4378_v29, %v650_v37  ;;  %v820_v61 = vadd.f32 %v744_v27, %v743_v15  ;;  %v3746_v55 = vsub.f32 %v3319_v28, %v651_v8  ;;  %v4381_v37 = vld [vmem:[#allocation24_spill] sm:$0xff] }
 0x1dd   : > { %v571_v22 = vpop.xlane.xlu1 %570  ;;  %v3749_v54 = vsub.f32 %v4381_v37, %v651_v8  ;;  %v4383_v29 = vld [vmem:[#allocation16_spill] sm:$0xff]  ;;  %v823_v8 = vadd.f32 %v746_v63, %v745_v31 }
 0x1de   : > { %4377 = vst [vmem:[#allocation40_spill] sm:$0xff] %v3732_v46  ;;  %4379 = vst [vmem:[#allocation21_spill] sm:$0xff] %v3735_v24  ;;  %v775_v16 = vmul.f32 %v3732_v46, %v3732_v46  ;;  %v776_v26 = vmul.f32 %v3735_v24, %v3735_v24  ;;  %v636_v20 = vmul.f32 0.00390625, %v571_v22  ;;  %v777_v27 = vmul.f32 %v3746_v55, %v3746_v55 }
 0x1df   : > { %4380 = vst [vmem:[#allocation41_spill] sm:$0xff] %v3746_v55  ;;  %4382 = vst [vmem:[#allocation24_spill] sm:$0xff] %v3749_v54  ;;  %821 = vadd.xlane.f32.xlu1 %v820_v61  ;;  %866 = vadd.xlane.f32.xlu0 %v865_v23  ;;  %v778_v28 = vmul.f32 %v3749_v54, %v3749_v54  ;;  %v4387_v23 = vld [vmem:[#allocation15_spill] sm:$0xff] }
 0x1e0   : > { %v868_v17 = vadd.f32 %v776_v26, %v775_v16  ;;  %v3752_v41 = vsub.f32 %v4383_v29, %v636_v20  ;;  %v3755_v33 = vsub.f32 %v4385_v35, %v636_v20  ;;  %v4389_v26 = vld [vmem:[#allocation26_spill] sm:$0xff] }
 0x1e1   : > { %v619_v15 = vpop.xlane.xlu1 %618  ;;  %v871_v63 = vadd.f32 %v778_v28, %v777_v27 }
 0x1e2   : > { %4384 = vst [vmem:[#allocation16_spill] sm:$0xff] %v3752_v41  ;;  %4386 = vst [vmem:[#allocation25_spill] sm:$0xff] %v3755_v33  ;;  %v652_v50 = vmul.f32 0.00390625, %v619_v15  ;;  %v747_v22 = vmul.f32 %v3752_v41, %v3752_v41  ;;  %v748_v61 = vmul.f32 %v3755_v33, %v3755_v33 }
 0x1e3   : > { %869 = vadd.xlane.f32.xlu1 %v868_v17  ;;  %824 = vadd.xlane.f32.xlu0 %v823_v8 }
 0x1e4   : > { %v3766_v16 = vsub.f32 %v4387_v23, %v652_v50  ;;  %v3769_v37 = vsub.f32 %v4389_v26, %v652_v50  ;;  %v826_v20 = vadd.f32 %v748_v61, %v747_v22  ;;  %v1071_v22 = vlaneseq }
 0x1e6   : > { %4388 = vst [vmem:[#allocation15_spill] sm:$0xff] %v3766_v16  ;;  %4390 = vst [vmem:[#allocation26_spill] sm:$0xff] %v3769_v37  ;;  %v779_v29 = vmul.f32 %v3766_v16, %v3766_v16  ;;  %v780_v31 = vmul.f32 %v3769_v37, %v3769_v37  ;;  %v1072_v27 = vshrl.u32 %v1071_v22, 7 }
 0x1e7   : > { %827 = vadd.xlane.f32.xlu1 %v826_v20  ;;  %872 = vadd.xlane.f32.xlu0 %v871_v63 }
 0x1e8   : > { %v874_v35 = vadd.f32 %v780_v31, %v779_v29 }
 0x1eb   : > { %875 = vadd.xlane.f32.xlu1 %v874_v35 }
 0x22f   : > { %v783_v17 = vpop.xlane.xlu0 %782 }
 0x230   : > { %v877_v15 = vmul.f32 0.00390625, %v783_v17  ;;  %v3775_v17 = vsub.s32 0, %v1072_v27 }
 0x232   : > { %v909_v23 = vmax.f32 %v877_v15, 0.0  ;;  %4391 = vst [vmem:[#allocation42_spill] sm:$0xff] %v3775_v17 }
 0x234   : > { %v941_v55 = vadd.f32 1e-05, %v909_v23  ;;  %v786_v54 = vpop.xlane.xlu1 %785  ;;  %v1069_v23 = vld [vmem:[#allocation6] sm:$0x3] }
 0x235   : > { %v878_v50 = vmul.f32 0.00390625, %v786_v54 }
 0x236   : > { %2785 = vrsqrt.f32 %v941_v55 }
 0x237   : > { %v910_v8 = vmax.f32 %v878_v50, 0.0  ;;  %v3777_v50 = vsub.s32 1, %v1072_v27  ;;  %v1145_v27 = vld [vmem:[%s4268_s2] sm:$0x3] }
 0x238   : > { %v831_v61 = vpop.xlane.xlu0 %830 }
 0x239   : > { %v942_v26 = vadd.f32 1e-05, %v910_v8  ;;  %v893_v16 = vmul.f32 0.00390625, %v831_v61  ;;  %4392 = vst [vmem:[#allocation43_spill] sm:$0xff] %v3777_v50  ;;  %v3795_v38 = vrot.slane %v1145_v27, %v3777_v50 }
 0x23b   : > { %2787 = vrsqrt.f32 %v942_v26  ;;  %v925_v41 = vmax.f32 %v893_v16, 0.0  ;;  %v834_v37 = vpop.xlane.xlu1 %833 }
 0x23c   : > { %v894_v28 = vmul.f32 0.00390625, %v834_v37  ;;  %v789_v20 = vpop.xlane.xlu0 %788 }
 0x23d   : > { %v957_v29 = vadd.f32 1e-05, %v925_v41  ;;  %v879_v31 = vmul.f32 0.00390625, %v789_v20  ;;  %v3780_v41 = vrot.slane %v1069_v23, %v3775_v17  ;;  %v4393_v20 = vld [vmem:[#allocation28_spill] sm:$0xff] }
 0x23e   : > { %v926_v63 = vmax.f32 %v894_v28, 0.0 }
 0x23f   : > { %2789 = vrsqrt.f32 %v957_v29  ;;  %v911_v35 = vmax.f32 %v879_v31, 0.0  ;;  %v3784_v31 = vrot.slane %v1069_v23, %v3777_v50 }
 0x240   : > { %v958_v54 = vadd.f32 1e-05, %v926_v63  ;;  %v792_v55 = vpop.xlane.xlu1 %791  ;;  %v837_v15 = vpop.xlane.xlu0 %836  ;;  %v4394_v63 = vld [vmem:[#allocation27_spill] sm:$0xff] }
 0x241   : > { %v943_v8 = vadd.f32 1e-05, %v911_v35  ;;  %v880_v61 = vmul.f32 0.00390625, %v792_v55  ;;  %v895_v16 = vmul.f32 0.00390625, %v837_v15 }
 0x242   : > { %2791 = vrsqrt.f32 %v958_v54 }
 0x243   : > { %v2786_v22 = vpop.eup %2785  ;;  %v912_v37 = vmax.f32 %v880_v61, 0.0  ;;  %v927_v26 = vmax.f32 %v895_v16, 0.0  ;;  %2793 = vrsqrt.f32 %v943_v8  ;;  %v3791_v8 = vrot.slane %v1145_v27, %v3775_v17 }
 0x244   : > { %v840_v28 = vpop.xlane.xlu1 %839  ;;  %v1006_v29 = vmul.f32 %v2786_v22, %v4393_v20  ;;  %v1005_v35 = vmul.f32 %v2786_v22, %v4394_v63  ;;  %v795_v15 = vpop.xlane.xlu0 %794 }
 0x245   : > { %v944_v54 = vadd.f32 1e-05, %v912_v37  ;;  %v896_v55 = vmul.f32 0.00390625, %v840_v28  ;;  %v959_v61 = vadd.f32 1e-05, %v927_v26  ;;  %v881_v16 = vmul.f32 0.00390625, %v795_v15 }
 0x246   : > { %v1082_v24 = vmul.f32 %v3784_v31, %v1006_v29  ;;  %v1081_v22 = vmul.f32 %v3780_v41, %v1005_v35  ;;  %v4395_v26 = vld [vmem:[#allocation30_spill] sm:$0xff] }
 0x247   : > { %2795 = vrsqrt.f32 %v944_v54  ;;  %v928_v33 = vmax.f32 %v896_v55, 0.0  ;;  %v913_v46 = vmax.f32 %v881_v16, 0.0  ;;  %v4396_v54 = vld [vmem:[#allocation29_spill] sm:$0xff] }
 0x248   : > { %v2788_v20 = vpop.eup %2787  ;;  %v798_v23 = vpop.xlane.xlu1 %797  ;;  %2797 = vrsqrt.f32 %v959_v61 }
 0x249   : > { %v960_v37 = vadd.f32 1e-05, %v928_v33  ;;  %v882_v28 = vmul.f32 0.00390625, %v798_v23  ;;  %v843_v63 = vpop.xlane.xlu0 %842  ;;  %v1008_v15 = vmul.f32 %v2788_v20, %v4395_v26  ;;  %v1007_v55 = vmul.f32 %v2788_v20, %v4396_v54 }
 0x24a   : > { %v945_v17 = vadd.f32 1e-05, %v913_v46  ;;  %v897_v21 = vmul.f32 0.00390625, %v843_v63  ;;  %v1158_v33 = vadd.f32 %v3795_v38, %v1082_v24  ;;  %v1157_v23 = vadd.f32 %v3791_v8, %v1081_v22 }
 0x24b   : > { %2799 = vrsqrt.f32 %v960_v37  ;;  %v914_v16 = vmax.f32 %v882_v28, 0.0  ;;  %v1084_v18 = vmul.f32 %v3784_v31, %v1008_v15  ;;  %v1083_v29 = vmul.f32 %v3780_v41, %v1007_v55 }
 0x24c   : > { %v2790_v27 = vpop.eup %2789  ;;  %2801 = vrsqrt.f32 %v945_v17  ;;  %v929_v50 = vmax.f32 %v897_v21, 0.0  ;;  %v846_v35 = vpop.xlane.xlu1 %845 }
 0x24d   : > { %v946_v26 = vadd.f32 1e-05, %v914_v16  ;;  %v898_v40 = vmul.f32 0.00390625, %v846_v35  ;;  %v801_v20 = vpop.xlane.xlu0 %800  ;;  %v1160_v46 = vadd.f32 %v3795_v38, %v1084_v18  ;;  %v1159_v61 = vadd.f32 %v3791_v8, %v1083_v29 }
 0x24e   : > { %v961_v37 = vadd.f32 1e-05, %v929_v50  ;;  %v883_v28 = vmul.f32 0.00390625, %v801_v20  ;;  %v1038_v63 = vmul.f32 %v2790_v27, %v3479_v3  ;;  %v1037_v15 = vmul.f32 %v2790_v27, %v3476_v48 }
 0x24f   : > { %v2792_v17 = vpop.eup %2791  ;;  %2803 = vrsqrt.f32 %v946_v26  ;;  %v930_v21 = vmax.f32 %v898_v40, 0.0  ;;  %v2585_v54 = vpack.c.bf16 %v1160_v46, %v1158_v33  ;;  %v2584_v24 = vpack.c.bf16 %v1159_v61, %v1157_v23 }
 0x250   : > { %2805 = vrsqrt.f32 %v961_v37  ;;  %v915_v22 = vmax.f32 %v883_v28, 0.0  ;;  %v804_v55 = vpop.xlane.xlu1 %803  ;;  %v1040_v16 = vmul.f32 %v2792_v17, %v3499_v44  ;;  %v1114_v18 = vmul.f32 %v3784_v31, %v1038_v63  ;;  %v2794_v35 = vpop.eup %2793  ;;  %v4397_v63 = vld [vmem:[#allocation32_spill] sm:$0xff] }
 0x251   : > { %v962_v29 = vadd.f32 1e-05, %v930_v21  ;;  %v884_v50 = vmul.f32 0.00390625, %v804_v55  ;;  %v849_v20 = vpop.xlane.xlu0 %848  ;;  %1873 = vmatprep.mubr.bf16.mxu0 %v2585_v54  ;;  %v1039_v3 = vmul.f32 %v2792_v17, %v3496_v39  ;;  %v1113_v48 = vmul.f32 %v3780_v41, %v1037_v15 }
 0x252   : > { %v947_v27 = vadd.f32 1e-05, %v915_v22  ;;  %v899_v40 = vmul.f32 0.00390625, %v849_v20  ;;  %1874 = vmatmul.mubr.bf16.vlgmr.msra.gmra.mxu0 %v2584_v24  ;;  %v1116_v33 = vmul.f32 %v3784_v31, %v1040_v16  ;;  %v1190_v23 = vadd.f32 %v3795_v38, %v1114_v18 }
 0x253   : > { %2807 = vrsqrt.f32 %v962_v29  ;;  %v916_v44 = vmax.f32 %v884_v50, 0.0  ;;  %v1115_v26 = vmul.f32 %v3780_v41, %v1039_v3  ;;  %v1189_v46 = vadd.f32 %v3791_v8, %v1113_v48 }
 0x254   : > { %v2796_v61 = vpop.eup %2795  ;;  %2809 = vrsqrt.f32 %v947_v27  ;;  %v931_v37 = vmax.f32 %v899_v40, 0.0  ;;  %v852_v28 = vpop.xlane.xlu1 %851  ;;  %v1192_v39 = vadd.f32 %v3795_v38, %v1116_v33  ;;  %v1010_v15 = vmul.f32 %v2794_v35, %v4397_v63 }
 0x255   : > { %v948_v17 = vadd.f32 1e-05, %v916_v44  ;;  %v900_v21 = vmul.f32 0.00390625, %v852_v28  ;;  %v807_v54 = vpop.xlane.xlu0 %806  ;;  %v1191_v24 = vadd.f32 %v3791_v8, %v1115_v26  ;;  %v1012_v22 = vmul.f32 %v2796_v61, %v3519_v32  ;;  %v2798_v50 = vpop.eup %2797  ;;  %v4398_v26 = vld [vmem:[#allocation31_spill] sm:$0xff] }
 0x256   : > { %v963_v55 = vadd.f32 1e-05, %v931_v37  ;;  %v885_v16 = vmul.f32 0.00390625, %v807_v54  ;;  %v2601_v18 = vpack.c.bf16 %v1192_v39, %v1190_v23  ;;  %v1086_v29 = vmul.f32 %v3784_v31, %v1010_v15  ;;  %v4399_v54 = vld [vmem:[#allocation34_spill] sm:$0xff] }
 0x257   : > { %2811 = vrsqrt.f32 %v948_v17  ;;  %v932_v20 = vmax.f32 %v900_v21, 0.0  ;;  %v2600_v3 = vpack.c.bf16 %v1191_v24, %v1189_v46  ;;  %v1088_v48 = vmul.f32 %v3784_v31, %v1012_v22 }
 0x258   : > { %v2800_v27 = vpop.eup %2799  ;;  %2813 = vrsqrt.f32 %v963_v55  ;;  %v917_v40 = vmax.f32 %v885_v16, 0.0  ;;  %v810_v33 = vpop.xlane.xlu1 %809  ;;  %1953 = vmatprep.mubr.bf16.mxu1 %v2601_v18  ;;  %v1162_v44 = vadd.f32 %v3795_v38, %v1086_v29  ;;  %v1009_v32 = vmul.f32 %v2794_v35, %v4398_v26 }
 0x259   : > { %v3824_v37 = vpop.eup %2801  ;;  %v964_v23 = vadd.f32 1e-05, %v932_v20  ;;  %v886_v28 = vmul.f32 0.00390625, %v810_v33  ;;  %v855_v39 = vpop.xlane.xlu0 %854  ;;  %1954 = vmatmul.mubr.bf16.vlgmr.msra.gmra.mxu1 %v2600_v3  ;;  %v1164_v63 = vadd.f32 %v3795_v38, %v1088_v48  ;;  %v1011_v46 = vmul.f32 %v2796_v61, %v3516_v56 }
 0x25a   : > { %v949_v15 = vadd.f32 1e-05, %v917_v40  ;;  %v901_v17 = vmul.f32 0.00390625, %v855_v39  ;;  %v1085_v21 = vmul.f32 %v3780_v41, %v1009_v32  ;;  %v1042_v24 = vmul.f32 %v2798_v50, %v4399_v54 }
 0x25b   : > { %2815 = vrsqrt.f32 %v964_v23  ;;  %v918_v22 = vmax.f32 %v886_v28, 0.0  ;;  %v2587_v55 = vpack.c.bf16 %v1164_v63, %v1162_v44  ;;  %v1087_v35 = vmul.f32 %v3780_v41, %v1011_v46  ;;  %v4400_v28 = vld [vmem:[#allocation33_spill] sm:$0xff] }
 0x25c   : > { %v2804_v16 = vpop.eup %2803  ;;  %2817 = vrsqrt.f32 %v949_v15  ;;  %v933_v18 = vmax.f32 %v901_v17, 0.0  ;;  %v858_v29 = vpop.xlane.xlu1 %857  ;;  %v1161_v20 = vadd.f32 %v3791_v8, %v1085_v21  ;;  %v1044_v3 = vmul.f32 %v2800_v27, %v3539_v52 }
 0x25d   : > { %v3833_v56 = vpop.eup %2805  ;;  %v950_v61 = vadd.f32 1e-05, %v918_v22  ;;  %v902_v48 = vmul.f32 0.00390625, %v858_v29  ;;  %v813_v40 = vpop.xlane.xlu0 %812  ;;  %1883 = vmatprep.mubr.bf16.mxu0 %v2587_v55  ;;  %v1163_v33 = vadd.f32 %v3791_v8, %v1087_v35  ;;  %v1118_v44 = vmul.f32 %v3784_v31, %v1042_v24 }
 0x25e   : > { %v965_v26 = vadd.f32 1e-05, %v933_v18  ;;  %v887_v32 = vmul.f32 0.00390625, %v813_v40  ;;  %v1120_v23 = vmul.f32 %v3784_v31, %v1044_v3  ;;  %v1041_v39 = vmul.f32 %v2798_v50, %v4400_v28 }
 0x25f   : > { %2819 = vrsqrt.f32 %v950_v61  ;;  %v934_v63 = vmax.f32 %v902_v48, 0.0  ;;  %v2586_v46 = vpack.c.bf16 %v1163_v33, %v1161_v20  ;;  %v1194_v52 = vadd.f32 %v3795_v38, %v1118_v44 }
 0x260   : > { %v3840_v15 = vpop.eup %2807  ;;  %2821 = vrsqrt.f32 %v965_v26  ;;  %v919_v17 = vmax.f32 %v887_v32, 0.0  ;;  %v816_v21 = vpop.xlane.xlu1 %815  ;;  %v1196_v54 = vadd.f32 %v3795_v38, %v1120_v23  ;;  %v1043_v24 = vmul.f32 %v2800_v27, %v3536_v0 }
 0x261   : > { %v3844_v22 = vpop.eup %2809  ;;  %v966_v55 = vadd.f32 1e-05, %v934_v63  ;;  %1884 = vmatmul.mubr.bf16.gmra.mxu0 %v2586_v46  ;;  %v888_v35 = vmul.f32 0.00390625, %v816_v21  ;;  %v861_v50 = vpop.xlane.xlu0 %860  ;;  %v1117_v18 = vmul.f32 %v3780_v41, %v1041_v39  ;;  %v1014_v29 = vmul.f32 %v3824_v37, %v3525_v36 }
 0x262   : > { %v951_v20 = vadd.f32 1e-05, %v919_v17  ;;  %v903_v3 = vmul.f32 0.00390625, %v861_v50  ;;  %v2603_v61 = vpack.c.bf16 %v1196_v54, %v1194_v52  ;;  %v1119_v48 = vmul.f32 %v3780_v41, %v1043_v24 }
 0x263   : > { %2823 = vrsqrt.f32 %v966_v55  ;;  %v920_v40 = vmax.f32 %v888_v35, 0.0  ;;  %v1193_v0 = vadd.f32 %v3791_v8, %v1117_v18  ;;  %v1016_v27 = vmul.f32 %v2804_v16, %v3559_v7 }
 0x264   : > { %v3852_v33 = vpop.eup %2811  ;;  %2825 = vrsqrt.f32 %v951_v20  ;;  %v935_v44 = vmax.f32 %v903_v3, 0.0  ;;  %1963 = vmatprep.mubr.bf16.mxu1 %v2603_v61  ;;  %v1195_v26 = vadd.f32 %v3791_v8, %v1119_v48  ;;  %v864_v32 = vpop.xlane.xlu1 %863  ;;  %v1090_v36 = vmul.f32 %v3784_v31, %v1014_v29 }
 0x265   : > { %v3856_v23 = vpop.eup %2813  ;;  %v952_v28 = vadd.f32 1e-05, %v920_v40  ;;  %v904_v39 = vmul.f32 0.00390625, %v864_v32  ;;  %v819_v63 = vpop.xlane.xlu0 %818  ;;  %v1092_v46 = vmul.f32 %v3784_v31, %v1016_v27  ;;  %v1013_v7 = vmul.f32 %v3824_v37, %v3522_v5 }
 0x266   : > { %v967_v52 = vadd.f32 1e-05, %v935_v44  ;;  %v2602_v17 = vpack.c.bf16 %v1195_v26, %v1193_v0  ;;  %v889_v21 = vmul.f32 0.00390625, %v819_v63  ;;  %v1166_v54 = vadd.f32 %v3795_v38, %v1090_v36 }
 0x267   : > { %2827 = vrsqrt.f32 %v952_v28  ;;  %v936_v24 = vmax.f32 %v904_v39, 0.0  ;;  %v1168_v55 = vadd.f32 %v3795_v38, %v1092_v46  ;;  %v1015_v35 = vmul.f32 %v2804_v16, %v3556_v34 }
 0x268   : > { %v3864_v50 = vpop.eup %2815  ;;  %2829 = vrsqrt.f32 %v967_v52  ;;  %1964 = vmatmul.mubr.bf16.gmra.mxu1 %v2602_v17  ;;  %v921_v18 = vmax.f32 %v889_v21, 0.0  ;;  %v1089_v29 = vmul.f32 %v3780_v41, %v1013_v7  ;;  %v822_v20 = vpop.xlane.xlu1 %821  ;;  %v1046_v5 = vmul.f32 %v3833_v56, %v3545_v57 }
 0x269   : > { %v3869_v37 = vpop.eup %2817  ;;  %v968_v3 = vadd.f32 1e-05, %v936_v24  ;;  %v2589_v61 = vpack.c.bf16 %v1168_v55, %v1166_v54  ;;  %v1091_v48 = vmul.f32 %v3780_v41, %v1015_v35  ;;  %v890_v40 = vmul.f32 0.00390625, %v822_v20  ;;  %v867_v0 = vpop.xlane.xlu0 %866 }
 0x26a   : > { %v953_v34 = vadd.f32 1e-05, %v921_v18  ;;  %v1165_v16 = vadd.f32 %v3791_v8, %v1089_v29  ;;  %v905_v27 = vmul.f32 0.00390625, %v867_v0  ;;  %v1048_v44 = vmul.f32 %v3840_v15, %v3575_v13 }
 0x26b   : > { %2831 = vrsqrt.f32 %v968_v3  ;;  %1893 = vmatprep.mubr.bf16.mxu0 %v2589_v61  ;;  %v1167_v26 = vadd.f32 %v3791_v8, %v1091_v48  ;;  %v922_v57 = vmax.f32 %v890_v40, 0.0  ;;  %v1122_v32 = vmul.f32 %v3784_v31, %v1046_v5 }
 0x26c   : > { %v3877_v36 = vpop.eup %2819  ;;  %2833 = vrsqrt.f32 %v953_v34  ;;  %v937_v28 = vmax.f32 %v905_v27, 0.0  ;;  %v1124_v39 = vmul.f32 %v3784_v31, %v1048_v44  ;;  %v1045_v63 = vmul.f32 %v3833_v56, %v3542_v53  ;;  %v870_v46 = vpop.xlane.xlu1 %869 }
 0x26d   : > { %v3882_v7 = vpop.eup %2821  ;;  %v2588_v13 = vpack.c.bf16 %v1167_v26, %v1165_v16  ;;  %v954_v52 = vadd.f32 1e-05, %v922_v57  ;;  %v1198_v17 = vadd.f32 %v3795_v38, %v1122_v32  ;;  %v1047_v21 = vmul.f32 %v3840_v15, %v3572_v4  ;;  %v825_v54 = vpop.xlane.xlu0 %824 }
 0x26e   : > { %v969_v24 = vadd.f32 1e-05, %v937_v28  ;;  %v1200_v55 = vadd.f32 %v3795_v38, %v1124_v39  ;;  %v1121_v35 = vmul.f32 %v3780_v41, %v1045_v63  ;;  %v906_v18 = vmul.f32 0.00390625, %v870_v46 }
 0x26f   : > { %1894 = vmatmul.mubr.bf16.gmra.mxu0 %v2588_v13  ;;  %2835 = vrsqrt.f32 %v954_v52  ;;  %v1123_v53 = vmul.f32 %v3780_v41, %v1047_v21  ;;  %v891_v56 = vmul.f32 0.00390625, %v825_v54  ;;  %v1018_v29 = vmul.f32 %v3844_v22, %v3565_v47 }
 0x270   : > { %v3892_v20 = vpop.eup %2823  ;;  %2837 = vrsqrt.f32 %v969_v24  ;;  %v2605_v5 = vpack.c.bf16 %v1200_v55, %v1198_v17  ;;  %v1197_v4 = vadd.f32 %v3791_v8, %v1121_v35  ;;  %v938_v15 = vmax.f32 %v906_v18, 0.0  ;;  %v828_v3 = vpop.xlane.xlu1 %827 }
 0x271   : > { %v3895_v61 = vpop.eup %2825  ;;  %v1199_v48 = vadd.f32 %v3791_v8, %v1123_v53  ;;  %v923_v40 = vmax.f32 %v891_v56, 0.0  ;;  %v1020_v0 = vmul.f32 %v3852_v33, %v3599_v2  ;;  %v1094_v34 = vmul.f32 %v3784_v31, %v1018_v29  ;;  %v873_v26 = vpop.xlane.xlu0 %872  ;;  %v4401_v53 = vld [vmem:[#allocation35_spill] sm:$0xff] }
 0x272   : > { %1973 = vmatprep.mubr.bf16.mxu1 %v2605_v5  ;;  %v970_v47 = vadd.f32 1e-05, %v938_v15  ;;  %v1017_v16 = vmul.f32 %v3844_v22, %v3562_v9  ;;  %v1019_v27 = vmul.f32 %v3852_v33, %v3596_v45  ;;  %v892_v44 = vmul.f32 0.00390625, %v828_v3 }
 0x273   : > { %v2604_v57 = vpack.c.bf16 %v1199_v48, %v1197_v4  ;;  %v955_v32 = vadd.f32 1e-05, %v923_v40  ;;  %v1096_v28 = vmul.f32 %v3784_v31, %v1020_v0  ;;  %v1170_v39 = vadd.f32 %v3795_v38, %v1094_v34 }
 0x274   : > { %v3907_v63 = vpop.eup %2827  ;;  %2839 = vrsqrt.f32 %v970_v47  ;;  %v1093_v2 = vmul.f32 %v3780_v41, %v1017_v16  ;;  %v1095_v46 = vmul.f32 %v3780_v41, %v1019_v27  ;;  %v924_v13 = vmax.f32 %v892_v44, 0.0  ;;  %v876_v24 = vpop.xlane.xlu1 %875 }
 0x275   : > { %v3911_v9 = vpop.eup %2829  ;;  %1974 = vmatmul.mubr.bf16.gmra.mxu1 %v2604_v57  ;;  %2841 = vrsqrt.f32 %v955_v32  ;;  %v1172_v45 = vadd.f32 %v3795_v38, %v1096_v28  ;;  %v907_v22 = vmul.f32 0.00390625, %v873_v26  ;;  %v1050_v33 = vmul.f32 %v3856_v23, %v3581_v6 }
 0x276   : > { %v1169_v52 = vadd.f32 %v3791_v8, %v1093_v2  ;;  %v1171_v17 = vadd.f32 %v3791_v8, %v1095_v46  ;;  %v956_v21 = vadd.f32 1e-05, %v924_v13  ;;  %v1052_v54 = vmul.f32 %v3864_v50, %v3619_v10 }
 0x277   : > { %v2591_v55 = vpack.c.bf16 %v1172_v45, %v1170_v39  ;;  %v939_v35 = vmax.f32 %v907_v22, 0.0  ;;  %v1126_v18 = vmul.f32 %v3784_v31, %v1050_v33  ;;  %v1049_v56 = vmul.f32 %v3856_v23, %v4401_v53 }
 0x278   : > { %v3923_v29 = vpop.eup %2831  ;;  %v2590_v5 = vpack.c.bf16 %v1171_v17, %v1169_v52  ;;  %2843 = vrsqrt.f32 %v956_v21  ;;  %v1128_v6 = vmul.f32 %v3784_v31, %v1052_v54  ;;  %v1051_v4 = vmul.f32 %v3864_v50, %v3616_v30 }
 0x279   : > { %v3928_v15 = vpop.eup %2833  ;;  %1903 = vmatprep.mubr.bf16.mxu0 %v2591_v55  ;;  %v971_v10 = vadd.f32 1e-05, %v939_v35  ;;  %v1202_v3 = vadd.f32 %v3795_v38, %v1126_v18  ;;  %v1125_v48 = vmul.f32 %v3780_v41, %v1049_v56  ;;  %v908_v40 = vmul.f32 0.00390625, %v876_v24 }
 0x27a   : > { %1904 = vmatmul.mubr.bf16.gmra.mxu0 %v2590_v5  ;;  %v1204_v23 = vadd.f32 %v3795_v38, %v1128_v6  ;;  %v1127_v0 = vmul.f32 %v3780_v41, %v1051_v4  ;;  %v1022_v34 = vmul.f32 %v3869_v37, %v3605_v51  ;;  %v1024_v30 = vmul.f32 %v3877_v36, %v3635_v59 }
 0x27b   : > { %2845 = vrsqrt.f32 %v971_v10  ;;  %v1201_v50 = vadd.f32 %v3791_v8, %v1125_v48  ;;  %v940_v47 = vmax.f32 %v908_v40, 0.0  ;;  %v1021_v16 = vmul.f32 %v3869_v37, %v3602_v11 }
 0x27c   : > { %v3941_v27 = vpop.eup %2835  ;;  %v2607_v44 = vpack.c.bf16 %v1204_v23, %v1202_v3  ;;  %v1203_v26 = vadd.f32 %v3791_v8, %v1127_v0  ;;  %v1098_v57 = vmul.f32 %v3784_v31, %v1022_v34  ;;  %v1100_v32 = vmul.f32 %v3784_v31, %v1024_v30 }
 0x27d   : > { %v3946_v51 = vpop.eup %2837  ;;  %v972_v28 = vadd.f32 1e-05, %v940_v47  ;;  %v1023_v59 = vmul.f32 %v3877_v36, %v3632_v1  ;;  %v1097_v39 = vmul.f32 %v3780_v41, %v1021_v16  ;;  %v1054_v11 = vmul.f32 %v3882_v7, %v3629_v58  ;;  %v4403_v47 = vld [vmem:[#allocation37_spill] sm:$0xff] }
 0x27e   : > { %1983 = vmatprep.mubr.bf16.mxu1 %v2607_v44  ;;  %v2606_v37 = vpack.c.bf16 %v1203_v26, %v1201_v50  ;;  %v1174_v2 = vadd.f32 %v3795_v38, %v1098_v57  ;;  %v1176_v46 = vadd.f32 %v3795_v38, %v1100_v32  ;;  %v1056_v13 = vmul.f32 %v3892_v20, %v3659_v60  ;;  %v4404_v57 = vld [vmem:[#allocation19_spill] sm:$0xff]  ;;  %v4405_v32 = vld [vmem:[#allocation22_spill] sm:$0xff] }
 0x27f   : > { %2847 = vrsqrt.f32 %v972_v28  ;;  %v1099_v45 = vmul.f32 %v3780_v41, %v1023_v59  ;;  %v1173_v22 = vadd.f32 %v3791_v8, %v1097_v39  ;;  %v1130_v1 = vmul.f32 %v3784_v31, %v1054_v11  ;;  %v4406_v39 = vld [vmem:[#allocation17_spill] sm:$0xff] }
 0x280   : > { %1984 = vmatmul.mubr.bf16.gmra.mxu1 %v2606_v37  ;;  %v2593_v36 = vpack.c.bf16 %v1176_v46, %v1174_v2  ;;  %v1132_v58 = vmul.f32 %v3784_v31, %v1056_v13  ;;  %v1053_v33 = vmul.f32 %v3882_v7, %v3626_v14  ;;  %v1055_v52 = vmul.f32 %v3892_v20, %v3656_v43  ;;  %v4402_v20 = vld [vmem:[#allocation36_spill] sm:$0xff] }
 0x281   : > { %v3965_v17 = vpop.eup %2839  ;;  %v1175_v60 = vadd.f32 %v3791_v8, %v1099_v45  ;;  %v1206_v21 = vadd.f32 %v3795_v38, %v1130_v1  ;;  %v1026_v54 = vmul.f32 %v3895_v61, %v3641_v62  ;;  %v1028_v24 = vmul.f32 %v3907_v63, %v3679_v19  ;;  %v4407_v45 = vld [vmem:[#allocation38_spill] sm:$0xff] }
 0x282   : > { %v3973_v55 = vpop.eup %2841  ;;  %1913 = vmatprep.mubr.bf16.mxu0 %v2593_v36  ;;  %v1208_v14 = vadd.f32 %v3795_v38, %v1132_v58  ;;  %v1129_v7 = vmul.f32 %v3780_v41, %v1053_v33  ;;  %v1131_v43 = vmul.f32 %v3780_v41, %v1055_v52  ;;  %v1025_v35 = vmul.f32 %v3895_v61, %v4402_v20  ;;  %v4408_v36 = vld [vmem:[#allocation20_spill] sm:$0xff] }
 0x283   : > { %v2592_v18 = vpack.c.bf16 %v1175_v60, %v1173_v22  ;;  %v1102_v53 = vmul.f32 %v3784_v31, %v1026_v54  ;;  %v1104_v62 = vmul.f32 %v3784_v31, %v1028_v24  ;;  %v1027_v19 = vmul.f32 %v3907_v63, %v3676_v49 }
 0x284   : > { %v2609_v56 = vpack.c.bf16 %v1208_v14, %v1206_v21  ;;  %v1205_v5 = vadd.f32 %v3791_v8, %v1129_v7  ;;  %v1207_v6 = vadd.f32 %v3791_v8, %v1131_v43  ;;  %v1101_v4 = vmul.f32 %v3780_v41, %v1025_v35  ;;  %v4409_v21 = vld [vmem:[#allocation21_spill] sm:$0xff]  ;;  %v4410_v35 = vld [vmem:[#allocation18_spill] sm:$0xff] }
 0x285   : > { %v3987_v10 = vpop.eup %2843  ;;  %1914 = vmatmul.mubr.bf16.gmra.mxu0 %v2592_v18  ;;  %v1178_v61 = vadd.f32 %v3795_v38, %v1102_v53  ;;  %v1180_v3 = vadd.f32 %v3795_v38, %v1104_v62  ;;  %v1103_v48 = vmul.f32 %v3780_v41, %v1027_v19  ;;  %v1058_v40 = vmul.f32 %v3911_v9, %v3665_v12  ;;  %v4411_v53 = vld [vmem:[#allocation40_spill] sm:$0xff] }
 0x286   : > { %1993 = vmatprep.mubr.bf16.mxu1 %v2609_v56  ;;  %v2608_v49 = vpack.c.bf16 %v1207_v6, %v1205_v5  ;;  %v1177_v63 = vadd.f32 %v3791_v8, %v1101_v4  ;;  %v1060_v23 = vmul.f32 %v3923_v29, %v3695_v25  ;;  %v1057_v0 = vmul.f32 %v3911_v9, %v3662_v42  ;;  %v4412_v5 = vld [vmem:[#allocation23_spill] sm:$0xff]  ;;  %v4413_v4 = vld [vmem:[#allocation25_spill] sm:$0xff] }
 0x287   : > { %v2595_v34 = vpack.c.bf16 %v1180_v3, %v1178_v61  ;;  %v1179_v30 = vadd.f32 %v3791_v8, %v1103_v48  ;;  %v1134_v50 = vmul.f32 %v3784_v31, %v1058_v40  ;;  %v1059_v16 = vmul.f32 %v3923_v29, %v4403_v47 }
 0x288   : > { %v2846_v44 = vpop.eup %2845  ;;  %1994 = vmatmul.mubr.bf16.gmra.mxu1 %v2608_v49  ;;  %v1136_v12 = vmul.f32 %v3784_v31, %v1060_v23  ;;  %v1133_v26 = vmul.f32 %v3780_v41, %v1057_v0  ;;  %v1030_v25 = vmul.f32 %v3928_v15, %v4404_v57  ;;  %v1032_v42 = vmul.f32 %v3941_v27, %v4405_v32  ;;  %v4416_v57 = vld [vmem:[#allocation24_spill] sm:$0xff] }
 0x289   : > { %1923 = vmatprep.mubr.bf16.mxu0 %v2595_v34  ;;  %v2594_v9 = vpack.c.bf16 %v1179_v30, %v1177_v63  ;;  %v1210_v28 = vadd.f32 %v3795_v38, %v1134_v50  ;;  %v1135_v59 = vmul.f32 %v3780_v41, %v1059_v16  ;;  %v1029_v29 = vmul.f32 %v3928_v15, %v4406_v39  ;;  %v4414_v63 = vld [vmem:[#allocation39_spill] sm:$0xff]  ;;  %v4415_v50 = vld [vmem:[#allocation16_spill] sm:$0xff] }
 0x28a   : > { %v1212_v11 = vadd.f32 %v3795_v38, %v1136_v12  ;;  %v1209_v37 = vadd.f32 %v3791_v8, %v1133_v26  ;;  %v1106_v2 = vmul.f32 %v3784_v31, %v1030_v25  ;;  %v1108_v46 = vmul.f32 %v3784_v31, %v1032_v42  ;;  %v4417_v42 = vld [vmem:[#allocation26_spill] sm:$0xff] }
 0x28b   : > { %v1211_v13 = vadd.f32 %v3791_v8, %v1135_v59  ;;  %v1031_v22 = vmul.f32 %v3941_v27, %v4407_v45  ;;  %v1105_v1 = vmul.f32 %v3780_v41, %v1029_v29  ;;  %v1062_v58 = vmul.f32 %v3946_v51, %v4408_v36  ;;  %v4419_v29 = vld [vmem:[#allocation15_spill] sm:$0xff] }
 0x28c   : > { %v2848_v33 = vpop.eup %2847  ;;  %v2611_v15 = vpack.c.bf16 %v1212_v11, %v1210_v28  ;;  %v1182_v52 = vadd.f32 %v3795_v38, %v1106_v2  ;;  %v1184_v60 = vadd.f32 %v3795_v38, %v1108_v46  ;;  %v1064_v54 = vmul.f32 %v3965_v17, %v4409_v21  ;;  %v4418_v28 = vld [vmem:[#allocation41_spill] sm:$0xff] }
 0x28d   : > { %1924 = vmatmul.mubr.bf16.gmra.mxu0 %v2594_v9  ;;  %v2610_v24 = vpack.c.bf16 %v1211_v13, %v1209_v37  ;;  %v1107_v14 = vmul.f32 %v3780_v41, %v1031_v22  ;;  %v1181_v27 = vadd.f32 %v3791_v8, %v1105_v1  ;;  %v1138_v7 = vmul.f32 %v3784_v31, %v1062_v58 }
 0x28e   : > { %2003 = vmatprep.mubr.bf16.mxu1 %v2611_v15  ;;  %v2597_v43 = vpack.c.bf16 %v1184_v60, %v1182_v52  ;;  %v1140_v20 = vmul.f32 %v3784_v31, %v1064_v54  ;;  %v1061_v18 = vmul.f32 %v3946_v51, %v4410_v35  ;;  %v1063_v62 = vmul.f32 %v3965_v17, %v4411_v53  ;;  %v4420_v15 = vld [vmem:[#allocation42_spill] sm:$0xff]  ;;  %v4421_v60 = vld [vmem:[#allocation43_spill] sm:$0xff] }
 0x28f   : > { %v1183_v19 = vadd.f32 %v3791_v8, %v1107_v14  ;;  %v1214_v56 = vadd.f32 %v3795_v38, %v1138_v7  ;;  %v1034_v6 = vmul.f32 %v3973_v55, %v4412_v5  ;;  %v1036_v61 = vmul.f32 %v3987_v10, %v4413_v4 }
 0x290   : > { %2004 = vmatmul.mubr.bf16.gmra.mxu1 %v2610_v24  ;;  %1933 = vmatprep.mubr.bf16.mxu0 %v2597_v43  ;;  %v1216_v3 = vadd.f32 %v3795_v38, %v1140_v20  ;;  %v1137_v48 = vmul.f32 %v3780_v41, %v1061_v18  ;;  %v1139_v51 = vmul.f32 %v3780_v41, %v1063_v62 }
 0x291   : > { %v2596_v40 = vpack.c.bf16 %v1183_v19, %v1181_v27  ;;  %v1110_v17 = vmul.f32 %v3784_v31, %v1034_v6  ;;  %v1112_v49 = vmul.f32 %v3784_v31, %v1036_v61  ;;  %v1033_v23 = vmul.f32 %v3973_v55, %v4414_v63 }
 0x292   : > { %v2613_v0 = vpack.c.bf16 %v1216_v3, %v1214_v56  ;;  %v1213_v34 = vadd.f32 %v3791_v8, %v1137_v48  ;;  %v1215_v30 = vadd.f32 %v3791_v8, %v1139_v51  ;;  %v1035_v47 = vmul.f32 %v3987_v10, %v4415_v50 }
 0x293   : > { %v1186_v16 = vadd.f32 %v3795_v38, %v1110_v17  ;;  %v1188_v12 = vadd.f32 %v3795_v38, %v1112_v49  ;;  %v1109_v26 = vmul.f32 %v3780_v41, %v1033_v23  ;;  %v1066_v25 = vmul.f32 %v2846_v44, %v4416_v57 }
 0x294   : > { %2013 = vmatprep.mubr.bf16.mxu1 %v2613_v0  ;;  %v2612_v32 = vpack.c.bf16 %v1215_v30, %v1213_v34  ;;  %v1111_v55 = vmul.f32 %v3780_v41, %v1035_v47  ;;  %v1068_v9 = vmul.f32 %v2848_v33, %v4417_v42  ;;  %v1065_v59 = vmul.f32 %v2846_v44, %v4418_v28 }
 0x295   : > { %1934 = vmatmul.mubr.bf16.gmra.mxu0 %v2596_v40  ;;  %v2599_v39 = vpack.c.bf16 %v1188_v12, %v1186_v16  ;;  %v1142_v10 = vmul.f32 %v3784_v31, %v1066_v25  ;;  %v1067_v11 = vmul.f32 %v2848_v33, %v4419_v29  ;;  %v1185_v13 = vadd.f32 %v3791_v8, %v1109_v26 }
 0x296   : > { %v1187_v37 = vadd.f32 %v3791_v8, %v1111_v55  ;;  %v1144_v2 = vmul.f32 %v3784_v31, %v1068_v9  ;;  %v1141_v46 = vmul.f32 %v3780_v41, %v1065_v59 }
 0x297   : > { %1943 = vmatprep.mubr.bf16.mxu0 %v2599_v39  ;;  %v1143_v45 = vmul.f32 %v3780_v41, %v1067_v11  ;;  %v1218_v44 = vadd.f32 %v3795_v38, %v1142_v10  ;;  %v1509_v41 = vld [vmem:[%s4270_s4] sm:$0x3] }
 0x298   : > { %2014 = vmatmul.mubr.bf16.gmra.mxu1 %v2612_v32  ;;  %v1220_v22 = vadd.f32 %v3795_v38, %v1144_v2  ;;  %v2598_v1 = vpack.c.bf16 %v1187_v37, %v1185_v13  ;;  %v1217_v33 = vadd.f32 %v3791_v8, %v1141_v46  ;;  %v4074_v52 = vrot.slane %v1509_v41, %v4420_v15 }
 0x299   : > { %v1219_v36 = vadd.f32 %v3791_v8, %v1143_v45  ;;  %v4077_v38 = vrot.slane %v1509_v41, %v4421_v60 }
 0x29a   : > { %v2615_v58 = vpack.c.bf16 %v1220_v22, %v1218_v44 }
 0x29b   : > { %v2614_v31 = vpack.c.bf16 %v1219_v36, %v1217_v33 }
 0x29c   : > { %2023 = vmatprep.mubr.bf16.mxu1 %v2615_v58 }
 0x29d   : > { %1944 = vmatmul.mubr.bf16.gmra.mxu0 %v2598_v1 }
 0x2a0   : > { %2024 = vmatmul.mubr.bf16.gmra.mxu1 %v2614_v31 }
 0x312   : > { %v1875_v21 = vpop.f32.mrf.mxu0 }
 0x313   : > { %v1876_v54 = vadd.f32 %v1875_v21, %v4074_v52 }
 0x314   : > { %v1877_v24 = vpop.f32.mrf.mxu0 }
 0x315   : > { %vm2034_vm0 = vcmp.ge.f32.partialorder %v1876_v54, 0.0  ;;  %v2098_v8 = vmul.f32 0.01, %v1876_v54  ;;  %v1878_v14 = vadd.f32 %v1877_v24, %v4077_v38 }
 0x316   : > { %v1879_v27 = vpop.f32.mrf.mxu0 }
 0x317   : > { %v2162_v7 = vsel %vm2034_vm0, %v1876_v54, %v2098_v8  ;;  %vm2035_vm1 = vcmp.ge.f32.partialorder %v1878_v14, 0.0  ;;  %v2099_v43 = vmul.f32 0.01, %v1878_v14  ;;  %v1880_v20 = vadd.f32 %v1879_v27, %v4074_v52 }
 0x318   : > { %2226 = vst [vmem:[%s4084_s7] sm:$0xff] %v2162_v7  ;;  %v1881_v35 = vpop.f32.mrf.mxu0 }
 0x319   : > { %v2163_v18 = vsel %vm2035_vm1, %v1878_v14, %v2099_v43  ;;  %vm2036_vm2 = vcmp.ge.f32.partialorder %v1880_v20, 0.0  ;;  %v2100_v53 = vmul.f32 0.01, %v1880_v20  ;;  %v1882_v62 = vadd.f32 %v1881_v35, %v4077_v38  ;;  %v1955_v19 = vpop.f32.mrf.mxu1 }
 0x31a   : > { %2227 = vst [vmem:[%s4084_s7 + $0x8] sm:$0xff] %v2163_v18  ;;  %v1956_v56 = vadd.f32 %v1955_v19, %v4074_v52 }
 0x31b   : > { %v2164_v5 = vsel %vm2036_vm2, %v1880_v20, %v2100_v53  ;;  %vm2037_vm3 = vcmp.ge.f32.partialorder %v1882_v62, 0.0  ;;  %v2101_v6 = vmul.f32 0.01, %v1882_v62  ;;  %v1957_v4 = vpop.f32.mrf.mxu1 }
 0x31c   : > { %2228 = vst [vmem:[%s4084_s7 + $0x10] sm:$0xff] %v2164_v5  ;;  %vm2066_vm4 = vcmp.ge.f32.partialorder %v1956_v56, 0.0  ;;  %v2130_v61 = vmul.f32 0.01, %v1956_v56  ;;  %v1958_v3 = vadd.f32 %v1957_v4, %v4077_v38 }
 0x31d   : > { %v2165_v48 = vsel %vm2037_vm3, %v1882_v62, %v2101_v6  ;;  %v1959_v51 = vpop.f32.mrf.mxu1 }
 0x31e   : > { %2229 = vst [vmem:[%s4084_s7 + $0x18] sm:$0xff] %v2165_v48  ;;  %v2194_v40 = vsel %vm2066_vm4, %v1956_v56, %v2130_v61  ;;  %vm2067_vm5 = vcmp.ge.f32.partialorder %v1958_v3, 0.0  ;;  %v2131_v17 = vmul.f32 0.01, %v1958_v3  ;;  %v1960_v49 = vadd.f32 %v1959_v51, %v4074_v52 }
 0x31f   : > { %2258 = vst [vmem:[%s4084_s7 + $0x100] sm:$0xff] %v2194_v40  ;;  %v1961_v63 = vpop.f32.mrf.mxu1 }
 0x320   : > { %v2195_v23 = vsel %vm2067_vm5, %v1958_v3, %v2131_v17  ;;  %vm2068_vm6 = vcmp.ge.f32.partialorder %v1960_v49, 0.0  ;;  %v2132_v0 = vmul.f32 0.01, %v1960_v49  ;;  %v1962_v34 = vadd.f32 %v1961_v63, %v4077_v38 }
 0x321   : > { %2259 = vst [vmem:[%s4084_s7 + $0x108] sm:$0xff] %v2195_v23  ;;  %v1885_v30 = vpop.f32.mrf.mxu0 }
 0x322   : > { %v1886_v50 = vadd.f32 %v1885_v30, %v4074_v52  ;;  %v2196_v47 = vsel %vm2068_vm6, %v1960_v49, %v2132_v0  ;;  %vm2069_vm7 = vcmp.ge.f32.partialorder %v1962_v34, 0.0  ;;  %v2133_v16 = vmul.f32 0.01, %v1962_v34 }
 0x323   : > { %2260 = vst [vmem:[%s4084_s7 + $0x110] sm:$0xff] %v2196_v47  ;;  %v1887_v12 = vpop.f32.mrf.mxu0 }
 0x324   : > { %vm2038_vm8 = vcmp.ge.f32.partialorder %v1886_v50, 0.0  ;;  %v2102_v26 = vmul.f32 0.01, %v1886_v50  ;;  %v1888_v57 = vadd.f32 %v1887_v12, %v4077_v38  ;;  %v2197_v25 = vsel %vm2069_vm7, %v1962_v34, %v2133_v16 }
 0x325   : > { %2261 = vst [vmem:[%s4084_s7 + $0x118] sm:$0xff] %v2197_v25  ;;  %v1889_v32 = vpop.f32.mrf.mxu0 }
 0x326   : > { %v2166_v55 = vsel %vm2038_vm8, %v1886_v50, %v2102_v26  ;;  %vm2039_vm9 = vcmp.ge.f32.partialorder %v1888_v57, 0.0  ;;  %v2103_v42 = vmul.f32 0.01, %v1888_v57  ;;  %v1890_v9 = vadd.f32 %v1889_v32, %v4074_v52 }
 0x327   : > { %2230 = vst [vmem:[%s4084_s7 + $0x20] sm:$0xff] %v2166_v55  ;;  %v1891_v28 = vpop.f32.mrf.mxu0 }
 0x328   : > { %v2167_v59 = vsel %vm2039_vm9, %v1888_v57, %v2103_v42  ;;  %vm2040_vm10 = vcmp.ge.f32.partialorder %v1890_v9, 0.0  ;;  %v2104_v39 = vmul.f32 0.01, %v1890_v9  ;;  %v1965_v10 = vpop.f32.mrf.mxu1  ;;  %v1892_v29 = vadd.f32 %v1891_v28, %v4077_v38 }
 0x329   : > { %2231 = vst [vmem:[%s4084_s7 + $0x28] sm:$0xff] %v2167_v59  ;;  %v1966_v11 = vadd.f32 %v1965_v10, %v4074_v52 }
 0x32a   : > { %v2168_v37 = vsel %vm2040_vm10, %v1890_v9, %v2104_v39  ;;  %vm2041_vm11 = vcmp.ge.f32.partialorder %v1892_v29, 0.0  ;;  %v2105_v2 = vmul.f32 0.01, %v1892_v29  ;;  %v1967_v46 = vpop.f32.mrf.mxu1 }
 0x32b   : > { %2232 = vst [vmem:[%s4084_s7 + $0x30] sm:$0xff] %v2168_v37  ;;  %vm2070_vm12 = vcmp.ge.f32.partialorder %v1966_v11, 0.0  ;;  %v2134_v13 = vmul.f32 0.01, %v1966_v11  ;;  %v1968_v45 = vadd.f32 %v1967_v46, %v4077_v38 }
 0x32c   : > { %v2169_v44 = vsel %vm2041_vm11, %v1892_v29, %v2105_v2  ;;  %v1969_v22 = vpop.f32.mrf.mxu1 }
 0x32d   : > { %v2198_v1 = vsel %vm2070_vm12, %v1966_v11, %v2134_v13  ;;  %2233 = vst [vmem:[%s4084_s7 + $0x38] sm:$0xff] %v2169_v44  ;;  %vm2071_vm13 = vcmp.ge.f32.partialorder %v1968_v45, 0.0  ;;  %v2135_v36 = vmul.f32 0.01, %v1968_v45  ;;  %v1970_v58 = vadd.f32 %v1969_v22, %v4074_v52 }
 0x32e   : > { %2262 = vst [vmem:[%s4084_s7 + $0x120] sm:$0xff] %v2198_v1  ;;  %v1971_v33 = vpop.f32.mrf.mxu1 }
 0x32f   : > { %v2199_v31 = vsel %vm2071_vm13, %v1968_v45, %v2135_v36  ;;  %v1895_v41 = vpop.f32.mrf.mxu0  ;;  %vm2072_vm14 = vcmp.ge.f32.partialorder %v1970_v58, 0.0  ;;  %v2136_v15 = vmul.f32 0.01, %v1970_v58  ;;  %v1972_v60 = vadd.f32 %v1971_v33, %v4077_v38 }
 0x330   : > { %2263 = vst [vmem:[%s4084_s7 + $0x128] sm:$0xff] %v2199_v31  ;;  %v1896_v21 = vadd.f32 %v1895_v41, %v4074_v52 }
 0x331   : > { %v2200_v54 = vsel %vm2072_vm14, %v1970_v58, %v2136_v15  ;;  %v1897_v24 = vpop.f32.mrf.mxu0  ;;  %vm2073_vm15 = vcmp.ge.f32.partialorder %v1972_v60, 0.0  ;;  %v2137_v8 = vmul.f32 0.01, %v1972_v60 }
 0x332   : > { %vm2042_vm0 = vcmp.ge.f32.partialorder %v1896_v21, 0.0  ;;  %v2106_v14 = vmul.f32 0.01, %v1896_v21  ;;  %2264 = vst [vmem:[%s4084_s7 + $0x130] sm:$0xff] %v2200_v54  ;;  %v1898_v27 = vadd.f32 %v1897_v24, %v4077_v38 }
 0x333   : > { %v2201_v7 = vsel %vm2073_vm15, %v1972_v60, %v2137_v8  ;;  %v1899_v43 = vpop.f32.mrf.mxu0 }
 0x334   : > { %v2170_v20 = vsel %vm2042_vm0, %v1896_v21, %v2106_v14  ;;  %vm2043_vm1 = vcmp.ge.f32.partialorder %v1898_v27, 0.0  ;;  %v2107_v35 = vmul.f32 0.01, %v1898_v27  ;;  %2265 = vst [vmem:[%s4084_s7 + $0x138] sm:$0xff] %v2201_v7  ;;  %v1900_v18 = vadd.f32 %v1899_v43, %v4074_v52 }
 0x335   : > { %2234 = vst [vmem:[%s4084_s7 + $0x40] sm:$0xff] %v2170_v20  ;;  %v1975_v53 = vpop.f32.mrf.mxu1  ;;  %v1901_v62 = vpop.f32.mrf.mxu0 }
 0x336   : > { %v2171_v19 = vsel %vm2043_vm1, %v1898_v27, %v2107_v35  ;;  %vm2044_vm2 = vcmp.ge.f32.partialorder %v1900_v18, 0.0  ;;  %v2108_v56 = vmul.f32 0.01, %v1900_v18  ;;  %v1976_v5 = vadd.f32 %v1975_v53, %v4074_v52 }
 0x337   : > { %2235 = vst [vmem:[%s4084_s7 + $0x48] sm:$0xff] %v2171_v19  ;;  %v1902_v6 = vadd.f32 %v1901_v62, %v4077_v38  ;;  %v1977_v4 = vpop.f32.mrf.mxu1 }
 0x338   : > { %v2172_v61 = vsel %vm2044_vm2, %v1900_v18, %v2108_v56  ;;  %vm2074_vm3 = vcmp.ge.f32.partialorder %v1976_v5, 0.0  ;;  %v2138_v3 = vmul.f32 0.01, %v1976_v5  ;;  %v1978_v48 = vadd.f32 %v1977_v4, %v4077_v38 }
 0x339   : > { %2236 = vst [vmem:[%s4084_s7 + $0x50] sm:$0xff] %v2172_v61  ;;  %vm2045_vm4 = vcmp.ge.f32.partialorder %v1902_v6, 0.0  ;;  %v2109_v51 = vmul.f32 0.01, %v1902_v6  ;;  %v1979_v40 = vpop.f32.mrf.mxu1 }
 0x33a   : > { %v2202_v17 = vsel %vm2074_vm3, %v1976_v5, %v2138_v3  ;;  %vm2075_vm5 = vcmp.ge.f32.partialorder %v1978_v48, 0.0  ;;  %v2139_v49 = vmul.f32 0.01, %v1978_v48  ;;  %v1905_v63 = vpop.f32.mrf.mxu0  ;;  %v1980_v23 = vadd.f32 %v1979_v40, %v4074_v52 }
 0x33b   : > { %2266 = vst [vmem:[%s4084_s7 + $0x140] sm:$0xff] %v2202_v17  ;;  %v2173_v0 = vsel %vm2045_vm4, %v1902_v6, %v2109_v51  ;;  %v1906_v34 = vadd.f32 %v1905_v63, %v4074_v52  ;;  %v1981_v30 = vpop.f32.mrf.mxu1 }
 0x33c   : > { %2237 = vst [vmem:[%s4084_s7 + $0x58] sm:$0xff] %v2173_v0  ;;  %v2203_v50 = vsel %vm2075_vm5, %v1978_v48, %v2139_v49  ;;  %vm2076_vm6 = vcmp.ge.f32.partialorder %v1980_v23, 0.0  ;;  %v2140_v47 = vmul.f32 0.01, %v1980_v23  ;;  %v1907_v16 = vpop.f32.mrf.mxu0  ;;  %v1982_v12 = vadd.f32 %v1981_v30, %v4077_v38 }
 0x33d   : > { %2267 = vst [vmem:[%s4084_s7 + $0x148] sm:$0xff] %v2203_v50  ;;  %vm2046_vm7 = vcmp.ge.f32.partialorder %v1906_v34, 0.0  ;;  %v2110_v26 = vmul.f32 0.01, %v1906_v34  ;;  %v1908_v57 = vadd.f32 %v1907_v16, %v4077_v38 }
 0x33e   : > { %v2204_v25 = vsel %vm2076_vm6, %v1980_v23, %v2140_v47  ;;  %vm2077_vm8 = vcmp.ge.f32.partialorder %v1982_v12, 0.0  ;;  %v2141_v32 = vmul.f32 0.01, %v1982_v12  ;;  %v1909_v55 = vpop.f32.mrf.mxu0 }
 0x33f   : > { %v2174_v42 = vsel %vm2046_vm7, %v1906_v34, %v2110_v26  ;;  %2268 = vst [vmem:[%s4084_s7 + $0x150] sm:$0xff] %v2204_v25  ;;  %vm2047_vm9 = vcmp.ge.f32.partialorder %v1908_v57, 0.0  ;;  %v2111_v9 = vmul.f32 0.01, %v1908_v57  ;;  %v1910_v28 = vadd.f32 %v1909_v55, %v4074_v52 }
 0x340   : > { %2238 = vst [vmem:[%s4084_s7 + $0x60] sm:$0xff] %v2174_v42  ;;  %v2205_v59 = vsel %vm2077_vm8, %v1982_v12, %v2141_v32  ;;  %v1985_v39 = vpop.f32.mrf.mxu1  ;;  %v1911_v10 = vpop.f32.mrf.mxu0 }
 0x341   : > { %v2175_v29 = vsel %vm2047_vm9, %v1908_v57, %v2111_v9  ;;  %2269 = vst [vmem:[%s4084_s7 + $0x158] sm:$0xff] %v2205_v59  ;;  %vm2048_vm10 = vcmp.ge.f32.partialorder %v1910_v28, 0.0  ;;  %v2112_v11 = vmul.f32 0.01, %v1910_v28  ;;  %v1986_v37 = vadd.f32 %v1985_v39, %v4074_v52 }
 0x342   : > { %2239 = vst [vmem:[%s4084_s7 + $0x68] sm:$0xff] %v2175_v29  ;;  %v1912_v2 = vadd.f32 %v1911_v10, %v4077_v38  ;;  %v1987_v46 = vpop.f32.mrf.mxu1 }
 0x343   : > { %v2176_v13 = vsel %vm2048_vm10, %v1910_v28, %v2112_v11  ;;  %vm2078_vm11 = vcmp.ge.f32.partialorder %v1986_v37, 0.0  ;;  %v2142_v45 = vmul.f32 0.01, %v1986_v37  ;;  %v1988_v44 = vadd.f32 %v1987_v46, %v4077_v38 }
 0x344   : > { %2240 = vst [vmem:[%s4084_s7 + $0x70] sm:$0xff] %v2176_v13  ;;  %vm2049_vm12 = vcmp.ge.f32.partialorder %v1912_v2, 0.0  ;;  %v2113_v22 = vmul.f32 0.01, %v1912_v2  ;;  %v1989_v1 = vpop.f32.mrf.mxu1 }
 0x345   : > { %v2206_v36 = vsel %vm2078_vm11, %v1986_v37, %v2142_v45  ;;  %vm2079_vm13 = vcmp.ge.f32.partialorder %v1988_v44, 0.0  ;;  %v2143_v58 = vmul.f32 0.01, %v1988_v44  ;;  %v1915_v33 = vpop.f32.mrf.mxu0  ;;  %v1990_v31 = vadd.f32 %v1989_v1, %v4074_v52 }
 0x346   : > { %2270 = vst [vmem:[%s4084_s7 + $0x160] sm:$0xff] %v2206_v36  ;;  %v2177_v41 = vsel %vm2049_vm12, %v1912_v2, %v2113_v22  ;;  %v1916_v15 = vadd.f32 %v1915_v33, %v4074_v52  ;;  %v1991_v60 = vpop.f32.mrf.mxu1 }
 0x347   : > { %2241 = vst [vmem:[%s4084_s7 + $0x78] sm:$0xff] %v2177_v41  ;;  %v2207_v21 = vsel %vm2079_vm13, %v1988_v44, %v2143_v58  ;;  %vm2080_vm14 = vcmp.ge.f32.partialorder %v1990_v31, 0.0  ;;  %v2144_v54 = vmul.f32 0.01, %v1990_v31  ;;  %v1917_v24 = vpop.f32.mrf.mxu0  ;;  %v1992_v8 = vadd.f32 %v1991_v60, %v4077_v38 }
 0x348   : > { %2271 = vst [vmem:[%s4084_s7 + $0x168] sm:$0xff] %v2207_v21  ;;  %vm2050_vm15 = vcmp.ge.f32.partialorder %v1916_v15, 0.0  ;;  %v2114_v14 = vmul.f32 0.01, %v1916_v15  ;;  %v1918_v27 = vadd.f32 %v1917_v24, %v4077_v38  ;;  %v1995_v7 = vpop.f32.mrf.mxu1 }
 0x349   : > { %v2208_v43 = vsel %vm2080_vm14, %v1990_v31, %v2144_v54  ;;  %vm2081_vm0 = vcmp.ge.f32.partialorder %v1992_v8, 0.0  ;;  %v2145_v20 = vmul.f32 0.01, %v1992_v8  ;;  %v1919_v35 = vpop.f32.mrf.mxu0  ;;  %v1996_v18 = vadd.f32 %v1995_v7, %v4074_v52 }
 0x34a   : > { %v2178_v53 = vsel %vm2050_vm15, %v1916_v15, %v2114_v14  ;;  %2272 = vst [vmem:[%s4084_s7 + $0x170] sm:$0xff] %v2208_v43  ;;  %vm2051_vm1 = vcmp.ge.f32.partialorder %v1918_v27, 0.0  ;;  %v2115_v62 = vmul.f32 0.01, %v1918_v27  ;;  %v1920_v19 = vadd.f32 %v1919_v35, %v4074_v52  ;;  %v1997_v56 = vpop.f32.mrf.mxu1 }
 0x34b   : > { %2242 = vst [vmem:[%s4084_s7 + $0x80] sm:$0xff] %v2178_v53  ;;  %v2209_v5 = vsel %vm2081_vm0, %v1992_v8, %v2145_v20  ;;  %vm2082_vm2 = vcmp.ge.f32.partialorder %v1996_v18, 0.0  ;;  %v2146_v6 = vmul.f32 0.01, %v1996_v18  ;;  %v1921_v4 = vpop.f32.mrf.mxu0  ;;  %v1998_v61 = vadd.f32 %v1997_v56, %v4077_v38 }
 0x34c   : > { %v2179_v3 = vsel %vm2051_vm1, %v1918_v27, %v2115_v62  ;;  %2273 = vst [vmem:[%s4084_s7 + $0x178] sm:$0xff] %v2209_v5  ;;  %vm2052_vm3 = vcmp.ge.f32.partialorder %v1920_v19, 0.0  ;;  %v2116_v48 = vmul.f32 0.01, %v1920_v19  ;;  %v1922_v51 = vadd.f32 %v1921_v4, %v4077_v38  ;;  %v1999_v40 = vpop.f32.mrf.mxu1 }
 0x34d   : > { %2243 = vst [vmem:[%s4084_s7 + $0x88] sm:$0xff] %v2179_v3  ;;  %v2210_v17 = vsel %vm2082_vm2, %v1996_v18, %v2146_v6  ;;  %vm2083_vm4 = vcmp.ge.f32.partialorder %v1998_v61, 0.0  ;;  %v2147_v49 = vmul.f32 0.01, %v1998_v61  ;;  %v1925_v63 = vpop.f32.mrf.mxu0  ;;  %v2000_v23 = vadd.f32 %v1999_v40, %v4074_v52 }
 0x34e   : > { %v2180_v0 = vsel %vm2052_vm3, %v1920_v19, %v2116_v48  ;;  %2274 = vst [vmem:[%s4084_s7 + $0x180] sm:$0xff] %v2210_v17  ;;  %vm2053_vm5 = vcmp.ge.f32.partialorder %v1922_v51, 0.0  ;;  %v2117_v34 = vmul.f32 0.01, %v1922_v51  ;;  %v1926_v30 = vadd.f32 %v1925_v63, %v4074_v52  ;;  %v2001_v50 = vpop.f32.mrf.mxu1 }
 0x34f   : > { %2244 = vst [vmem:[%s4084_s7 + $0x90] sm:$0xff] %v2180_v0  ;;  %v2211_v47 = vsel %vm2083_vm4, %v1998_v61, %v2147_v49  ;;  %vm2084_vm6 = vcmp.ge.f32.partialorder %v2000_v23, 0.0  ;;  %v2148_v16 = vmul.f32 0.01, %v2000_v23  ;;  %v1927_v12 = vpop.f32.mrf.mxu0  ;;  %v2002_v26 = vadd.f32 %v2001_v50, %v4077_v38 }
 0x350   : > { %v2181_v57 = vsel %vm2053_vm5, %v1922_v51, %v2117_v34  ;;  %2275 = vst [vmem:[%s4084_s7 + $0x188] sm:$0xff] %v2211_v47  ;;  %vm2054_vm7 = vcmp.ge.f32.partialorder %v1926_v30, 0.0  ;;  %v2118_v25 = vmul.f32 0.01, %v1926_v30  ;;  %v1928_v32 = vadd.f32 %v1927_v12, %v4077_v38  ;;  %v2005_v55 = vpop.f32.mrf.mxu1 }
 0x351   : > { %2245 = vst [vmem:[%s4084_s7 + $0x98] sm:$0xff] %v2181_v57  ;;  %v2212_v42 = vsel %vm2084_vm6, %v2000_v23, %v2148_v16  ;;  %vm2085_vm8 = vcmp.ge.f32.partialorder %v2002_v26, 0.0  ;;  %v2149_v9 = vmul.f32 0.01, %v2002_v26  ;;  %v1929_v28 = vpop.f32.mrf.mxu0  ;;  %v2006_v59 = vadd.f32 %v2005_v55, %v4074_v52 }
 0x352   : > { %v2182_v39 = vsel %vm2054_vm7, %v1926_v30, %v2118_v25  ;;  %2276 = vst [vmem:[%s4084_s7 + $0x190] sm:$0xff] %v2212_v42  ;;  %vm2055_vm9 = vcmp.ge.f32.partialorder %v1928_v32, 0.0  ;;  %v2119_v10 = vmul.f32 0.01, %v1928_v32  ;;  %v1930_v29 = vadd.f32 %v1929_v28, %v4074_v52  ;;  %v2007_v11 = vpop.f32.mrf.mxu1 }
 0x353   : > { %2246 = vst [vmem:[%s4084_s7 + $0xa0] sm:$0xff] %v2182_v39  ;;  %v2213_v37 = vsel %vm2085_vm8, %v2002_v26, %v2149_v9  ;;  %vm2086_vm10 = vcmp.ge.f32.partialorder %v2006_v59, 0.0  ;;  %v2150_v2 = vmul.f32 0.01, %v2006_v59  ;;  %v1931_v46 = vpop.f32.mrf.mxu0  ;;  %v2008_v13 = vadd.f32 %v2007_v11, %v4077_v38 }
 0x354   : > { %v2183_v45 = vsel %vm2055_vm9, %v1928_v32, %v2119_v10  ;;  %2277 = vst [vmem:[%s4084_s7 + $0x198] sm:$0xff] %v2213_v37  ;;  %vm2056_vm11 = vcmp.ge.f32.partialorder %v1930_v29, 0.0  ;;  %v2120_v44 = vmul.f32 0.01, %v1930_v29  ;;  %v1932_v22 = vadd.f32 %v1931_v46, %v4077_v38  ;;  %v2009_v1 = vpop.f32.mrf.mxu1 }
 0x355   : > { %2247 = vst [vmem:[%s4084_s7 + $0xa8] sm:$0xff] %v2183_v45  ;;  %v2214_v36 = vsel %vm2086_vm10, %v2006_v59, %v2150_v2  ;;  %vm2087_vm12 = vcmp.ge.f32.partialorder %v2008_v13, 0.0  ;;  %v2151_v58 = vmul.f32 0.01, %v2008_v13  ;;  %v1935_v33 = vpop.f32.mrf.mxu0  ;;  %v2010_v31 = vadd.f32 %v2009_v1, %v4074_v52 }
 0x356   : > { %v2184_v41 = vsel %vm2056_vm11, %v1930_v29, %v2120_v44  ;;  %2278 = vst [vmem:[%s4084_s7 + $0x1a0] sm:$0xff] %v2214_v36  ;;  %vm2057_vm13 = vcmp.ge.f32.partialorder %v1932_v22, 0.0  ;;  %v2121_v15 = vmul.f32 0.01, %v1932_v22  ;;  %v1936_v60 = vadd.f32 %v1935_v33, %v4074_v52  ;;  %v2011_v21 = vpop.f32.mrf.mxu1 }
 0x357   : > { %2248 = vst [vmem:[%s4084_s7 + $0xb0] sm:$0xff] %v2184_v41  ;;  %v2215_v54 = vsel %vm2087_vm12, %v2008_v13, %v2151_v58  ;;  %vm2088_vm14 = vcmp.ge.f32.partialorder %v2010_v31, 0.0  ;;  %v2152_v24 = vmul.f32 0.01, %v2010_v31  ;;  %v1937_v8 = vpop.f32.mrf.mxu0  ;;  %v2012_v14 = vadd.f32 %v2011_v21, %v4077_v38 }
 0x358   : > { %v2185_v27 = vsel %vm2057_vm13, %v1932_v22, %v2121_v15  ;;  %2279 = vst [vmem:[%s4084_s7 + $0x1a8] sm:$0xff] %v2215_v54  ;;  %vm2058_vm15 = vcmp.ge.f32.partialorder %v1936_v60, 0.0  ;;  %v2122_v7 = vmul.f32 0.01, %v1936_v60  ;;  %v1938_v43 = vadd.f32 %v1937_v8, %v4077_v38  ;;  %v2015_v20 = vpop.f32.mrf.mxu1 }
 0x359   : > { %2249 = vst [vmem:[%s4084_s7 + $0xb8] sm:$0xff] %v2185_v27  ;;  %v2216_v35 = vsel %vm2088_vm14, %v2010_v31, %v2152_v24  ;;  %vm2089_vm0 = vcmp.ge.f32.partialorder %v2012_v14, 0.0  ;;  %v2153_v18 = vmul.f32 0.01, %v2012_v14  ;;  %v1939_v53 = vpop.f32.mrf.mxu0  ;;  %v2016_v62 = vadd.f32 %v2015_v20, %v4074_v52 }
 0x35a   : > { %v2186_v19 = vsel %vm2058_vm15, %v1936_v60, %v2122_v7  ;;  %2280 = vst [vmem:[%s4084_s7 + $0x1b0] sm:$0xff] %v2216_v35  ;;  %vm2059_vm1 = vcmp.ge.f32.partialorder %v1938_v43, 0.0  ;;  %v2123_v56 = vmul.f32 0.01, %v1938_v43  ;;  %v1940_v5 = vadd.f32 %v1939_v53, %v4074_v52  ;;  %v2017_v6 = vpop.f32.mrf.mxu1 }
 0x35b   : > { %2250 = vst [vmem:[%s4084_s7 + $0xc0] sm:$0xff] %v2186_v19  ;;  %v2217_v4 = vsel %vm2089_vm0, %v2012_v14, %v2153_v18  ;;  %vm2090_vm2 = vcmp.ge.f32.partialorder %v2016_v62, 0.0  ;;  %v2154_v61 = vmul.f32 0.01, %v2016_v62  ;;  %v1941_v3 = vpop.f32.mrf.mxu0  ;;  %v2018_v48 = vadd.f32 %v2017_v6, %v4077_v38 }
 0x35c   : > { %v2187_v51 = vsel %vm2059_vm1, %v1938_v43, %v2123_v56  ;;  %2281 = vst [vmem:[%s4084_s7 + $0x1b8] sm:$0xff] %v2217_v4  ;;  %vm2060_vm3 = vcmp.ge.f32.partialorder %v1940_v5, 0.0  ;;  %v2124_v40 = vmul.f32 0.01, %v1940_v5  ;;  %v1942_v17 = vadd.f32 %v1941_v3, %v4077_v38  ;;  %v2019_v49 = vpop.f32.mrf.mxu1 }
 0x35d   : > { %2251 = vst [vmem:[%s4084_s7 + $0xc8] sm:$0xff] %v2187_v51  ;;  %v2218_v63 = vsel %vm2090_vm2, %v2016_v62, %v2154_v61  ;;  %vm2091_vm4 = vcmp.ge.f32.partialorder %v2018_v48, 0.0  ;;  %v2155_v23 = vmul.f32 0.01, %v2018_v48  ;;  %v1945_v0 = vpop.f32.mrf.mxu0  ;;  %v2020_v34 = vadd.f32 %v2019_v49, %v4074_v52 }
 0x35e   : > { %v2188_v30 = vsel %vm2060_vm3, %v1940_v5, %v2124_v40  ;;  %2282 = vst [vmem:[%s4084_s7 + $0x1c0] sm:$0xff] %v2218_v63  ;;  %vm2061_vm5 = vcmp.ge.f32.partialorder %v1942_v17, 0.0  ;;  %v2125_v50 = vmul.f32 0.01, %v1942_v17  ;;  %v1946_v47 = vadd.f32 %v1945_v0, %v4074_v52  ;;  %v2021_v16 = vpop.f32.mrf.mxu1 }
 0x35f   : > { %2252 = vst [vmem:[%s4084_s7 + $0xd0] sm:$0xff] %v2188_v30  ;;  %v2219_v12 = vsel %vm2091_vm4, %v2018_v48, %v2155_v23  ;;  %vm2092_vm6 = vcmp.ge.f32.partialorder %v2020_v34, 0.0  ;;  %v2156_v26 = vmul.f32 0.01, %v2020_v34  ;;  %v1947_v57 = vpop.f32.mrf.mxu0  ;;  %v2022_v25 = vadd.f32 %v2021_v16, %v4077_v38 }
 0x360   : > { %v2189_v32 = vsel %vm2061_vm5, %v1942_v17, %v2125_v50  ;;  %2283 = vst [vmem:[%s4084_s7 + $0x1c8] sm:$0xff] %v2219_v12  ;;  %vm2062_vm7 = vcmp.ge.f32.partialorder %v1946_v47, 0.0  ;;  %v2126_v55 = vmul.f32 0.01, %v1946_v47  ;;  %v1948_v42 = vadd.f32 %v1947_v57, %v4077_v38  ;;  %v2025_v9 = vpop.f32.mrf.mxu1 }
 0x361   : > { %2253 = vst [vmem:[%s4084_s7 + $0xd8] sm:$0xff] %v2189_v32  ;;  %v2220_v28 = vsel %vm2092_vm6, %v2020_v34, %v2156_v26  ;;  %vm2093_vm8 = vcmp.ge.f32.partialorder %v2022_v25, 0.0  ;;  %v2157_v59 = vmul.f32 0.01, %v2022_v25  ;;  %v1949_v39 = vpop.f32.mrf.mxu0  ;;  %v2026_v10 = vadd.f32 %v2025_v9, %v4074_v52 }
 0x362   : > { %v2190_v29 = vsel %vm2062_vm7, %v1946_v47, %v2126_v55  ;;  %2284 = vst [vmem:[%s4084_s7 + $0x1d0] sm:$0xff] %v2220_v28  ;;  %vm2063_vm9 = vcmp.ge.f32.partialorder %v1948_v42, 0.0  ;;  %v2127_v11 = vmul.f32 0.01, %v1948_v42  ;;  %v1950_v37 = vadd.f32 %v1949_v39, %v4074_v52  ;;  %v2027_v2 = vpop.f32.mrf.mxu1 }
 0x363   : > { %2254 = vst [vmem:[%s4084_s7 + $0xe0] sm:$0xff] %v2190_v29  ;;  %v2221_v46 = vsel %vm2093_vm8, %v2022_v25, %v2157_v59  ;;  %vm2094_vm10 = vcmp.ge.f32.partialorder %v2026_v10, 0.0  ;;  %v2158_v13 = vmul.f32 0.01, %v2026_v10  ;;  %v1951_v45 = vpop.f32.mrf.mxu0  ;;  %v2028_v44 = vadd.f32 %v2027_v2, %v4077_v38 }
 0x364   : > { %v2191_v22 = vsel %vm2063_vm9, %v1948_v42, %v2127_v11  ;;  %2285 = vst [vmem:[%s4084_s7 + $0x1d8] sm:$0xff] %v2221_v46  ;;  %vm2064_vm11 = vcmp.ge.f32.partialorder %v1950_v37, 0.0  ;;  %v2128_v1 = vmul.f32 0.01, %v1950_v37  ;;  %v1952_v36 = vadd.f32 %v1951_v45, %v4077_v38  ;;  %v2029_v58 = vpop.f32.mrf.mxu1 }
 0x365   : > { %2255 = vst [vmem:[%s4084_s7 + $0xe8] sm:$0xff] %v2191_v22  ;;  %v2222_v33 = vsel %vm2094_vm10, %v2026_v10, %v2158_v13  ;;  %vm2095_vm12 = vcmp.ge.f32.partialorder %v2028_v44, 0.0  ;;  %v2159_v31 = vmul.f32 0.01, %v2028_v44  ;;  %v2030_v41 = vadd.f32 %v2029_v58, %v4074_v52 }
 0x366   : > { %v2192_v15 = vsel %vm2064_vm11, %v1950_v37, %v2128_v1  ;;  %2286 = vst [vmem:[%s4084_s7 + $0x1e0] sm:$0xff] %v2222_v33  ;;  %vm2065_vm13 = vcmp.ge.f32.partialorder %v1952_v36, 0.0  ;;  %v2129_v60 = vmul.f32 0.01, %v1952_v36  ;;  %v2031_v21 = vpop.f32.mrf.mxu1 }
 0x367   : > { %2256 = vst [vmem:[%s4084_s7 + $0xf0] sm:$0xff] %v2192_v15  ;;  %v2223_v54 = vsel %vm2095_vm12, %v2028_v44, %v2159_v31  ;;  %vm2096_vm14 = vcmp.ge.f32.partialorder %v2030_v41, 0.0  ;;  %v2160_v24 = vmul.f32 0.01, %v2030_v41  ;;  %v2032_v8 = vadd.f32 %v2031_v21, %v4077_v38 }
 0x368   : > { %v2193_v14 = vsel %vm2065_vm13, %v1952_v36, %v2129_v60  ;;  %2287 = vst [vmem:[%s4084_s7 + $0x1e8] sm:$0xff] %v2223_v54 }
 0x369   : > { %2257 = vst [vmem:[%s4084_s7 + $0xf8] sm:$0xff] %v2193_v14  ;;  %v2224_v52 = vsel %vm2096_vm14, %v2030_v41, %v2160_v24  ;;  %vm2097_vm15 = vcmp.ge.f32.partialorder %v2032_v8, 0.0  ;;  %v2161_v27 = vmul.f32 0.01, %v2032_v8 }
 0x36a   : > { %2288 = vst [vmem:[%s4084_s7 + $0x1f0] sm:$0xff] %v2224_v52 }
 0x36b   : > { %v2225_v7 = vsel %vm2097_vm15, %v2032_v8, %v2161_v27 }
 0x36c   : > { %2289 = vst [vmem:[%s4084_s7 + $0x1f8] sm:$0xff] %v2225_v7 }
 0x36d   : > { %2942 = shalt.err (!%p2939_p2)
}
 0x36e   : > { %s2943_s16 = scalar_lea.hbm %s4214_s21, 8192  ;;  %s2947_s23 = scalar_lea.hbm %s4271_s5, 16384 }
 0x36f   : > { %p2944_p6 = scmp.ne.s32.totalorder %s4214_s21, %s2943_s16  ;;  %p2948_p0 = scmp.lt.s32.totalorder %s4214_s21, %s4271_s5 }
 0x370   : > { %p2949_p10 = scmp.lt.s32.totalorder %s2947_s23, %s2943_s16 }
 0x371   : > { %p2945_p11 = pnand %p2944_p6, %p4422_p7 }
 0x372   : > { %p2950_p5 = por %p2949_p10, %p2948_p0 }
 0x373   : > { %p2946_p1 = pneg %p2945_p11 }
 0x375   : > { %p2951_p3 = pnand %p2950_p5, %p2946_p1 }
 0x377   : > { %2954 = shalt.err (!%p2951_p3)
}
 0x378   : > { %s3023_s6 = smov 256   ;;  %s3024_s7 = smov 16  }
 0x379   : > { %2658 = dma.vmem_to_hbm [thread:$0]  (%p4422_p7), %s4216_s17, 8192, %s4214_s21, %s2291_s28, %s3023_s6, %s3023_s6, %s3024_s7  }
 0x37a PF: > { %s4423_s10 = sld [smem:[#allocation14_spill]]  ;;  %s2324_s25 = sand.u32 1, %s2993_s18  }
 0x37b   : > { %s4424_s12 = sld [smem:[#allocation13_spill]]  ;;  %s2325_s8 = scalar_lea.sflag [#allocation5], %s2324_s25 }
 0x380   : > { %p4425_p8 = scmp.ne.s32.totalorder %s4423_s10, 0 }
 0x381   : > { %p4426_p9 = scmp.ge.s32.totalorder %s4424_s12, 2 }
 0x383   : > { %p2672_p12 = pnand %p4426_p9, %p4425_p8 }
 0x385   : > { %p2673_p13 = pneg %p2672_p12 }
 0x387   : > { %2988 = dma.done.wait (%p2673_p13), %s2325_s8, 8192  }
 0x388   : > { %2990 = vsyncadd (%p2673_p13), %s2325_s8, 4294959104  ;;  %s22_s23 = sadd.s32 1, %s4424_s12   ;;  %s4427_s18 = smov %s2997_s19 }
 0x389   : > { %p19_p4 = scmp.ge.s32.totalorder %s22_s23, 4   ;;  %s4428_s19 = smov %s3001_s20 }
 0x38a   : > { %s4429_s20 = smov %s3178_s14  ;;  %s4430_s21 = smov %s3009_s22 }
 0x38b   : > { %s4431_s22 = smov %s4433_s11  ;;  %21 = sbr.rel (!%p19_p4) target bundleno = 9 (0x9), region = 101 }
 0x390   :  { %2330 = vsyncpa [#allocation4], 1 }
 0x391   :  { %2332 = vsyncpa [#allocation4 + $0x1], 1 }
 0x392   :  { %2333 = vsyncpa [#allocation7], 1 }
 0x393   :  { %2334 = vsyncpa [#allocation5], 1 }
 0x394   :  { %2336 = vsyncpa [#allocation5 + $0x1], 1 }

</bundles_post_ra>
